<compile_context>
chip_gen: v6e
topology: v6e:2x2x1
jax: 0.10.0
libtpu: 0.0.40
codegen_flags: <defaults>
</compile_context>

<pallas_src>
import jax
import jax.numpy as jnp
from jax import lax
from jax.experimental import pallas as pl
from jax.experimental.pallas import tpu as pltpu

EPS = 1e-5
_SQRT_HALF = 0.7071067811865476


def _erf(z):
    # Abramowitz & Stegun 7.1.26 rational approximation, |err| <= 1.5e-7
    # (~f32 eps), so this matches PyTorch's exact-erf nn.GELU() in float32.
    # TODO(synk): the 1/(1+p*|z|) divide could go to the EUP via
    # pl.reciprocal(approx=True), but the approx precision is marginal for the
    # 1e-3 output tolerance and elementwise work is no longer the bottleneck.
    a1, a2, a3, a4, a5 = (0.254829592, -0.284496736, 1.421413741,
                          -1.453152027, 1.061405429)
    p = 0.3275911
    sgn = jnp.where(z >= 0.0, 1.0, -1.0)
    az = jnp.abs(z)
    t = 1.0 / (1.0 + p * az)
    poly = ((((a5 * t + a4) * t + a3) * t + a2) * t + a1) * t
    return sgn * (1.0 - poly * jnp.exp(-az * az))


def _gelu(y):
    return 0.5 * y * (1.0 + _erf(y * _SQRT_HALF))


def _instance_norm(y, inv_s):
    # y: (C, S) -- per-channel stats over the lane-dense spatial axis.
    # Fused single pass: sum and sum-of-squares (biased variance, f32).
    s1 = jnp.sum(y, axis=1, keepdims=True)
    s2 = jnp.sum(y * y, axis=1, keepdims=True)
    mean = s1 * inv_s
    var = jnp.maximum(s2 * inv_s - mean * mean, 0.0)
    return (y - mean) * lax.rsqrt(var + EPS)


def _make_gmp_kernel(D, H, W, C):
    S = D * H * W
    inv_s = 1.0 / S

    def kernel(x_ref, masks_ref, w1_ref, b1_ref, w2_ref, b2_ref,
               w3_ref, b3_ref, w4_ref, b4_ref, out_ref, col_sc):
        x = x_ref[0]                                    # (C, S), lane-dense

        def im2col(y):
            # Write the 27 spatially-shifted + boundary-masked taps of y into
            # col_sc (27*C, S).  Row r = t*C + cin matches the prepacked LHS.
            t = 0
            for kd in range(3):
                for kh in range(3):
                    for kw in range(3):
                        delta = (kd - 1) * H * W + (kh - 1) * W + (kw - 1)
                        if delta % S == 0:
                            shifted = y
                        else:
                            shifted = pltpu.roll(y, shift=(-delta) % S, axis=1)
                        col_sc[t * C:(t + 1) * C, :] = (
                            shifted * masks_ref[t:t + 1, :])
                        t += 1

        def conv3x3(y, w_ref, b_ref):
            # One MXU matmul per 3x3x3 conv: (C, 27C) @ (27C, S).
            im2col(y)
            return jnp.dot(w_ref[...], col_sc[...],
                           preferred_element_type=jnp.float32) + b_ref[...]

        def conv1x1(y, w_ref, b_ref):
            return jnp.dot(w_ref[...], y,
                           preferred_element_type=jnp.float32) + b_ref[...]

        # ---- branch 1: proj -> IN -> GELU -> proj2 -> IN -> GELU ----------
        x1 = _gelu(_instance_norm(conv3x3(x, w1_ref, b1_ref), inv_s))
        x1 = _gelu(_instance_norm(conv3x3(x1, w2_ref, b2_ref), inv_s))
        # ---- branch 2: proj3 (1x1x1) -> IN -> GELU ------------------------
        x2 = _gelu(_instance_norm(conv1x1(x, w3_ref, b3_ref), inv_s))
        # ---- merge: proj4 (1x1x1) -> IN -> GELU, plus residual ------------
        x4 = _gelu(_instance_norm(conv1x1(x1 + x2, w4_ref, b4_ref), inv_s))
        out_ref[0] = x4 + x

    return kernel


def _make_tap_masks(D, H, W):
    """(27, S) float32 validity masks for 'same' padding of a 3x3x3 conv."""
    d = jnp.arange(D)[:, None, None]
    h = jnp.arange(H)[None, :, None]
    w = jnp.arange(W)[None, None, :]
    masks = []
    for dd in (-1, 0, 1):
        for dh in (-1, 0, 1):
            for dw in (-1, 0, 1):
                valid = ((d + dd >= 0) & (d + dd < D) &
                         (h + dh >= 0) & (h + dh < H) &
                         (w + dw >= 0) & (w + dw < W))
                masks.append(valid.reshape(D * H * W))
    return jnp.stack(masks).astype(jnp.float32)


def gmp_block(x_ncdhw, params):
    """PyTorch-layout entry point: x is (N, C, D, H, W) float32."""
    N, C, D, H, W = x_ncdhw.shape
    S = D * H * W
    x_flat = x_ncdhw.reshape(N, C, S)          # free reshape, no transpose/pad
    masks = _make_tap_masks(D, H, W)

    def prep3(w):  # (3,3,3,Cin,Cout) -> (Cout, 27*Cin), column = t*Cin + cin
        return jnp.transpose(w.reshape(27, C, C), (2, 0, 1)).reshape(C, 27 * C)

    w1 = prep3(params["w1"])
    w2 = prep3(params["w2"])
    w3 = params["w3"].T                         # (Cout, Cin)
    w4 = params["w4"].T
    b = lambda k: params[k].reshape(C, 1)

    def full_spec(shape):
        return pl.BlockSpec(shape, lambda n, _nd=len(shape): (0,) * _nd)

    out = pl.pallas_call(
        _make_gmp_kernel(D, H, W, C),
        out_shape=jax.ShapeDtypeStruct((N, C, S), jnp.float32),
        grid=(N,),
        in_specs=[
            pl.BlockSpec((1, C, S), lambda n: (n, 0, 0)),   # x (lane-dense)
            full_spec((27, S)),                              # tap masks
            full_spec((C, 27 * C)), full_spec((C, 1)),       # proj  (3x3x3)
            full_spec((C, 27 * C)), full_spec((C, 1)),       # proj2 (3x3x3)
            full_spec((C, C)), full_spec((C, 1)),            # proj3 (1x1x1)
            full_spec((C, C)), full_spec((C, 1)),            # proj4 (1x1x1)
        ],
        out_specs=pl.BlockSpec((1, C, S), lambda n: (n, 0, 0)),
        scratch_shapes=[pltpu.VMEM((27 * C, S), jnp.float32)],   # im2col buf
        compiler_params=pltpu.CompilerParams(
            dimension_semantics=("parallel",),      # megacore over batch (v7x)
            vmem_limit_bytes=64 * 1024 * 1024),
    )(x_flat, masks, w1, b("b1"), w2, b("b2"), w3, b("b3"), w4, b("b4"))
    # TODO(synk): for large volumes (e.g. 64^3) add a two-pass spatially tiled
    # variant (conv+stats pass, then normalize pass) so per-sample residency
    # fits v7x's 64 MiB VMEM; whole-sample residency is fine at these sizes.
    return out.reshape(N, C, D, H, W)


# ------------------------- parameters & reference ---------------------------

def init_params(key, C):
    """Deterministic synthetic parameters (shapes follow GMPBlock.__init__)."""
    ks = jax.random.split(key, 8)

    def uni(k, shape, fan_in):
        bound = fan_in ** -0.5
        return jax.random.uniform(k, shape, jnp.float32, -bound, bound)

    return {
        # conv3x3x3 weights stored DHWIO: (3, 3, 3, Cin, Cout)
        "w1": uni(ks[0], (3, 3, 3, C, C), C * 27),
        "b1": uni(ks[1], (C,), C * 27),
        "w2": uni(ks[2], (3, 3, 3, C, C), C * 27),
        "b2": uni(ks[3], (C,), C * 27),
        # conv1x1x1 weights stored (Cin, Cout)
        "w3": uni(ks[4], (C, C), C),
        "b3": uni(ks[5], (C,), C),
        "w4": uni(ks[6], (C, C), C),
        "b4": uni(ks[7], (C,), C),
    }


def gmp_ref_ndhwc(x, params):
    """Plain-JAX reference (NDHWC), mirrors the PyTorch forward exactly."""
    C = x.shape[-1]

    def conv(y, w, b, pad):
        dn = lax.conv_dimension_numbers(y.shape, w.shape,
                                        ("NDHWC", "DHWIO", "NDHWC"))
        return lax.conv_general_dilated(y, w, (1, 1, 1), [(pad, pad)] * 3,
                                        dimension_numbers=dn) + b

    def inorm(y):
        m = jnp.mean(y, axis=(1, 2, 3), keepdims=True)
        v = jnp.mean(jnp.square(y - m), axis=(1, 2, 3), keepdims=True)
        return (y - m) * lax.rsqrt(v + EPS)

    g = lambda y: jax.nn.gelu(y, approximate=False)

    x1 = g(inorm(conv(x, params["w1"], params["b1"], 1)))
    x1 = g(inorm(conv(x1, params["w2"], params["b2"], 1)))
    x2 = g(inorm(conv(x, params["w3"].reshape(1, 1, 1, C, C), params["b3"], 0)))
    xm = x1 + x2
    x4 = g(inorm(conv(xm, params["w4"].reshape(1, 1, 1, C, C), params["b4"], 0)))
    return x4 + x


if __name__ == "__main__":
    key = jax.random.PRNGKey(0)
    N, C, D, H, W = 2, 4, 8, 8, 8
    kx, kp = jax.random.split(key)

    x_ncdhw = jax.random.normal(kx, (N, C, D, H, W), jnp.float32)
    params = init_params(kp, C)

    out = jax.block_until_ready(gmp_block(x_ncdhw, params))

    # cross-check against a pure-JAX reference of the same forward pass
    x_ndhwc = jnp.transpose(x_ncdhw, (0, 2, 3, 4, 1))
    ref = jnp.transpose(gmp_ref_ndhwc(x_ndhwc, params), (0, 4, 1, 2, 3))
    max_err = float(jnp.max(jnp.abs(out - ref)))
    assert out.shape == x_ncdhw.shape, (out.shape, x_ncdhw.shape)
    assert max_err < 1e-3, f"max abs error vs reference: {max_err}"

    print("KERNEL_OK")
</pallas_src>

<mosaic_0001>
module attributes {stable_mosaic.version = 11 : i64} {
  func.func @kernel(%arg0: i32, %arg1: memref<1x4x512xf32, #tpu.memory_space<vmem>>, %arg2: memref<27x512xf32, #tpu.memory_space<vmem>>, %arg3: memref<4x108xf32, #tpu.memory_space<vmem>>, %arg4: memref<4x1xf32, #tpu.memory_space<vmem>>, %arg5: memref<4x108xf32, #tpu.memory_space<vmem>>, %arg6: memref<4x1xf32, #tpu.memory_space<vmem>>, %arg7: memref<4x4xf32, #tpu.memory_space<vmem>>, %arg8: memref<4x1xf32, #tpu.memory_space<vmem>>, %arg9: memref<4x4xf32, #tpu.memory_space<vmem>>, %arg10: memref<4x1xf32, #tpu.memory_space<vmem>>, %arg11: memref<1x4x512xf32, #tpu.memory_space<vmem>>, %arg12: memref<108x512xf32, #tpu.memory_space<vmem>>) attributes {dimension_semantics = [#tpu.dimension_semantics<parallel>], iteration_bounds = array<i64: 2>, scalar_prefetch = 0 : i64, scratch_operands = 1 : i64, tpu.core_type = #tpu.core_type<tc>, window_params = [{transform_indices = @transform_0, window_bounds = array<i64: 1, 4, 512>}, {pipeline_mode = #tpu.pipeline_mode<synchronous>, transform_indices = @transform_1, window_bounds = array<i64: 27, 512>}, {pipeline_mode = #tpu.pipeline_mode<synchronous>, transform_indices = @transform_2, window_bounds = array<i64: 4, 108>}, {pipeline_mode = #tpu.pipeline_mode<synchronous>, transform_indices = @transform_3, window_bounds = array<i64: 4, 1>}, {pipeline_mode = #tpu.pipeline_mode<synchronous>, transform_indices = @transform_4, window_bounds = array<i64: 4, 108>}, {pipeline_mode = #tpu.pipeline_mode<synchronous>, transform_indices = @transform_5, window_bounds = array<i64: 4, 1>}, {pipeline_mode = #tpu.pipeline_mode<synchronous>, transform_indices = @transform_6, window_bounds = array<i64: 4, 4>}, {pipeline_mode = #tpu.pipeline_mode<synchronous>, transform_indices = @transform_7, window_bounds = array<i64: 4, 1>}, {pipeline_mode = #tpu.pipeline_mode<synchronous>, transform_indices = @transform_8, window_bounds = array<i64: 4, 4>}, {pipeline_mode = #tpu.pipeline_mode<synchronous>, transform_indices = @transform_9, window_bounds = array<i64: 4, 1>}, {transform_indices = @transform_10, window_bounds = array<i64: 1, 4, 512>}]} {
    %c0 = arith.constant 0 : index
    %c0_0 = arith.constant 0 : index
    %c0_1 = arith.constant 0 : index
    %0 = vector.load %arg1[%c0, %c0_0, %c0_1] : memref<1x4x512xf32, #tpu.memory_space<vmem>>, vector<1x4x512xf32>
    %1 = vector.shape_cast %0 : vector<1x4x512xf32> to vector<4x512xf32>
    %c73_i32 = arith.constant 73 : i32
    %2 = tpu.dynamic_rotate %1 by %c73_i32 dim 1 : vector<4x512xf32>, i32 -> vector<4x512xf32>
    %c0_2 = arith.constant 0 : index
    %c0_3 = arith.constant 0 : index
    %3 = vector.load %arg2[%c0_2, %c0_3] : memref<27x512xf32, #tpu.memory_space<vmem>>, vector<1x512xf32>
    %4 = vector.broadcast %3 : vector<1x512xf32> to vector<4x512xf32>
    %5 = arith.mulf %2, %4 : vector<4x512xf32>
    %c0_4 = arith.constant 0 : index
    %c0_5 = arith.constant 0 : index
    %6 = vector.load %arg12[%c0_4, %c0_5] : memref<108x512xf32, #tpu.memory_space<vmem>>, vector<4x512xf32>
    tpu.vector_store %arg12[%c0_4, %c0_5], %5 {strides = array<i32>} : memref<108x512xf32, #tpu.memory_space<vmem>>, vector<4x512xf32>,
    %c72_i32 = arith.constant 72 : i32
    %7 = tpu.dynamic_rotate %1 by %c72_i32 dim 1 : vector<4x512xf32>, i32 -> vector<4x512xf32>
    %c1 = arith.constant 1 : index
    %c0_6 = arith.constant 0 : index
    %8 = vector.load %arg2[%c1, %c0_6] : memref<27x512xf32, #tpu.memory_space<vmem>>, vector<1x512xf32>
    %9 = vector.broadcast %8 : vector<1x512xf32> to vector<4x512xf32>
    %10 = arith.mulf %7, %9 : vector<4x512xf32>
    %c4 = arith.constant 4 : index
    %c0_7 = arith.constant 0 : index
    %11 = vector.load %arg12[%c4, %c0_7] : memref<108x512xf32, #tpu.memory_space<vmem>>, vector<4x512xf32>
    tpu.vector_store %arg12[%c4, %c0_7], %10 {strides = array<i32>} : memref<108x512xf32, #tpu.memory_space<vmem>>, vector<4x512xf32>,
    %c71_i32 = arith.constant 71 : i32
    %12 = tpu.dynamic_rotate %1 by %c71_i32 dim 1 : vector<4x512xf32>, i32 -> vector<4x512xf32>
    %c2 = arith.constant 2 : index
    %c0_8 = arith.constant 0 : index
    %13 = vector.load %arg2[%c2, %c0_8] : memref<27x512xf32, #tpu.memory_space<vmem>>, vector<1x512xf32>
    %14 = vector.broadcast %13 : vector<1x512xf32> to vector<4x512xf32>
    %15 = arith.mulf %12, %14 : vector<4x512xf32>
    %c8 = arith.constant 8 : index
    %c0_9 = arith.constant 0 : index
    %16 = vector.load %arg12[%c8, %c0_9] : memref<108x512xf32, #tpu.memory_space<vmem>>, vector<4x512xf32>
    tpu.vector_store %arg12[%c8, %c0_9], %15 {strides = array<i32>} : memref<108x512xf32, #tpu.memory_space<vmem>>, vector<4x512xf32>,
    %c65_i32 = arith.constant 65 : i32
    %17 = tpu.dynamic_rotate %1 by %c65_i32 dim 1 : vector<4x512xf32>, i32 -> vector<4x512xf32>
    %c3 = arith.constant 3 : index
    %c0_10 = arith.constant 0 : index
    %18 = vector.load %arg2[%c3, %c0_10] : memref<27x512xf32, #tpu.memory_space<vmem>>, vector<1x512xf32>
    %19 = vector.broadcast %18 : vector<1x512xf32> to vector<4x512xf32>
    %20 = arith.mulf %17, %19 : vector<4x512xf32>
    %c12 = arith.constant 12 : index
    %c0_11 = arith.constant 0 : index
    %21 = vector.load %arg12[%c12, %c0_11] : memref<108x512xf32, #tpu.memory_space<vmem>>, vector<4x512xf32>
    tpu.vector_store %arg12[%c12, %c0_11], %20 {strides = array<i32>} : memref<108x512xf32, #tpu.memory_space<vmem>>, vector<4x512xf32>,
    %c64_i32 = arith.constant 64 : i32
    %22 = tpu.dynamic_rotate %1 by %c64_i32 dim 1 : vector<4x512xf32>, i32 -> vector<4x512xf32>
    %c4_12 = arith.constant 4 : index
    %c0_13 = arith.constant 0 : index
    %23 = vector.load %arg2[%c4_12, %c0_13] : memref<27x512xf32, #tpu.memory_space<vmem>>, vector<1x512xf32>
    %24 = vector.broadcast %23 : vector<1x512xf32> to vector<4x512xf32>
    %25 = arith.mulf %22, %24 : vector<4x512xf32>
    %c16 = arith.constant 16 : index
    %c0_14 = arith.constant 0 : index
    %26 = vector.load %arg12[%c16, %c0_14] : memref<108x512xf32, #tpu.memory_space<vmem>>, vector<4x512xf32>
    tpu.vector_store %arg12[%c16, %c0_14], %25 {strides = array<i32>} : memref<108x512xf32, #tpu.memory_space<vmem>>, vector<4x512xf32>,
    %c63_i32 = arith.constant 63 : i32
    %27 = tpu.dynamic_rotate %1 by %c63_i32 dim 1 : vector<4x512xf32>, i32 -> vector<4x512xf32>
    %c5 = arith.constant 5 : index
    %c0_15 = arith.constant 0 : index
    %28 = vector.load %arg2[%c5, %c0_15] : memref<27x512xf32, #tpu.memory_space<vmem>>, vector<1x512xf32>
    %29 = vector.broadcast %28 : vector<1x512xf32> to vector<4x512xf32>
    %30 = arith.mulf %27, %29 : vector<4x512xf32>
    %c20 = arith.constant 20 : index
    %c0_16 = arith.constant 0 : index
    %31 = vector.load %arg12[%c20, %c0_16] : memref<108x512xf32, #tpu.memory_space<vmem>>, vector<4x512xf32>
    tpu.vector_store %arg12[%c20, %c0_16], %30 {strides = array<i32>} : memref<108x512xf32, #tpu.memory_space<vmem>>, vector<4x512xf32>,
    %c57_i32 = arith.constant 57 : i32
    %32 = tpu.dynamic_rotate %1 by %c57_i32 dim 1 : vector<4x512xf32>, i32 -> vector<4x512xf32>
    %c6 = arith.constant 6 : index
    %c0_17 = arith.constant 0 : index
    %33 = vector.load %arg2[%c6, %c0_17] : memref<27x512xf32, #tpu.memory_space<vmem>>, vector<1x512xf32>
    %34 = vector.broadcast %33 : vector<1x512xf32> to vector<4x512xf32>
    %35 = arith.mulf %32, %34 : vector<4x512xf32>
    %c24 = arith.constant 24 : index
    %c0_18 = arith.constant 0 : index
    %36 = vector.load %arg12[%c24, %c0_18] : memref<108x512xf32, #tpu.memory_space<vmem>>, vector<4x512xf32>
    tpu.vector_store %arg12[%c24, %c0_18], %35 {strides = array<i32>} : memref<108x512xf32, #tpu.memory_space<vmem>>, vector<4x512xf32>,
    %c56_i32 = arith.constant 56 : i32
    %37 = tpu.dynamic_rotate %1 by %c56_i32 dim 1 : vector<4x512xf32>, i32 -> vector<4x512xf32>
    %c7 = arith.constant 7 : index
    %c0_19 = arith.constant 0 : index
    %38 = vector.load %arg2[%c7, %c0_19] : memref<27x512xf32, #tpu.memory_space<vmem>>, vector<1x512xf32>
    %39 = vector.broadcast %38 : vector<1x512xf32> to vector<4x512xf32>
    %40 = arith.mulf %37, %39 : vector<4x512xf32>
    %c28 = arith.constant 28 : index
    %c0_20 = arith.constant 0 : index
    %41 = vector.load %arg12[%c28, %c0_20] : memref<108x512xf32, #tpu.memory_space<vmem>>, vector<4x512xf32>
    tpu.vector_store %arg12[%c28, %c0_20], %40 {strides = array<i32>} : memref<108x512xf32, #tpu.memory_space<vmem>>, vector<4x512xf32>,
    %c55_i32 = arith.constant 55 : i32
    %42 = tpu.dynamic_rotate %1 by %c55_i32 dim 1 : vector<4x512xf32>, i32 -> vector<4x512xf32>
    %c8_21 = arith.constant 8 : index
    %c0_22 = arith.constant 0 : index
    %43 = vector.load %arg2[%c8_21, %c0_22] : memref<27x512xf32, #tpu.memory_space<vmem>>, vector<1x512xf32>
    %44 = vector.broadcast %43 : vector<1x512xf32> to vector<4x512xf32>
    %45 = arith.mulf %42, %44 : vector<4x512xf32>
    %c32 = arith.constant 32 : index
    %c0_23 = arith.constant 0 : index
    %46 = vector.load %arg12[%c32, %c0_23] : memref<108x512xf32, #tpu.memory_space<vmem>>, vector<4x512xf32>
    tpu.vector_store %arg12[%c32, %c0_23], %45 {strides = array<i32>} : memref<108x512xf32, #tpu.memory_space<vmem>>, vector<4x512xf32>,
    %c9_i32 = arith.constant 9 : i32
    %47 = tpu.dynamic_rotate %1 by %c9_i32 dim 1 : vector<4x512xf32>, i32 -> vector<4x512xf32>
    %c9 = arith.constant 9 : index
    %c0_24 = arith.constant 0 : index
    %48 = vector.load %arg2[%c9, %c0_24] : memref<27x512xf32, #tpu.memory_space<vmem>>, vector<1x512xf32>
    %49 = vector.broadcast %48 : vector<1x512xf32> to vector<4x512xf32>
    %50 = arith.mulf %47, %49 : vector<4x512xf32>
    %c36 = arith.constant 36 : index
    %c0_25 = arith.constant 0 : index
    %51 = vector.load %arg12[%c36, %c0_25] : memref<108x512xf32, #tpu.memory_space<vmem>>, vector<4x512xf32>
    tpu.vector_store %arg12[%c36, %c0_25], %50 {strides = array<i32>} : memref<108x512xf32, #tpu.memory_space<vmem>>, vector<4x512xf32>,
    %c8_i32 = arith.constant 8 : i32
    %52 = tpu.dynamic_rotate %1 by %c8_i32 dim 1 : vector<4x512xf32>, i32 -> vector<4x512xf32>
    %c10 = arith.constant 10 : index
    %c0_26 = arith.constant 0 : index
    %53 = vector.load %arg2[%c10, %c0_26] : memref<27x512xf32, #tpu.memory_space<vmem>>, vector<1x512xf32>
    %54 = vector.broadcast %53 : vector<1x512xf32> to vector<4x512xf32>
    %55 = arith.mulf %52, %54 : vector<4x512xf32>
    %c40 = arith.constant 40 : index
    %c0_27 = arith.constant 0 : index
    %56 = vector.load %arg12[%c40, %c0_27] : memref<108x512xf32, #tpu.memory_space<vmem>>, vector<4x512xf32>
    tpu.vector_store %arg12[%c40, %c0_27], %55 {strides = array<i32>} : memref<108x512xf32, #tpu.memory_space<vmem>>, vector<4x512xf32>,
    %c7_i32 = arith.constant 7 : i32
    %57 = tpu.dynamic_rotate %1 by %c7_i32 dim 1 : vector<4x512xf32>, i32 -> vector<4x512xf32>
    %c11 = arith.constant 11 : index
    %c0_28 = arith.constant 0 : index
    %58 = vector.load %arg2[%c11, %c0_28] : memref<27x512xf32, #tpu.memory_space<vmem>>, vector<1x512xf32>
    %59 = vector.broadcast %58 : vector<1x512xf32> to vector<4x512xf32>
    %60 = arith.mulf %57, %59 : vector<4x512xf32>
    %c44 = arith.constant 44 : index
    %c0_29 = arith.constant 0 : index
    %61 = vector.load %arg12[%c44, %c0_29] : memref<108x512xf32, #tpu.memory_space<vmem>>, vector<4x512xf32>
    tpu.vector_store %arg12[%c44, %c0_29], %60 {strides = array<i32>} : memref<108x512xf32, #tpu.memory_space<vmem>>, vector<4x512xf32>,
    %c1_i32 = arith.constant 1 : i32
    %62 = tpu.dynamic_rotate %1 by %c1_i32 dim 1 : vector<4x512xf32>, i32 -> vector<4x512xf32>
    %c12_30 = arith.constant 12 : index
    %c0_31 = arith.constant 0 : index
    %63 = vector.load %arg2[%c12_30, %c0_31] : memref<27x512xf32, #tpu.memory_space<vmem>>, vector<1x512xf32>
    %64 = vector.broadcast %63 : vector<1x512xf32> to vector<4x512xf32>
    %65 = arith.mulf %62, %64 : vector<4x512xf32>
    %c48 = arith.constant 48 : index
    %c0_32 = arith.constant 0 : index
    %66 = vector.load %arg12[%c48, %c0_32] : memref<108x512xf32, #tpu.memory_space<vmem>>, vector<4x512xf32>
    tpu.vector_store %arg12[%c48, %c0_32], %65 {strides = array<i32>} : memref<108x512xf32, #tpu.memory_space<vmem>>, vector<4x512xf32>,
    %c13 = arith.constant 13 : index
    %c0_33 = arith.constant 0 : index
    %67 = vector.load %arg2[%c13, %c0_33] : memref<27x512xf32, #tpu.memory_space<vmem>>, vector<1x512xf32>
    %68 = vector.broadcast %67 : vector<1x512xf32> to vector<4x512xf32>
    %69 = arith.mulf %1, %68 : vector<4x512xf32>
    %c52 = arith.constant 52 : index
    %c0_34 = arith.constant 0 : index
    %70 = vector.load %arg12[%c52, %c0_34] : memref<108x512xf32, #tpu.memory_space<vmem>>, vector<4x512xf32>
    tpu.vector_store %arg12[%c52, %c0_34], %69 {strides = array<i32>} : memref<108x512xf32, #tpu.memory_space<vmem>>, vector<4x512xf32>,
    %c511_i32 = arith.constant 511 : i32
    %71 = tpu.dynamic_rotate %1 by %c511_i32 dim 1 : vector<4x512xf32>, i32 -> vector<4x512xf32>
    %c14 = arith.constant 14 : index
    %c0_35 = arith.constant 0 : index
    %72 = vector.load %arg2[%c14, %c0_35] : memref<27x512xf32, #tpu.memory_space<vmem>>, vector<1x512xf32>
    %73 = vector.broadcast %72 : vector<1x512xf32> to vector<4x512xf32>
    %74 = arith.mulf %71, %73 : vector<4x512xf32>
    %c56 = arith.constant 56 : index
    %c0_36 = arith.constant 0 : index
    %75 = vector.load %arg12[%c56, %c0_36] : memref<108x512xf32, #tpu.memory_space<vmem>>, vector<4x512xf32>
    tpu.vector_store %arg12[%c56, %c0_36], %74 {strides = array<i32>} : memref<108x512xf32, #tpu.memory_space<vmem>>, vector<4x512xf32>,
    %c505_i32 = arith.constant 505 : i32
    %76 = tpu.dynamic_rotate %1 by %c505_i32 dim 1 : vector<4x512xf32>, i32 -> vector<4x512xf32>
    %c15 = arith.constant 15 : index
    %c0_37 = arith.constant 0 : index
    %77 = vector.load %arg2[%c15, %c0_37] : memref<27x512xf32, #tpu.memory_space<vmem>>, vector<1x512xf32>
    %78 = vector.broadcast %77 : vector<1x512xf32> to vector<4x512xf32>
    %79 = arith.mulf %76, %78 : vector<4x512xf32>
    %c60 = arith.constant 60 : index
    %c0_38 = arith.constant 0 : index
    %80 = vector.load %arg12[%c60, %c0_38] : memref<108x512xf32, #tpu.memory_space<vmem>>, vector<4x512xf32>
    tpu.vector_store %arg12[%c60, %c0_38], %79 {strides = array<i32>} : memref<108x512xf32, #tpu.memory_space<vmem>>, vector<4x512xf32>,
    %c504_i32 = arith.constant 504 : i32
    %81 = tpu.dynamic_rotate %1 by %c504_i32 dim 1 : vector<4x512xf32>, i32 -> vector<4x512xf32>
    %c16_39 = arith.constant 16 : index
    %c0_40 = arith.constant 0 : index
    %82 = vector.load %arg2[%c16_39, %c0_40] : memref<27x512xf32, #tpu.memory_space<vmem>>, vector<1x512xf32>
    %83 = vector.broadcast %82 : vector<1x512xf32> to vector<4x512xf32>
    %84 = arith.mulf %81, %83 : vector<4x512xf32>
    %c64 = arith.constant 64 : index
    %c0_41 = arith.constant 0 : index
    %85 = vector.load %arg12[%c64, %c0_41] : memref<108x512xf32, #tpu.memory_space<vmem>>, vector<4x512xf32>
    tpu.vector_store %arg12[%c64, %c0_41], %84 {strides = array<i32>} : memref<108x512xf32, #tpu.memory_space<vmem>>, vector<4x512xf32>,
    %c503_i32 = arith.constant 503 : i32
    %86 = tpu.dynamic_rotate %1 by %c503_i32 dim 1 : vector<4x512xf32>, i32 -> vector<4x512xf32>
    %c17 = arith.constant 17 : index
    %c0_42 = arith.constant 0 : index
    %87 = vector.load %arg2[%c17, %c0_42] : memref<27x512xf32, #tpu.memory_space<vmem>>, vector<1x512xf32>
    %88 = vector.broadcast %87 : vector<1x512xf32> to vector<4x512xf32>
    %89 = arith.mulf %86, %88 : vector<4x512xf32>
    %c68 = arith.constant 68 : index
    %c0_43 = arith.constant 0 : index
    %90 = vector.load %arg12[%c68, %c0_43] : memref<108x512xf32, #tpu.memory_space<vmem>>, vector<4x512xf32>
    tpu.vector_store %arg12[%c68, %c0_43], %89 {strides = array<i32>} : memref<108x512xf32, #tpu.memory_space<vmem>>, vector<4x512xf32>,
    %c457_i32 = arith.constant 457 : i32
    %91 = tpu.dynamic_rotate %1 by %c457_i32 dim 1 : vector<4x512xf32>, i32 -> vector<4x512xf32>
    %c18 = arith.constant 18 : index
    %c0_44 = arith.constant 0 : index
    %92 = vector.load %arg2[%c18, %c0_44] : memref<27x512xf32, #tpu.memory_space<vmem>>, vector<1x512xf32>
    %93 = vector.broadcast %92 : vector<1x512xf32> to vector<4x512xf32>
    %94 = arith.mulf %91, %93 : vector<4x512xf32>
    %c72 = arith.constant 72 : index
    %c0_45 = arith.constant 0 : index
    %95 = vector.load %arg12[%c72, %c0_45] : memref<108x512xf32, #tpu.memory_space<vmem>>, vector<4x512xf32>
    tpu.vector_store %arg12[%c72, %c0_45], %94 {strides = array<i32>} : memref<108x512xf32, #tpu.memory_space<vmem>>, vector<4x512xf32>,
    %c456_i32 = arith.constant 456 : i32
    %96 = tpu.dynamic_rotate %1 by %c456_i32 dim 1 : vector<4x512xf32>, i32 -> vector<4x512xf32>
    %c19 = arith.constant 19 : index
    %c0_46 = arith.constant 0 : index
    %97 = vector.load %arg2[%c19, %c0_46] : memref<27x512xf32, #tpu.memory_space<vmem>>, vector<1x512xf32>
    %98 = vector.broadcast %97 : vector<1x512xf32> to vector<4x512xf32>
    %99 = arith.mulf %96, %98 : vector<4x512xf32>
    %c76 = arith.constant 76 : index
    %c0_47 = arith.constant 0 : index
    %100 = vector.load %arg12[%c76, %c0_47] : memref<108x512xf32, #tpu.memory_space<vmem>>, vector<4x512xf32>
    tpu.vector_store %arg12[%c76, %c0_47], %99 {strides = array<i32>} : memref<108x512xf32, #tpu.memory_space<vmem>>, vector<4x512xf32>,
    %c455_i32 = arith.constant 455 : i32
    %101 = tpu.dynamic_rotate %1 by %c455_i32 dim 1 : vector<4x512xf32>, i32 -> vector<4x512xf32>
    %c20_48 = arith.constant 20 : index
    %c0_49 = arith.constant 0 : index
    %102 = vector.load %arg2[%c20_48, %c0_49] : memref<27x512xf32, #tpu.memory_space<vmem>>, vector<1x512xf32>
    %103 = vector.broadcast %102 : vector<1x512xf32> to vector<4x512xf32>
    %104 = arith.mulf %101, %103 : vector<4x512xf32>
    %c80 = arith.constant 80 : index
    %c0_50 = arith.constant 0 : index
    %105 = vector.load %arg12[%c80, %c0_50] : memref<108x512xf32, #tpu.memory_space<vmem>>, vector<4x512xf32>
    tpu.vector_store %arg12[%c80, %c0_50], %104 {strides = array<i32>} : memref<108x512xf32, #tpu.memory_space<vmem>>, vector<4x512xf32>,
    %c449_i32 = arith.constant 449 : i32
    %106 = tpu.dynamic_rotate %1 by %c449_i32 dim 1 : vector<4x512xf32>, i32 -> vector<4x512xf32>
    %c21 = arith.constant 21 : index
    %c0_51 = arith.constant 0 : index
    %107 = vector.load %arg2[%c21, %c0_51] : memref<27x512xf32, #tpu.memory_space<vmem>>, vector<1x512xf32>
    %108 = vector.broadcast %107 : vector<1x512xf32> to vector<4x512xf32>
    %109 = arith.mulf %106, %108 : vector<4x512xf32>
    %c84 = arith.constant 84 : index
    %c0_52 = arith.constant 0 : index
    %110 = vector.load %arg12[%c84, %c0_52] : memref<108x512xf32, #tpu.memory_space<vmem>>, vector<4x512xf32>
    tpu.vector_store %arg12[%c84, %c0_52], %109 {strides = array<i32>} : memref<108x512xf32, #tpu.memory_space<vmem>>, vector<4x512xf32>,
    %c448_i32 = arith.constant 448 : i32
    %111 = tpu.dynamic_rotate %1 by %c448_i32 dim 1 : vector<4x512xf32>, i32 -> vector<4x512xf32>
    %c22 = arith.constant 22 : index
    %c0_53 = arith.constant 0 : index
    %112 = vector.load %arg2[%c22, %c0_53] : memref<27x512xf32, #tpu.memory_space<vmem>>, vector<1x512xf32>
    %113 = vector.broadcast %112 : vector<1x512xf32> to vector<4x512xf32>
    %114 = arith.mulf %111, %113 : vector<4x512xf32>
    %c88 = arith.constant 88 : index
    %c0_54 = arith.constant 0 : index
    %115 = vector.load %arg12[%c88, %c0_54] : memref<108x512xf32, #tpu.memory_space<vmem>>, vector<4x512xf32>
    tpu.vector_store %arg12[%c88, %c0_54], %114 {strides = array<i32>} : memref<108x512xf32, #tpu.memory_space<vmem>>, vector<4x512xf32>,
    %c447_i32 = arith.constant 447 : i32
    %116 = tpu.dynamic_rotate %1 by %c447_i32 dim 1 : vector<4x512xf32>, i32 -> vector<4x512xf32>
    %c23 = arith.constant 23 : index
    %c0_55 = arith.constant 0 : index
    %117 = vector.load %arg2[%c23, %c0_55] : memref<27x512xf32, #tpu.memory_space<vmem>>, vector<1x512xf32>
    %118 = vector.broadcast %117 : vector<1x512xf32> to vector<4x512xf32>
    %119 = arith.mulf %116, %118 : vector<4x512xf32>
    %c92 = arith.constant 92 : index
    %c0_56 = arith.constant 0 : index
    %120 = vector.load %arg12[%c92, %c0_56] : memref<108x512xf32, #tpu.memory_space<vmem>>, vector<4x512xf32>
    tpu.vector_store %arg12[%c92, %c0_56], %119 {strides = array<i32>} : memref<108x512xf32, #tpu.memory_space<vmem>>, vector<4x512xf32>,
    %c441_i32 = arith.constant 441 : i32
    %121 = tpu.dynamic_rotate %1 by %c441_i32 dim 1 : vector<4x512xf32>, i32 -> vector<4x512xf32>
    %c24_57 = arith.constant 24 : index
    %c0_58 = arith.constant 0 : index
    %122 = vector.load %arg2[%c24_57, %c0_58] : memref<27x512xf32, #tpu.memory_space<vmem>>, vector<1x512xf32>
    %123 = vector.broadcast %122 : vector<1x512xf32> to vector<4x512xf32>
    %124 = arith.mulf %121, %123 : vector<4x512xf32>
    %c96 = arith.constant 96 : index
    %c0_59 = arith.constant 0 : index
    %125 = vector.load %arg12[%c96, %c0_59] : memref<108x512xf32, #tpu.memory_space<vmem>>, vector<4x512xf32>
    tpu.vector_store %arg12[%c96, %c0_59], %124 {strides = array<i32>} : memref<108x512xf32, #tpu.memory_space<vmem>>, vector<4x512xf32>,
    %c440_i32 = arith.constant 440 : i32
    %126 = tpu.dynamic_rotate %1 by %c440_i32 dim 1 : vector<4x512xf32>, i32 -> vector<4x512xf32>
    %c25 = arith.constant 25 : index
    %c0_60 = arith.constant 0 : index
    %127 = vector.load %arg2[%c25, %c0_60] : memref<27x512xf32, #tpu.memory_space<vmem>>, vector<1x512xf32>
    %128 = vector.broadcast %127 : vector<1x512xf32> to vector<4x512xf32>
    %129 = arith.mulf %126, %128 : vector<4x512xf32>
    %c100 = arith.constant 100 : index
    %c0_61 = arith.constant 0 : index
    %130 = vector.load %arg12[%c100, %c0_61] : memref<108x512xf32, #tpu.memory_space<vmem>>, vector<4x512xf32>
    tpu.vector_store %arg12[%c100, %c0_61], %129 {strides = array<i32>} : memref<108x512xf32, #tpu.memory_space<vmem>>, vector<4x512xf32>,
    %c439_i32 = arith.constant 439 : i32
    %131 = tpu.dynamic_rotate %1 by %c439_i32 dim 1 : vector<4x512xf32>, i32 -> vector<4x512xf32>
    %c26 = arith.constant 26 : index
    %c0_62 = arith.constant 0 : index
    %132 = vector.load %arg2[%c26, %c0_62] : memref<27x512xf32, #tpu.memory_space<vmem>>, vector<1x512xf32>
    %133 = vector.broadcast %132 : vector<1x512xf32> to vector<4x512xf32>
    %134 = arith.mulf %131, %133 : vector<4x512xf32>
    %c104 = arith.constant 104 : index
    %c0_63 = arith.constant 0 : index
    %135 = vector.load %arg12[%c104, %c0_63] : memref<108x512xf32, #tpu.memory_space<vmem>>, vector<4x512xf32>
    tpu.vector_store %arg12[%c104, %c0_63], %134 {strides = array<i32>} : memref<108x512xf32, #tpu.memory_space<vmem>>, vector<4x512xf32>,
    %c0_64 = arith.constant 0 : index
    %c0_65 = arith.constant 0 : index
    %136 = vector.load %arg3[%c0_64, %c0_65] : memref<4x108xf32, #tpu.memory_space<vmem>>, vector<4x108xf32>
    %c0_66 = arith.constant 0 : index
    %c0_67 = arith.constant 0 : index
    %137 = vector.load %arg12[%c0_66, %c0_67] : memref<108x512xf32, #tpu.memory_space<vmem>>, vector<108x512xf32>
    %cst = arith.constant dense<0.000000e+00> : vector<4x512xf32>
    %138 = tpu.matmul %136, %137, %cst {dimension_numbers = #tpu.dot_dimension_numbers<[1], [0], [0], [1], [0, 0, 1, 1], [], []>} : vector<4x108xf32>, vector<108x512xf32>, vector<4x512xf32> -> vector<4x512xf32>
    %c0_68 = arith.constant 0 : index
    %c0_69 = arith.constant 0 : index
    %139 = vector.load %arg4[%c0_68, %c0_69] : memref<4x1xf32, #tpu.memory_space<vmem>>, vector<4x1xf32>
    %140 = vector.broadcast %139 : vector<4x1xf32> to vector<4x512xf32>
    %141 = arith.addf %138, %140 : vector<4x512xf32>
    %cst_70 = arith.constant dense<0.000000e+00> : vector<4xf32>
    %142 = vector.multi_reduction <add>, %141, %cst_70 [1] : vector<4x512xf32> to vector<4xf32>
    %143 = vector.shape_cast %142 : vector<4xf32> to vector<4x1xf32>
    %144 = arith.mulf %141, %141 : vector<4x512xf32>
    %cst_71 = arith.constant dense<0.000000e+00> : vector<4xf32>
    %145 = vector.multi_reduction <add>, %144, %cst_71 [1] : vector<4x512xf32> to vector<4xf32>
    %146 = vector.shape_cast %145 : vector<4xf32> to vector<4x1xf32>
    %cst_72 = arith.constant 0.001953125 : f32
    %147 = vector.broadcast %cst_72 : f32 to vector<4x1xf32>
    %148 = arith.mulf %143, %147 : vector<4x1xf32>
    %cst_73 = arith.constant 0.001953125 : f32
    %149 = vector.broadcast %cst_73 : f32 to vector<4x1xf32>
    %150 = arith.mulf %146, %149 : vector<4x1xf32>
    %151 = arith.mulf %148, %148 : vector<4x1xf32>
    %152 = arith.subf %150, %151 : vector<4x1xf32>
    %cst_74 = arith.constant 0.000000e+00 : f32
    %153 = vector.broadcast %cst_74 : f32 to vector<4x1xf32>
    %154 = arith.maximumf %152, %153 : vector<4x1xf32>
    %155 = vector.broadcast %148 : vector<4x1xf32> to vector<4x512xf32>
    %156 = arith.subf %141, %155 : vector<4x512xf32>
    %cst_75 = arith.constant 9.99999974E-6 : f32
    %157 = vector.broadcast %cst_75 : f32 to vector<4x1xf32>
    %158 = arith.addf %154, %157 : vector<4x1xf32>
    %159 = math.rsqrt %158 : vector<4x1xf32>
    %160 = vector.broadcast %159 : vector<4x1xf32> to vector<4x512xf32>
    %161 = arith.mulf %156, %160 : vector<4x512xf32>
    %cst_76 = arith.constant 5.000000e-01 : f32
    %162 = vector.broadcast %cst_76 : f32 to vector<4x512xf32>
    %163 = arith.mulf %162, %161 : vector<4x512xf32>
    %cst_77 = arith.constant 0.707106769 : f32
    %164 = vector.broadcast %cst_77 : f32 to vector<4x512xf32>
    %165 = arith.mulf %161, %164 : vector<4x512xf32>
    %cst_78 = arith.constant 0.000000e+00 : f32
    %166 = vector.broadcast %cst_78 : f32 to vector<4x512xf32>
    %167 = arith.cmpf oge, %165, %166 : vector<4x512xf32>
    %cst_79 = arith.constant 1.000000e+00 : f32
    %cst_80 = arith.constant -1.000000e+00 : f32
    %168 = vector.broadcast %cst_79 : f32 to vector<4x512xf32>
    %169 = vector.broadcast %cst_80 : f32 to vector<4x512xf32>
    %170 = arith.select %167, %168, %169 : vector<4x512xi1>, vector<4x512xf32>
    %171 = math.absf %165 : vector<4x512xf32>
    %cst_81 = arith.constant 0.327591091 : f32
    %172 = vector.broadcast %cst_81 : f32 to vector<4x512xf32>
    %173 = arith.mulf %172, %171 : vector<4x512xf32>
    %cst_82 = arith.constant 1.000000e+00 : f32
    %174 = vector.broadcast %cst_82 : f32 to vector<4x512xf32>
    %175 = arith.addf %174, %173 : vector<4x512xf32>
    %cst_83 = arith.constant 1.000000e+00 : f32
    %176 = vector.broadcast %cst_83 : f32 to vector<4x512xf32>
    %177 = arith.divf %176, %175 : vector<4x512xf32>
    %cst_84 = arith.constant 1.06140542 : f32
    %178 = vector.broadcast %cst_84 : f32 to vector<4x512xf32>
    %179 = arith.mulf %178, %177 : vector<4x512xf32>
    %cst_85 = arith.constant -1.45315206 : f32
    %180 = vector.broadcast %cst_85 : f32 to vector<4x512xf32>
    %181 = arith.addf %179, %180 : vector<4x512xf32>
    %182 = arith.mulf %181, %177 : vector<4x512xf32>
    %cst_86 = arith.constant 1.42141378 : f32
    %183 = vector.broadcast %cst_86 : f32 to vector<4x512xf32>
    %184 = arith.addf %182, %183 : vector<4x512xf32>
    %185 = arith.mulf %184, %177 : vector<4x512xf32>
    %cst_87 = arith.constant -0.284496725 : f32
    %186 = vector.broadcast %cst_87 : f32 to vector<4x512xf32>
    %187 = arith.addf %185, %186 : vector<4x512xf32>
    %188 = arith.mulf %187, %177 : vector<4x512xf32>
    %cst_88 = arith.constant 0.254829586 : f32
    %189 = vector.broadcast %cst_88 : f32 to vector<4x512xf32>
    %190 = arith.addf %188, %189 : vector<4x512xf32>
    %191 = arith.mulf %190, %177 : vector<4x512xf32>
    %cst_89 = arith.constant 0.000000e+00 : f32
    %192 = vector.broadcast %cst_89 : f32 to vector<4x512xf32>
    %193 = arith.subf %192, %171 : vector<4x512xf32>
    %194 = arith.mulf %193, %171 : vector<4x512xf32>
    %195 = math.exp %194 : vector<4x512xf32>
    %196 = arith.mulf %191, %195 : vector<4x512xf32>
    %cst_90 = arith.constant 1.000000e+00 : f32
    %197 = vector.broadcast %cst_90 : f32 to vector<4x512xf32>
    %198 = arith.subf %197, %196 : vector<4x512xf32>
    %199 = arith.mulf %170, %198 : vector<4x512xf32>
    %cst_91 = arith.constant 1.000000e+00 : f32
    %200 = vector.broadcast %cst_91 : f32 to vector<4x512xf32>
    %201 = arith.addf %200, %199 : vector<4x512xf32>
    %202 = arith.mulf %163, %201 : vector<4x512xf32>
    %c73_i32_92 = arith.constant 73 : i32
    %203 = tpu.dynamic_rotate %202 by %c73_i32_92 dim 1 : vector<4x512xf32>, i32 -> vector<4x512xf32>
    %c0_93 = arith.constant 0 : index
    %c0_94 = arith.constant 0 : index
    %204 = vector.load %arg2[%c0_93, %c0_94] : memref<27x512xf32, #tpu.memory_space<vmem>>, vector<1x512xf32>
    %205 = vector.broadcast %204 : vector<1x512xf32> to vector<4x512xf32>
    %206 = arith.mulf %203, %205 : vector<4x512xf32>
    %c0_95 = arith.constant 0 : index
    %c0_96 = arith.constant 0 : index
    %207 = vector.load %arg12[%c0_95, %c0_96] : memref<108x512xf32, #tpu.memory_space<vmem>>, vector<4x512xf32>
    tpu.vector_store %arg12[%c0_95, %c0_96], %206 {strides = array<i32>} : memref<108x512xf32, #tpu.memory_space<vmem>>, vector<4x512xf32>,
    %c72_i32_97 = arith.constant 72 : i32
    %208 = tpu.dynamic_rotate %202 by %c72_i32_97 dim 1 : vector<4x512xf32>, i32 -> vector<4x512xf32>
    %c1_98 = arith.constant 1 : index
    %c0_99 = arith.constant 0 : index
    %209 = vector.load %arg2[%c1_98, %c0_99] : memref<27x512xf32, #tpu.memory_space<vmem>>, vector<1x512xf32>
    %210 = vector.broadcast %209 : vector<1x512xf32> to vector<4x512xf32>
    %211 = arith.mulf %208, %210 : vector<4x512xf32>
    %c4_100 = arith.constant 4 : index
    %c0_101 = arith.constant 0 : index
    %212 = vector.load %arg12[%c4_100, %c0_101] : memref<108x512xf32, #tpu.memory_space<vmem>>, vector<4x512xf32>
    tpu.vector_store %arg12[%c4_100, %c0_101], %211 {strides = array<i32>} : memref<108x512xf32, #tpu.memory_space<vmem>>, vector<4x512xf32>,
    %c71_i32_102 = arith.constant 71 : i32
    %213 = tpu.dynamic_rotate %202 by %c71_i32_102 dim 1 : vector<4x512xf32>, i32 -> vector<4x512xf32>
    %c2_103 = arith.constant 2 : index
    %c0_104 = arith.constant 0 : index
    %214 = vector.load %arg2[%c2_103, %c0_104] : memref<27x512xf32, #tpu.memory_space<vmem>>, vector<1x512xf32>
    %215 = vector.broadcast %214 : vector<1x512xf32> to vector<4x512xf32>
    %216 = arith.mulf %213, %215 : vector<4x512xf32>
    %c8_105 = arith.constant 8 : index
    %c0_106 = arith.constant 0 : index
    %217 = vector.load %arg12[%c8_105, %c0_106] : memref<108x512xf32, #tpu.memory_space<vmem>>, vector<4x512xf32>
    tpu.vector_store %arg12[%c8_105, %c0_106], %216 {strides = array<i32>} : memref<108x512xf32, #tpu.memory_space<vmem>>, vector<4x512xf32>,
    %c65_i32_107 = arith.constant 65 : i32
    %218 = tpu.dynamic_rotate %202 by %c65_i32_107 dim 1 : vector<4x512xf32>, i32 -> vector<4x512xf32>
    %c3_108 = arith.constant 3 : index
    %c0_109 = arith.constant 0 : index
    %219 = vector.load %arg2[%c3_108, %c0_109] : memref<27x512xf32, #tpu.memory_space<vmem>>, vector<1x512xf32>
    %220 = vector.broadcast %219 : vector<1x512xf32> to vector<4x512xf32>
    %221 = arith.mulf %218, %220 : vector<4x512xf32>
    %c12_110 = arith.constant 12 : index
    %c0_111 = arith.constant 0 : index
    %222 = vector.load %arg12[%c12_110, %c0_111] : memref<108x512xf32, #tpu.memory_space<vmem>>, vector<4x512xf32>
    tpu.vector_store %arg12[%c12_110, %c0_111], %221 {strides = array<i32>} : memref<108x512xf32, #tpu.memory_space<vmem>>, vector<4x512xf32>,
    %c64_i32_112 = arith.constant 64 : i32
    %223 = tpu.dynamic_rotate %202 by %c64_i32_112 dim 1 : vector<4x512xf32>, i32 -> vector<4x512xf32>
    %c4_113 = arith.constant 4 : index
    %c0_114 = arith.constant 0 : index
    %224 = vector.load %arg2[%c4_113, %c0_114] : memref<27x512xf32, #tpu.memory_space<vmem>>, vector<1x512xf32>
    %225 = vector.broadcast %224 : vector<1x512xf32> to vector<4x512xf32>
    %226 = arith.mulf %223, %225 : vector<4x512xf32>
    %c16_115 = arith.constant 16 : index
    %c0_116 = arith.constant 0 : index
    %227 = vector.load %arg12[%c16_115, %c0_116] : memref<108x512xf32, #tpu.memory_space<vmem>>, vector<4x512xf32>
    tpu.vector_store %arg12[%c16_115, %c0_116], %226 {strides = array<i32>} : memref<108x512xf32, #tpu.memory_space<vmem>>, vector<4x512xf32>,
    %c63_i32_117 = arith.constant 63 : i32
    %228 = tpu.dynamic_rotate %202 by %c63_i32_117 dim 1 : vector<4x512xf32>, i32 -> vector<4x512xf32>
    %c5_118 = arith.constant 5 : index
    %c0_119 = arith.constant 0 : index
    %229 = vector.load %arg2[%c5_118, %c0_119] : memref<27x512xf32, #tpu.memory_space<vmem>>, vector<1x512xf32>
    %230 = vector.broadcast %229 : vector<1x512xf32> to vector<4x512xf32>
    %231 = arith.mulf %228, %230 : vector<4x512xf32>
    %c20_120 = arith.constant 20 : index
    %c0_121 = arith.constant 0 : index
    %232 = vector.load %arg12[%c20_120, %c0_121] : memref<108x512xf32, #tpu.memory_space<vmem>>, vector<4x512xf32>
    tpu.vector_store %arg12[%c20_120, %c0_121], %231 {strides = array<i32>} : memref<108x512xf32, #tpu.memory_space<vmem>>, vector<4x512xf32>,
    %c57_i32_122 = arith.constant 57 : i32
    %233 = tpu.dynamic_rotate %202 by %c57_i32_122 dim 1 : vector<4x512xf32>, i32 -> vector<4x512xf32>
    %c6_123 = arith.constant 6 : index
    %c0_124 = arith.constant 0 : index
    %234 = vector.load %arg2[%c6_123, %c0_124] : memref<27x512xf32, #tpu.memory_space<vmem>>, vector<1x512xf32>
    %235 = vector.broadcast %234 : vector<1x512xf32> to vector<4x512xf32>
    %236 = arith.mulf %233, %235 : vector<4x512xf32>
    %c24_125 = arith.constant 24 : index
    %c0_126 = arith.constant 0 : index
    %237 = vector.load %arg12[%c24_125, %c0_126] : memref<108x512xf32, #tpu.memory_space<vmem>>, vector<4x512xf32>
    tpu.vector_store %arg12[%c24_125, %c0_126], %236 {strides = array<i32>} : memref<108x512xf32, #tpu.memory_space<vmem>>, vector<4x512xf32>,
    %c56_i32_127 = arith.constant 56 : i32
    %238 = tpu.dynamic_rotate %202 by %c56_i32_127 dim 1 : vector<4x512xf32>, i32 -> vector<4x512xf32>
    %c7_128 = arith.constant 7 : index
    %c0_129 = arith.constant 0 : index
    %239 = vector.load %arg2[%c7_128, %c0_129] : memref<27x512xf32, #tpu.memory_space<vmem>>, vector<1x512xf32>
    %240 = vector.broadcast %239 : vector<1x512xf32> to vector<4x512xf32>
    %241 = arith.mulf %238, %240 : vector<4x512xf32>
    %c28_130 = arith.constant 28 : index
    %c0_131 = arith.constant 0 : index
    %242 = vector.load %arg12[%c28_130, %c0_131] : memref<108x512xf32, #tpu.memory_space<vmem>>, vector<4x512xf32>
    tpu.vector_store %arg12[%c28_130, %c0_131], %241 {strides = array<i32>} : memref<108x512xf32, #tpu.memory_space<vmem>>, vector<4x512xf32>,
    %c55_i32_132 = arith.constant 55 : i32
    %243 = tpu.dynamic_rotate %202 by %c55_i32_132 dim 1 : vector<4x512xf32>, i32 -> vector<4x512xf32>
    %c8_133 = arith.constant 8 : index
    %c0_134 = arith.constant 0 : index
    %244 = vector.load %arg2[%c8_133, %c0_134] : memref<27x512xf32, #tpu.memory_space<vmem>>, vector<1x512xf32>
    %245 = vector.broadcast %244 : vector<1x512xf32> to vector<4x512xf32>
    %246 = arith.mulf %243, %245 : vector<4x512xf32>
    %c32_135 = arith.constant 32 : index
    %c0_136 = arith.constant 0 : index
    %247 = vector.load %arg12[%c32_135, %c0_136] : memref<108x512xf32, #tpu.memory_space<vmem>>, vector<4x512xf32>
    tpu.vector_store %arg12[%c32_135, %c0_136], %246 {strides = array<i32>} : memref<108x512xf32, #tpu.memory_space<vmem>>, vector<4x512xf32>,
    %c9_i32_137 = arith.constant 9 : i32
    %248 = tpu.dynamic_rotate %202 by %c9_i32_137 dim 1 : vector<4x512xf32>, i32 -> vector<4x512xf32>
    %c9_138 = arith.constant 9 : index
    %c0_139 = arith.constant 0 : index
    %249 = vector.load %arg2[%c9_138, %c0_139] : memref<27x512xf32, #tpu.memory_space<vmem>>, vector<1x512xf32>
    %250 = vector.broadcast %249 : vector<1x512xf32> to vector<4x512xf32>
    %251 = arith.mulf %248, %250 : vector<4x512xf32>
    %c36_140 = arith.constant 36 : index
    %c0_141 = arith.constant 0 : index
    %252 = vector.load %arg12[%c36_140, %c0_141] : memref<108x512xf32, #tpu.memory_space<vmem>>, vector<4x512xf32>
    tpu.vector_store %arg12[%c36_140, %c0_141], %251 {strides = array<i32>} : memref<108x512xf32, #tpu.memory_space<vmem>>, vector<4x512xf32>,
    %c8_i32_142 = arith.constant 8 : i32
    %253 = tpu.dynamic_rotate %202 by %c8_i32_142 dim 1 : vector<4x512xf32>, i32 -> vector<4x512xf32>
    %c10_143 = arith.constant 10 : index
    %c0_144 = arith.constant 0 : index
    %254 = vector.load %arg2[%c10_143, %c0_144] : memref<27x512xf32, #tpu.memory_space<vmem>>, vector<1x512xf32>
    %255 = vector.broadcast %254 : vector<1x512xf32> to vector<4x512xf32>
    %256 = arith.mulf %253, %255 : vector<4x512xf32>
    %c40_145 = arith.constant 40 : index
    %c0_146 = arith.constant 0 : index
    %257 = vector.load %arg12[%c40_145, %c0_146] : memref<108x512xf32, #tpu.memory_space<vmem>>, vector<4x512xf32>
    tpu.vector_store %arg12[%c40_145, %c0_146], %256 {strides = array<i32>} : memref<108x512xf32, #tpu.memory_space<vmem>>, vector<4x512xf32>,
    %c7_i32_147 = arith.constant 7 : i32
    %258 = tpu.dynamic_rotate %202 by %c7_i32_147 dim 1 : vector<4x512xf32>, i32 -> vector<4x512xf32>
    %c11_148 = arith.constant 11 : index
    %c0_149 = arith.constant 0 : index
    %259 = vector.load %arg2[%c11_148, %c0_149] : memref<27x512xf32, #tpu.memory_space<vmem>>, vector<1x512xf32>
    %260 = vector.broadcast %259 : vector<1x512xf32> to vector<4x512xf32>
    %261 = arith.mulf %258, %260 : vector<4x512xf32>
    %c44_150 = arith.constant 44 : index
    %c0_151 = arith.constant 0 : index
    %262 = vector.load %arg12[%c44_150, %c0_151] : memref<108x512xf32, #tpu.memory_space<vmem>>, vector<4x512xf32>
    tpu.vector_store %arg12[%c44_150, %c0_151], %261 {strides = array<i32>} : memref<108x512xf32, #tpu.memory_space<vmem>>, vector<4x512xf32>,
    %c1_i32_152 = arith.constant 1 : i32
    %263 = tpu.dynamic_rotate %202 by %c1_i32_152 dim 1 : vector<4x512xf32>, i32 -> vector<4x512xf32>
    %c12_153 = arith.constant 12 : index
    %c0_154 = arith.constant 0 : index
    %264 = vector.load %arg2[%c12_153, %c0_154] : memref<27x512xf32, #tpu.memory_space<vmem>>, vector<1x512xf32>
    %265 = vector.broadcast %264 : vector<1x512xf32> to vector<4x512xf32>
    %266 = arith.mulf %263, %265 : vector<4x512xf32>
    %c48_155 = arith.constant 48 : index
    %c0_156 = arith.constant 0 : index
    %267 = vector.load %arg12[%c48_155, %c0_156] : memref<108x512xf32, #tpu.memory_space<vmem>>, vector<4x512xf32>
    tpu.vector_store %arg12[%c48_155, %c0_156], %266 {strides = array<i32>} : memref<108x512xf32, #tpu.memory_space<vmem>>, vector<4x512xf32>,
    %c13_157 = arith.constant 13 : index
    %c0_158 = arith.constant 0 : index
    %268 = vector.load %arg2[%c13_157, %c0_158] : memref<27x512xf32, #tpu.memory_space<vmem>>, vector<1x512xf32>
    %269 = vector.broadcast %268 : vector<1x512xf32> to vector<4x512xf32>
    %270 = arith.mulf %202, %269 : vector<4x512xf32>
    %c52_159 = arith.constant 52 : index
    %c0_160 = arith.constant 0 : index
    %271 = vector.load %arg12[%c52_159, %c0_160] : memref<108x512xf32, #tpu.memory_space<vmem>>, vector<4x512xf32>
    tpu.vector_store %arg12[%c52_159, %c0_160], %270 {strides = array<i32>} : memref<108x512xf32, #tpu.memory_space<vmem>>, vector<4x512xf32>,
    %c511_i32_161 = arith.constant 511 : i32
    %272 = tpu.dynamic_rotate %202 by %c511_i32_161 dim 1 : vector<4x512xf32>, i32 -> vector<4x512xf32>
    %c14_162 = arith.constant 14 : index
    %c0_163 = arith.constant 0 : index
    %273 = vector.load %arg2[%c14_162, %c0_163] : memref<27x512xf32, #tpu.memory_space<vmem>>, vector<1x512xf32>
    %274 = vector.broadcast %273 : vector<1x512xf32> to vector<4x512xf32>
    %275 = arith.mulf %272, %274 : vector<4x512xf32>
    %c56_164 = arith.constant 56 : index
    %c0_165 = arith.constant 0 : index
    %276 = vector.load %arg12[%c56_164, %c0_165] : memref<108x512xf32, #tpu.memory_space<vmem>>, vector<4x512xf32>
    tpu.vector_store %arg12[%c56_164, %c0_165], %275 {strides = array<i32>} : memref<108x512xf32, #tpu.memory_space<vmem>>, vector<4x512xf32>,
    %c505_i32_166 = arith.constant 505 : i32
    %277 = tpu.dynamic_rotate %202 by %c505_i32_166 dim 1 : vector<4x512xf32>, i32 -> vector<4x512xf32>
    %c15_167 = arith.constant 15 : index
    %c0_168 = arith.constant 0 : index
    %278 = vector.load %arg2[%c15_167, %c0_168] : memref<27x512xf32, #tpu.memory_space<vmem>>, vector<1x512xf32>
    %279 = vector.broadcast %278 : vector<1x512xf32> to vector<4x512xf32>
    %280 = arith.mulf %277, %279 : vector<4x512xf32>
    %c60_169 = arith.constant 60 : index
    %c0_170 = arith.constant 0 : index
    %281 = vector.load %arg12[%c60_169, %c0_170] : memref<108x512xf32, #tpu.memory_space<vmem>>, vector<4x512xf32>
    tpu.vector_store %arg12[%c60_169, %c0_170], %280 {strides = array<i32>} : memref<108x512xf32, #tpu.memory_space<vmem>>, vector<4x512xf32>,
    %c504_i32_171 = arith.constant 504 : i32
    %282 = tpu.dynamic_rotate %202 by %c504_i32_171 dim 1 : vector<4x512xf32>, i32 -> vector<4x512xf32>
    %c16_172 = arith.constant 16 : index
    %c0_173 = arith.constant 0 : index
    %283 = vector.load %arg2[%c16_172, %c0_173] : memref<27x512xf32, #tpu.memory_space<vmem>>, vector<1x512xf32>
    %284 = vector.broadcast %283 : vector<1x512xf32> to vector<4x512xf32>
    %285 = arith.mulf %282, %284 : vector<4x512xf32>
    %c64_174 = arith.constant 64 : index
    %c0_175 = arith.constant 0 : index
    %286 = vector.load %arg12[%c64_174, %c0_175] : memref<108x512xf32, #tpu.memory_space<vmem>>, vector<4x512xf32>
    tpu.vector_store %arg12[%c64_174, %c0_175], %285 {strides = array<i32>} : memref<108x512xf32, #tpu.memory_space<vmem>>, vector<4x512xf32>,
    %c503_i32_176 = arith.constant 503 : i32
    %287 = tpu.dynamic_rotate %202 by %c503_i32_176 dim 1 : vector<4x512xf32>, i32 -> vector<4x512xf32>
    %c17_177 = arith.constant 17 : index
    %c0_178 = arith.constant 0 : index
    %288 = vector.load %arg2[%c17_177, %c0_178] : memref<27x512xf32, #tpu.memory_space<vmem>>, vector<1x512xf32>
    %289 = vector.broadcast %288 : vector<1x512xf32> to vector<4x512xf32>
    %290 = arith.mulf %287, %289 : vector<4x512xf32>
    %c68_179 = arith.constant 68 : index
    %c0_180 = arith.constant 0 : index
    %291 = vector.load %arg12[%c68_179, %c0_180] : memref<108x512xf32, #tpu.memory_space<vmem>>, vector<4x512xf32>
    tpu.vector_store %arg12[%c68_179, %c0_180], %290 {strides = array<i32>} : memref<108x512xf32, #tpu.memory_space<vmem>>, vector<4x512xf32>,
    %c457_i32_181 = arith.constant 457 : i32
    %292 = tpu.dynamic_rotate %202 by %c457_i32_181 dim 1 : vector<4x512xf32>, i32 -> vector<4x512xf32>
    %c18_182 = arith.constant 18 : index
    %c0_183 = arith.constant 0 : index
    %293 = vector.load %arg2[%c18_182, %c0_183] : memref<27x512xf32, #tpu.memory_space<vmem>>, vector<1x512xf32>
    %294 = vector.broadcast %293 : vector<1x512xf32> to vector<4x512xf32>
    %295 = arith.mulf %292, %294 : vector<4x512xf32>
    %c72_184 = arith.constant 72 : index
    %c0_185 = arith.constant 0 : index
    %296 = vector.load %arg12[%c72_184, %c0_185] : memref<108x512xf32, #tpu.memory_space<vmem>>, vector<4x512xf32>
    tpu.vector_store %arg12[%c72_184, %c0_185], %295 {strides = array<i32>} : memref<108x512xf32, #tpu.memory_space<vmem>>, vector<4x512xf32>,
    %c456_i32_186 = arith.constant 456 : i32
    %297 = tpu.dynamic_rotate %202 by %c456_i32_186 dim 1 : vector<4x512xf32>, i32 -> vector<4x512xf32>
    %c19_187 = arith.constant 19 : index
    %c0_188 = arith.constant 0 : index
    %298 = vector.load %arg2[%c19_187, %c0_188] : memref<27x512xf32, #tpu.memory_space<vmem>>, vector<1x512xf32>
    %299 = vector.broadcast %298 : vector<1x512xf32> to vector<4x512xf32>
    %300 = arith.mulf %297, %299 : vector<4x512xf32>
    %c76_189 = arith.constant 76 : index
    %c0_190 = arith.constant 0 : index
    %301 = vector.load %arg12[%c76_189, %c0_190] : memref<108x512xf32, #tpu.memory_space<vmem>>, vector<4x512xf32>
    tpu.vector_store %arg12[%c76_189, %c0_190], %300 {strides = array<i32>} : memref<108x512xf32, #tpu.memory_space<vmem>>, vector<4x512xf32>,
    %c455_i32_191 = arith.constant 455 : i32
    %302 = tpu.dynamic_rotate %202 by %c455_i32_191 dim 1 : vector<4x512xf32>, i32 -> vector<4x512xf32>
    %c20_192 = arith.constant 20 : index
    %c0_193 = arith.constant 0 : index
    %303 = vector.load %arg2[%c20_192, %c0_193] : memref<27x512xf32, #tpu.memory_space<vmem>>, vector<1x512xf32>
    %304 = vector.broadcast %303 : vector<1x512xf32> to vector<4x512xf32>
    %305 = arith.mulf %302, %304 : vector<4x512xf32>
    %c80_194 = arith.constant 80 : index
    %c0_195 = arith.constant 0 : index
    %306 = vector.load %arg12[%c80_194, %c0_195] : memref<108x512xf32, #tpu.memory_space<vmem>>, vector<4x512xf32>
    tpu.vector_store %arg12[%c80_194, %c0_195], %305 {strides = array<i32>} : memref<108x512xf32, #tpu.memory_space<vmem>>, vector<4x512xf32>,
    %c449_i32_196 = arith.constant 449 : i32
    %307 = tpu.dynamic_rotate %202 by %c449_i32_196 dim 1 : vector<4x512xf32>, i32 -> vector<4x512xf32>
    %c21_197 = arith.constant 21 : index
    %c0_198 = arith.constant 0 : index
    %308 = vector.load %arg2[%c21_197, %c0_198] : memref<27x512xf32, #tpu.memory_space<vmem>>, vector<1x512xf32>
    %309 = vector.broadcast %308 : vector<1x512xf32> to vector<4x512xf32>
    %310 = arith.mulf %307, %309 : vector<4x512xf32>
    %c84_199 = arith.constant 84 : index
    %c0_200 = arith.constant 0 : index
    %311 = vector.load %arg12[%c84_199, %c0_200] : memref<108x512xf32, #tpu.memory_space<vmem>>, vector<4x512xf32>
    tpu.vector_store %arg12[%c84_199, %c0_200], %310 {strides = array<i32>} : memref<108x512xf32, #tpu.memory_space<vmem>>, vector<4x512xf32>,
    %c448_i32_201 = arith.constant 448 : i32
    %312 = tpu.dynamic_rotate %202 by %c448_i32_201 dim 1 : vector<4x512xf32>, i32 -> vector<4x512xf32>
    %c22_202 = arith.constant 22 : index
    %c0_203 = arith.constant 0 : index
    %313 = vector.load %arg2[%c22_202, %c0_203] : memref<27x512xf32, #tpu.memory_space<vmem>>, vector<1x512xf32>
    %314 = vector.broadcast %313 : vector<1x512xf32> to vector<4x512xf32>
    %315 = arith.mulf %312, %314 : vector<4x512xf32>
    %c88_204 = arith.constant 88 : index
    %c0_205 = arith.constant 0 : index
    %316 = vector.load %arg12[%c88_204, %c0_205] : memref<108x512xf32, #tpu.memory_space<vmem>>, vector<4x512xf32>
    tpu.vector_store %arg12[%c88_204, %c0_205], %315 {strides = array<i32>} : memref<108x512xf32, #tpu.memory_space<vmem>>, vector<4x512xf32>,
    %c447_i32_206 = arith.constant 447 : i32
    %317 = tpu.dynamic_rotate %202 by %c447_i32_206 dim 1 : vector<4x512xf32>, i32 -> vector<4x512xf32>
    %c23_207 = arith.constant 23 : index
    %c0_208 = arith.constant 0 : index
    %318 = vector.load %arg2[%c23_207, %c0_208] : memref<27x512xf32, #tpu.memory_space<vmem>>, vector<1x512xf32>
    %319 = vector.broadcast %318 : vector<1x512xf32> to vector<4x512xf32>
    %320 = arith.mulf %317, %319 : vector<4x512xf32>
    %c92_209 = arith.constant 92 : index
    %c0_210 = arith.constant 0 : index
    %321 = vector.load %arg12[%c92_209, %c0_210] : memref<108x512xf32, #tpu.memory_space<vmem>>, vector<4x512xf32>
    tpu.vector_store %arg12[%c92_209, %c0_210], %320 {strides = array<i32>} : memref<108x512xf32, #tpu.memory_space<vmem>>, vector<4x512xf32>,
    %c441_i32_211 = arith.constant 441 : i32
    %322 = tpu.dynamic_rotate %202 by %c441_i32_211 dim 1 : vector<4x512xf32>, i32 -> vector<4x512xf32>
    %c24_212 = arith.constant 24 : index
    %c0_213 = arith.constant 0 : index
    %323 = vector.load %arg2[%c24_212, %c0_213] : memref<27x512xf32, #tpu.memory_space<vmem>>, vector<1x512xf32>
    %324 = vector.broadcast %323 : vector<1x512xf32> to vector<4x512xf32>
    %325 = arith.mulf %322, %324 : vector<4x512xf32>
    %c96_214 = arith.constant 96 : index
    %c0_215 = arith.constant 0 : index
    %326 = vector.load %arg12[%c96_214, %c0_215] : memref<108x512xf32, #tpu.memory_space<vmem>>, vector<4x512xf32>
    tpu.vector_store %arg12[%c96_214, %c0_215], %325 {strides = array<i32>} : memref<108x512xf32, #tpu.memory_space<vmem>>, vector<4x512xf32>,
    %c440_i32_216 = arith.constant 440 : i32
    %327 = tpu.dynamic_rotate %202 by %c440_i32_216 dim 1 : vector<4x512xf32>, i32 -> vector<4x512xf32>
    %c25_217 = arith.constant 25 : index
    %c0_218 = arith.constant 0 : index
    %328 = vector.load %arg2[%c25_217, %c0_218] : memref<27x512xf32, #tpu.memory_space<vmem>>, vector<1x512xf32>
    %329 = vector.broadcast %328 : vector<1x512xf32> to vector<4x512xf32>
    %330 = arith.mulf %327, %329 : vector<4x512xf32>
    %c100_219 = arith.constant 100 : index
    %c0_220 = arith.constant 0 : index
    %331 = vector.load %arg12[%c100_219, %c0_220] : memref<108x512xf32, #tpu.memory_space<vmem>>, vector<4x512xf32>
    tpu.vector_store %arg12[%c100_219, %c0_220], %330 {strides = array<i32>} : memref<108x512xf32, #tpu.memory_space<vmem>>, vector<4x512xf32>,
    %c439_i32_221 = arith.constant 439 : i32
    %332 = tpu.dynamic_rotate %202 by %c439_i32_221 dim 1 : vector<4x512xf32>, i32 -> vector<4x512xf32>
    %c26_222 = arith.constant 26 : index
    %c0_223 = arith.constant 0 : index
    %333 = vector.load %arg2[%c26_222, %c0_223] : memref<27x512xf32, #tpu.memory_space<vmem>>, vector<1x512xf32>
    %334 = vector.broadcast %333 : vector<1x512xf32> to vector<4x512xf32>
    %335 = arith.mulf %332, %334 : vector<4x512xf32>
    %c104_224 = arith.constant 104 : index
    %c0_225 = arith.constant 0 : index
    %336 = vector.load %arg12[%c104_224, %c0_225] : memref<108x512xf32, #tpu.memory_space<vmem>>, vector<4x512xf32>
    tpu.vector_store %arg12[%c104_224, %c0_225], %335 {strides = array<i32>} : memref<108x512xf32, #tpu.memory_space<vmem>>, vector<4x512xf32>,
    %c0_226 = arith.constant 0 : index
    %c0_227 = arith.constant 0 : index
    %337 = vector.load %arg5[%c0_226, %c0_227] : memref<4x108xf32, #tpu.memory_space<vmem>>, vector<4x108xf32>
    %c0_228 = arith.constant 0 : index
    %c0_229 = arith.constant 0 : index
    %338 = vector.load %arg12[%c0_228, %c0_229] : memref<108x512xf32, #tpu.memory_space<vmem>>, vector<108x512xf32>
    %cst_230 = arith.constant dense<0.000000e+00> : vector<4x512xf32>
    %339 = tpu.matmul %337, %338, %cst_230 {dimension_numbers = #tpu.dot_dimension_numbers<[1], [0], [0], [1], [0, 0, 1, 1], [], []>} : vector<4x108xf32>, vector<108x512xf32>, vector<4x512xf32> -> vector<4x512xf32>
    %c0_231 = arith.constant 0 : index
    %c0_232 = arith.constant 0 : index
    %340 = vector.load %arg6[%c0_231, %c0_232] : memref<4x1xf32, #tpu.memory_space<vmem>>, vector<4x1xf32>
    %341 = vector.broadcast %340 : vector<4x1xf32> to vector<4x512xf32>
    %342 = arith.addf %339, %341 : vector<4x512xf32>
    %cst_233 = arith.constant dense<0.000000e+00> : vector<4xf32>
    %343 = vector.multi_reduction <add>, %342, %cst_233 [1] : vector<4x512xf32> to vector<4xf32>
    %344 = vector.shape_cast %343 : vector<4xf32> to vector<4x1xf32>
    %345 = arith.mulf %342, %342 : vector<4x512xf32>
    %cst_234 = arith.constant dense<0.000000e+00> : vector<4xf32>
    %346 = vector.multi_reduction <add>, %345, %cst_234 [1] : vector<4x512xf32> to vector<4xf32>
    %347 = vector.shape_cast %346 : vector<4xf32> to vector<4x1xf32>
    %cst_235 = arith.constant 0.001953125 : f32
    %348 = vector.broadcast %cst_235 : f32 to vector<4x1xf32>
    %349 = arith.mulf %344, %348 : vector<4x1xf32>
    %cst_236 = arith.constant 0.001953125 : f32
    %350 = vector.broadcast %cst_236 : f32 to vector<4x1xf32>
    %351 = arith.mulf %347, %350 : vector<4x1xf32>
    %352 = arith.mulf %349, %349 : vector<4x1xf32>
    %353 = arith.subf %351, %352 : vector<4x1xf32>
    %cst_237 = arith.constant 0.000000e+00 : f32
    %354 = vector.broadcast %cst_237 : f32 to vector<4x1xf32>
    %355 = arith.maximumf %353, %354 : vector<4x1xf32>
    %356 = vector.broadcast %349 : vector<4x1xf32> to vector<4x512xf32>
    %357 = arith.subf %342, %356 : vector<4x512xf32>
    %cst_238 = arith.constant 9.99999974E-6 : f32
    %358 = vector.broadcast %cst_238 : f32 to vector<4x1xf32>
    %359 = arith.addf %355, %358 : vector<4x1xf32>
    %360 = math.rsqrt %359 : vector<4x1xf32>
    %361 = vector.broadcast %360 : vector<4x1xf32> to vector<4x512xf32>
    %362 = arith.mulf %357, %361 : vector<4x512xf32>
    %cst_239 = arith.constant 5.000000e-01 : f32
    %363 = vector.broadcast %cst_239 : f32 to vector<4x512xf32>
    %364 = arith.mulf %363, %362 : vector<4x512xf32>
    %cst_240 = arith.constant 0.707106769 : f32
    %365 = vector.broadcast %cst_240 : f32 to vector<4x512xf32>
    %366 = arith.mulf %362, %365 : vector<4x512xf32>
    %cst_241 = arith.constant 0.000000e+00 : f32
    %367 = vector.broadcast %cst_241 : f32 to vector<4x512xf32>
    %368 = arith.cmpf oge, %366, %367 : vector<4x512xf32>
    %cst_242 = arith.constant 1.000000e+00 : f32
    %cst_243 = arith.constant -1.000000e+00 : f32
    %369 = vector.broadcast %cst_242 : f32 to vector<4x512xf32>
    %370 = vector.broadcast %cst_243 : f32 to vector<4x512xf32>
    %371 = arith.select %368, %369, %370 : vector<4x512xi1>, vector<4x512xf32>
    %372 = math.absf %366 : vector<4x512xf32>
    %cst_244 = arith.constant 0.327591091 : f32
    %373 = vector.broadcast %cst_244 : f32 to vector<4x512xf32>
    %374 = arith.mulf %373, %372 : vector<4x512xf32>
    %cst_245 = arith.constant 1.000000e+00 : f32
    %375 = vector.broadcast %cst_245 : f32 to vector<4x512xf32>
    %376 = arith.addf %375, %374 : vector<4x512xf32>
    %cst_246 = arith.constant 1.000000e+00 : f32
    %377 = vector.broadcast %cst_246 : f32 to vector<4x512xf32>
    %378 = arith.divf %377, %376 : vector<4x512xf32>
    %cst_247 = arith.constant 1.06140542 : f32
    %379 = vector.broadcast %cst_247 : f32 to vector<4x512xf32>
    %380 = arith.mulf %379, %378 : vector<4x512xf32>
    %cst_248 = arith.constant -1.45315206 : f32
    %381 = vector.broadcast %cst_248 : f32 to vector<4x512xf32>
    %382 = arith.addf %380, %381 : vector<4x512xf32>
    %383 = arith.mulf %382, %378 : vector<4x512xf32>
    %cst_249 = arith.constant 1.42141378 : f32
    %384 = vector.broadcast %cst_249 : f32 to vector<4x512xf32>
    %385 = arith.addf %383, %384 : vector<4x512xf32>
    %386 = arith.mulf %385, %378 : vector<4x512xf32>
    %cst_250 = arith.constant -0.284496725 : f32
    %387 = vector.broadcast %cst_250 : f32 to vector<4x512xf32>
    %388 = arith.addf %386, %387 : vector<4x512xf32>
    %389 = arith.mulf %388, %378 : vector<4x512xf32>
    %cst_251 = arith.constant 0.254829586 : f32
    %390 = vector.broadcast %cst_251 : f32 to vector<4x512xf32>
    %391 = arith.addf %389, %390 : vector<4x512xf32>
    %392 = arith.mulf %391, %378 : vector<4x512xf32>
    %cst_252 = arith.constant 0.000000e+00 : f32
    %393 = vector.broadcast %cst_252 : f32 to vector<4x512xf32>
    %394 = arith.subf %393, %372 : vector<4x512xf32>
    %395 = arith.mulf %394, %372 : vector<4x512xf32>
    %396 = math.exp %395 : vector<4x512xf32>
    %397 = arith.mulf %392, %396 : vector<4x512xf32>
    %cst_253 = arith.constant 1.000000e+00 : f32
    %398 = vector.broadcast %cst_253 : f32 to vector<4x512xf32>
    %399 = arith.subf %398, %397 : vector<4x512xf32>
    %400 = arith.mulf %371, %399 : vector<4x512xf32>
    %cst_254 = arith.constant 1.000000e+00 : f32
    %401 = vector.broadcast %cst_254 : f32 to vector<4x512xf32>
    %402 = arith.addf %401, %400 : vector<4x512xf32>
    %403 = arith.mulf %364, %402 : vector<4x512xf32>
    %c0_255 = arith.constant 0 : index
    %c0_256 = arith.constant 0 : index
    %404 = vector.load %arg7[%c0_255, %c0_256] : memref<4x4xf32, #tpu.memory_space<vmem>>, vector<4x4xf32>
    %cst_257 = arith.constant dense<0.000000e+00> : vector<4x512xf32>
    %405 = tpu.matmul %404, %1, %cst_257 {dimension_numbers = #tpu.dot_dimension_numbers<[1], [0], [0], [1], [0, 0, 1, 1], [], []>} : vector<4x4xf32>, vector<4x512xf32>, vector<4x512xf32> -> vector<4x512xf32>
    %c0_258 = arith.constant 0 : index
    %c0_259 = arith.constant 0 : index
    %406 = vector.load %arg8[%c0_258, %c0_259] : memref<4x1xf32, #tpu.memory_space<vmem>>, vector<4x1xf32>
    %407 = vector.broadcast %406 : vector<4x1xf32> to vector<4x512xf32>
    %408 = arith.addf %405, %407 : vector<4x512xf32>
    %cst_260 = arith.constant dense<0.000000e+00> : vector<4xf32>
    %409 = vector.multi_reduction <add>, %408, %cst_260 [1] : vector<4x512xf32> to vector<4xf32>
    %410 = vector.shape_cast %409 : vector<4xf32> to vector<4x1xf32>
    %411 = arith.mulf %408, %408 : vector<4x512xf32>
    %cst_261 = arith.constant dense<0.000000e+00> : vector<4xf32>
    %412 = vector.multi_reduction <add>, %411, %cst_261 [1] : vector<4x512xf32> to vector<4xf32>
    %413 = vector.shape_cast %412 : vector<4xf32> to vector<4x1xf32>
    %cst_262 = arith.constant 0.001953125 : f32
    %414 = vector.broadcast %cst_262 : f32 to vector<4x1xf32>
    %415 = arith.mulf %410, %414 : vector<4x1xf32>
    %cst_263 = arith.constant 0.001953125 : f32
    %416 = vector.broadcast %cst_263 : f32 to vector<4x1xf32>
    %417 = arith.mulf %413, %416 : vector<4x1xf32>
    %418 = arith.mulf %415, %415 : vector<4x1xf32>
    %419 = arith.subf %417, %418 : vector<4x1xf32>
    %cst_264 = arith.constant 0.000000e+00 : f32
    %420 = vector.broadcast %cst_264 : f32 to vector<4x1xf32>
    %421 = arith.maximumf %419, %420 : vector<4x1xf32>
    %422 = vector.broadcast %415 : vector<4x1xf32> to vector<4x512xf32>
    %423 = arith.subf %408, %422 : vector<4x512xf32>
    %cst_265 = arith.constant 9.99999974E-6 : f32
    %424 = vector.broadcast %cst_265 : f32 to vector<4x1xf32>
    %425 = arith.addf %421, %424 : vector<4x1xf32>
    %426 = math.rsqrt %425 : vector<4x1xf32>
    %427 = vector.broadcast %426 : vector<4x1xf32> to vector<4x512xf32>
    %428 = arith.mulf %423, %427 : vector<4x512xf32>
    %cst_266 = arith.constant 5.000000e-01 : f32
    %429 = vector.broadcast %cst_266 : f32 to vector<4x512xf32>
    %430 = arith.mulf %429, %428 : vector<4x512xf32>
    %cst_267 = arith.constant 0.707106769 : f32
    %431 = vector.broadcast %cst_267 : f32 to vector<4x512xf32>
    %432 = arith.mulf %428, %431 : vector<4x512xf32>
    %cst_268 = arith.constant 0.000000e+00 : f32
    %433 = vector.broadcast %cst_268 : f32 to vector<4x512xf32>
    %434 = arith.cmpf oge, %432, %433 : vector<4x512xf32>
    %cst_269 = arith.constant 1.000000e+00 : f32
    %cst_270 = arith.constant -1.000000e+00 : f32
    %435 = vector.broadcast %cst_269 : f32 to vector<4x512xf32>
    %436 = vector.broadcast %cst_270 : f32 to vector<4x512xf32>
    %437 = arith.select %434, %435, %436 : vector<4x512xi1>, vector<4x512xf32>
    %438 = math.absf %432 : vector<4x512xf32>
    %cst_271 = arith.constant 0.327591091 : f32
    %439 = vector.broadcast %cst_271 : f32 to vector<4x512xf32>
    %440 = arith.mulf %439, %438 : vector<4x512xf32>
    %cst_272 = arith.constant 1.000000e+00 : f32
    %441 = vector.broadcast %cst_272 : f32 to vector<4x512xf32>
    %442 = arith.addf %441, %440 : vector<4x512xf32>
    %cst_273 = arith.constant 1.000000e+00 : f32
    %443 = vector.broadcast %cst_273 : f32 to vector<4x512xf32>
    %444 = arith.divf %443, %442 : vector<4x512xf32>
    %cst_274 = arith.constant 1.06140542 : f32
    %445 = vector.broadcast %cst_274 : f32 to vector<4x512xf32>
    %446 = arith.mulf %445, %444 : vector<4x512xf32>
    %cst_275 = arith.constant -1.45315206 : f32
    %447 = vector.broadcast %cst_275 : f32 to vector<4x512xf32>
    %448 = arith.addf %446, %447 : vector<4x512xf32>
    %449 = arith.mulf %448, %444 : vector<4x512xf32>
    %cst_276 = arith.constant 1.42141378 : f32
    %450 = vector.broadcast %cst_276 : f32 to vector<4x512xf32>
    %451 = arith.addf %449, %450 : vector<4x512xf32>
    %452 = arith.mulf %451, %444 : vector<4x512xf32>
    %cst_277 = arith.constant -0.284496725 : f32
    %453 = vector.broadcast %cst_277 : f32 to vector<4x512xf32>
    %454 = arith.addf %452, %453 : vector<4x512xf32>
    %455 = arith.mulf %454, %444 : vector<4x512xf32>
    %cst_278 = arith.constant 0.254829586 : f32
    %456 = vector.broadcast %cst_278 : f32 to vector<4x512xf32>
    %457 = arith.addf %455, %456 : vector<4x512xf32>
    %458 = arith.mulf %457, %444 : vector<4x512xf32>
    %cst_279 = arith.constant 0.000000e+00 : f32
    %459 = vector.broadcast %cst_279 : f32 to vector<4x512xf32>
    %460 = arith.subf %459, %438 : vector<4x512xf32>
    %461 = arith.mulf %460, %438 : vector<4x512xf32>
    %462 = math.exp %461 : vector<4x512xf32>
    %463 = arith.mulf %458, %462 : vector<4x512xf32>
    %cst_280 = arith.constant 1.000000e+00 : f32
    %464 = vector.broadcast %cst_280 : f32 to vector<4x512xf32>
    %465 = arith.subf %464, %463 : vector<4x512xf32>
    %466 = arith.mulf %437, %465 : vector<4x512xf32>
    %cst_281 = arith.constant 1.000000e+00 : f32
    %467 = vector.broadcast %cst_281 : f32 to vector<4x512xf32>
    %468 = arith.addf %467, %466 : vector<4x512xf32>
    %469 = arith.mulf %430, %468 : vector<4x512xf32>
    %470 = arith.addf %403, %469 : vector<4x512xf32>
    %c0_282 = arith.constant 0 : index
    %c0_283 = arith.constant 0 : index
    %471 = vector.load %arg9[%c0_282, %c0_283] : memref<4x4xf32, #tpu.memory_space<vmem>>, vector<4x4xf32>
    %cst_284 = arith.constant dense<0.000000e+00> : vector<4x512xf32>
    %472 = tpu.matmul %471, %470, %cst_284 {dimension_numbers = #tpu.dot_dimension_numbers<[1], [0], [0], [1], [0, 0, 1, 1], [], []>} : vector<4x4xf32>, vector<4x512xf32>, vector<4x512xf32> -> vector<4x512xf32>
    %c0_285 = arith.constant 0 : index
    %c0_286 = arith.constant 0 : index
    %473 = vector.load %arg10[%c0_285, %c0_286] : memref<4x1xf32, #tpu.memory_space<vmem>>, vector<4x1xf32>
    %474 = vector.broadcast %473 : vector<4x1xf32> to vector<4x512xf32>
    %475 = arith.addf %472, %474 : vector<4x512xf32>
    %cst_287 = arith.constant dense<0.000000e+00> : vector<4xf32>
    %476 = vector.multi_reduction <add>, %475, %cst_287 [1] : vector<4x512xf32> to vector<4xf32>
    %477 = vector.shape_cast %476 : vector<4xf32> to vector<4x1xf32>
    %478 = arith.mulf %475, %475 : vector<4x512xf32>
    %cst_288 = arith.constant dense<0.000000e+00> : vector<4xf32>
    %479 = vector.multi_reduction <add>, %478, %cst_288 [1] : vector<4x512xf32> to vector<4xf32>
    %480 = vector.shape_cast %479 : vector<4xf32> to vector<4x1xf32>
    %cst_289 = arith.constant 0.001953125 : f32
    %481 = vector.broadcast %cst_289 : f32 to vector<4x1xf32>
    %482 = arith.mulf %477, %481 : vector<4x1xf32>
    %cst_290 = arith.constant 0.001953125 : f32
    %483 = vector.broadcast %cst_290 : f32 to vector<4x1xf32>
    %484 = arith.mulf %480, %483 : vector<4x1xf32>
    %485 = arith.mulf %482, %482 : vector<4x1xf32>
    %486 = arith.subf %484, %485 : vector<4x1xf32>
    %cst_291 = arith.constant 0.000000e+00 : f32
    %487 = vector.broadcast %cst_291 : f32 to vector<4x1xf32>
    %488 = arith.maximumf %486, %487 : vector<4x1xf32>
    %489 = vector.broadcast %482 : vector<4x1xf32> to vector<4x512xf32>
    %490 = arith.subf %475, %489 : vector<4x512xf32>
    %cst_292 = arith.constant 9.99999974E-6 : f32
    %491 = vector.broadcast %cst_292 : f32 to vector<4x1xf32>
    %492 = arith.addf %488, %491 : vector<4x1xf32>
    %493 = math.rsqrt %492 : vector<4x1xf32>
    %494 = vector.broadcast %493 : vector<4x1xf32> to vector<4x512xf32>
    %495 = arith.mulf %490, %494 : vector<4x512xf32>
    %cst_293 = arith.constant 5.000000e-01 : f32
    %496 = vector.broadcast %cst_293 : f32 to vector<4x512xf32>
    %497 = arith.mulf %496, %495 : vector<4x512xf32>
    %cst_294 = arith.constant 0.707106769 : f32
    %498 = vector.broadcast %cst_294 : f32 to vector<4x512xf32>
    %499 = arith.mulf %495, %498 : vector<4x512xf32>
    %cst_295 = arith.constant 0.000000e+00 : f32
    %500 = vector.broadcast %cst_295 : f32 to vector<4x512xf32>
    %501 = arith.cmpf oge, %499, %500 : vector<4x512xf32>
    %cst_296 = arith.constant 1.000000e+00 : f32
    %cst_297 = arith.constant -1.000000e+00 : f32
    %502 = vector.broadcast %cst_296 : f32 to vector<4x512xf32>
    %503 = vector.broadcast %cst_297 : f32 to vector<4x512xf32>
    %504 = arith.select %501, %502, %503 : vector<4x512xi1>, vector<4x512xf32>
    %505 = math.absf %499 : vector<4x512xf32>
    %cst_298 = arith.constant 0.327591091 : f32
    %506 = vector.broadcast %cst_298 : f32 to vector<4x512xf32>
    %507 = arith.mulf %506, %505 : vector<4x512xf32>
    %cst_299 = arith.constant 1.000000e+00 : f32
    %508 = vector.broadcast %cst_299 : f32 to vector<4x512xf32>
    %509 = arith.addf %508, %507 : vector<4x512xf32>
    %cst_300 = arith.constant 1.000000e+00 : f32
    %510 = vector.broadcast %cst_300 : f32 to vector<4x512xf32>
    %511 = arith.divf %510, %509 : vector<4x512xf32>
    %cst_301 = arith.constant 1.06140542 : f32
    %512 = vector.broadcast %cst_301 : f32 to vector<4x512xf32>
    %513 = arith.mulf %512, %511 : vector<4x512xf32>
    %cst_302 = arith.constant -1.45315206 : f32
    %514 = vector.broadcast %cst_302 : f32 to vector<4x512xf32>
    %515 = arith.addf %513, %514 : vector<4x512xf32>
    %516 = arith.mulf %515, %511 : vector<4x512xf32>
    %cst_303 = arith.constant 1.42141378 : f32
    %517 = vector.broadcast %cst_303 : f32 to vector<4x512xf32>
    %518 = arith.addf %516, %517 : vector<4x512xf32>
    %519 = arith.mulf %518, %511 : vector<4x512xf32>
    %cst_304 = arith.constant -0.284496725 : f32
    %520 = vector.broadcast %cst_304 : f32 to vector<4x512xf32>
    %521 = arith.addf %519, %520 : vector<4x512xf32>
    %522 = arith.mulf %521, %511 : vector<4x512xf32>
    %cst_305 = arith.constant 0.254829586 : f32
    %523 = vector.broadcast %cst_305 : f32 to vector<4x512xf32>
    %524 = arith.addf %522, %523 : vector<4x512xf32>
    %525 = arith.mulf %524, %511 : vector<4x512xf32>
    %cst_306 = arith.constant 0.000000e+00 : f32
    %526 = vector.broadcast %cst_306 : f32 to vector<4x512xf32>
    %527 = arith.subf %526, %505 : vector<4x512xf32>
    %528 = arith.mulf %527, %505 : vector<4x512xf32>
    %529 = math.exp %528 : vector<4x512xf32>
    %530 = arith.mulf %525, %529 : vector<4x512xf32>
    %cst_307 = arith.constant 1.000000e+00 : f32
    %531 = vector.broadcast %cst_307 : f32 to vector<4x512xf32>
    %532 = arith.subf %531, %530 : vector<4x512xf32>
    %533 = arith.mulf %504, %532 : vector<4x512xf32>
    %cst_308 = arith.constant 1.000000e+00 : f32
    %534 = vector.broadcast %cst_308 : f32 to vector<4x512xf32>
    %535 = arith.addf %534, %533 : vector<4x512xf32>
    %536 = arith.mulf %497, %535 : vector<4x512xf32>
    %537 = arith.addf %536, %1 : vector<4x512xf32>
    %c0_309 = arith.constant 0 : index
    %c0_310 = arith.constant 0 : index
    %c0_311 = arith.constant 0 : index
    %538 = vector.load %arg11[%c0_309, %c0_310, %c0_311] : memref<1x4x512xf32, #tpu.memory_space<vmem>>, vector<1x4x512xf32>
    %539 = vector.shape_cast %538 : vector<1x4x512xf32> to vector<4x512xf32>
    %540 = vector.shape_cast %537 : vector<4x512xf32> to vector<1x4x512xf32>
    tpu.vector_store %arg11[%c0_309, %c0_310, %c0_311], %540 {strides = array<i32>} : memref<1x4x512xf32, #tpu.memory_space<vmem>>, vector<1x4x512xf32>,
    return
  }
  func.func @transform_0(%arg0: i32) -> (i32, i32, i32) {
    %c0_i32 = arith.constant 0 : i32
    %c0_i32_0 = arith.constant 0 : i32
    %c0_i32_1 = arith.constant 0 : i32
    return %arg0, %c0_i32, %c0_i32_0 : i32, i32, i32
  }
  func.func @transform_1(%arg0: i32) -> (i32, i32) {
    %c0_i32 = arith.constant 0 : i32
    %c0_i32_0 = arith.constant 0 : i32
    %c0_i32_1 = arith.constant 0 : i32
    return %c0_i32, %c0_i32_0 : i32, i32
  }
  func.func @transform_2(%arg0: i32) -> (i32, i32) {
    %c0_i32 = arith.constant 0 : i32
    %c0_i32_0 = arith.constant 0 : i32
    %c0_i32_1 = arith.constant 0 : i32
    return %c0_i32, %c0_i32_0 : i32, i32
  }
  func.func @transform_3(%arg0: i32) -> (i32, i32) {
    %c0_i32 = arith.constant 0 : i32
    %c0_i32_0 = arith.constant 0 : i32
    %c0_i32_1 = arith.constant 0 : i32
    return %c0_i32, %c0_i32_0 : i32, i32
  }
  func.func @transform_4(%arg0: i32) -> (i32, i32) {
    %c0_i32 = arith.constant 0 : i32
    %c0_i32_0 = arith.constant 0 : i32
    %c0_i32_1 = arith.constant 0 : i32
    return %c0_i32, %c0_i32_0 : i32, i32
  }
  func.func @transform_5(%arg0: i32) -> (i32, i32) {
    %c0_i32 = arith.constant 0 : i32
    %c0_i32_0 = arith.constant 0 : i32
    %c0_i32_1 = arith.constant 0 : i32
    return %c0_i32, %c0_i32_0 : i32, i32
  }
  func.func @transform_6(%arg0: i32) -> (i32, i32) {
    %c0_i32 = arith.constant 0 : i32
    %c0_i32_0 = arith.constant 0 : i32
    %c0_i32_1 = arith.constant 0 : i32
    return %c0_i32, %c0_i32_0 : i32, i32
  }
  func.func @transform_7(%arg0: i32) -> (i32, i32) {
    %c0_i32 = arith.constant 0 : i32
    %c0_i32_0 = arith.constant 0 : i32
    %c0_i32_1 = arith.constant 0 : i32
    return %c0_i32, %c0_i32_0 : i32, i32
  }
  func.func @transform_8(%arg0: i32) -> (i32, i32) {
    %c0_i32 = arith.constant 0 : i32
    %c0_i32_0 = arith.constant 0 : i32
    %c0_i32_1 = arith.constant 0 : i32
    return %c0_i32, %c0_i32_0 : i32, i32
  }
  func.func @transform_9(%arg0: i32) -> (i32, i32) {
    %c0_i32 = arith.constant 0 : i32
    %c0_i32_0 = arith.constant 0 : i32
    %c0_i32_1 = arith.constant 0 : i32
    return %c0_i32, %c0_i32_0 : i32, i32
  }
  func.func @transform_10(%arg0: i32) -> (i32, i32, i32) {
    %c0_i32 = arith.constant 0 : i32
    %c0_i32_0 = arith.constant 0 : i32
    %c0_i32_1 = arith.constant 0 : i32
    return %arg0, %c0_i32, %c0_i32_0 : i32, i32, i32
  }
}

</mosaic_0001>

<bundles_post_ra>
// kernel: tpu_custom_call.1
= control target key start
LH: loop header
LB: loop body
LE: loop exit
PB: predicated region body
PF: predicated region fallthrough
CT: control target
= control target key end

     0   :  { %s6557_s0 = inlined_call_operand.hbm [shape: f32[2,4,512], index: 0, kind: input, shape index: {}]   ;;  %s6558_s1 = inlined_call_operand.hbm [shape: f32[27,512], index: 1, kind: input, shape index: {}]   ;;  %s6559_s2 = inlined_call_operand.vmem [shape: f32[4,108], index: 2, kind: input, shape index: {}]   ;;  %s6560_s3 = inlined_call_operand.vmem [shape: f32[4,1], index: 3, kind: input, shape index: {}]   ;;  %s6561_s4 = inlined_call_operand.vmem [shape: f32[4,108], index: 4, kind: input, shape index: {}]   ;;  %s6562_s5 = inlined_call_operand.vmem [shape: f32[4,1], index: 5, kind: input, shape index: {}]   ;;  %s6563_s6 = inlined_call_operand.vmem [shape: f32[4,4], index: 6, kind: input, shape index: {}]   ;;  %s6564_s7 = inlined_call_operand.vmem [shape: f32[4,1], index: 7, kind: input, shape index: {}]   ;;  %s6565_s8 = inlined_call_operand.vmem [shape: f32[4,4], index: 8, kind: input, shape index: {}]   ;;  %s6566_s9 = inlined_call_operand.vmem [shape: f32[4,1], index: 9, kind: input, shape index: {}]   ;;  %s6567_s10 = inlined_call_operand.hbm [shape: f32[2,4,512], index: 10, kind: output, shape index: {}]  }
   0x1   :  { %6594 = sst [smem:[#allocation16_spill]] %s6558_s1 }
   0x2   :  { %15 = vsyncpa [#allocation4], 0 }
   0x3   :  { %17 = vsyncpa [#allocation4 + $0x1], 0 }
   0x4   :  { %18 = vsyncpa [#allocation7], 0 }
   0x5   :  { %19 = vsyncpa [#allocation5], 0 }
   0x6   :  { %21 = vsyncpa [#allocation5 + $0x1], 0  ;;  %s4639_s13 = smov 0   ;;  %s4641_s14 = smov 0  }
   0x7   :  { %s4643_s15 = smov 0   ;;  %s4645_s16 = smov 0  }
   0x8 LB: > { %6595 = sst [smem:[#allocation12_spill]] %s4545_s13  ;;  %s4660_s17 = sadd.s32 4294967295, %s4557_s16   ;;  %s4557_s16 = sphi %s4645_s16, %s6647_s16   ;;  %s4553_s15 = sphi %s4643_s15, %s6651_s15   ;;  %s4549_s14 = sphi %s4641_s14, %s6650_s14   ;;  %s4545_s13 = sphi %s4639_s13, %s6649_s13  }
   0x9   : > { %s4236_s18 = sadd.s32 4294967294, %s4557_s16   ;;  %p47_p0 = scmp.ne.s32.totalorder %s4549_s14, %s4545_s13 }
   0xa   : > { %p6572_p1 = scmp.eq.s32.totalorder %s4660_s17, 0  ;;  %p266_p3 = scmp.eq.s32.totalorder %s4236_s18, 1 }
   0xb   : > { %p4237_p5 = scmp.ge.s32.totalorder %s4557_s16, 1  ;;  %p273_p7 = scmp.lt.s32.totalorder %s4557_s16, 3 }
   0xc   : > { %p4669_p4 = por %p6572_p1, %p47_p0  ;;  %p4674_p6 = por %p266_p3, %p47_p0 }
   0xd   : > { %p4679_p8 = pnand %p4237_p5, %p273_p7  ;;  %s4559_s22 = smov [#allocation6]  }
   0xe   : > { %s6596_s19 = scalar_select %p4669_p4, 1, 0 }
   0xf   : > { %s6597_s20 = scalar_select %p4674_p6, 1, 0 }
  0x10   : > { %s6599_s21 = scalar_select %p4679_p8, 1, 0 }
  0x11   : > { %6598 = sst [smem:[#allocation13_spill]] %s6597_s20  ;;  %s285_s23 = sshll.u32 %s4559_s22, 4  ;;  %s286_s23 = int_to_ptr.vmem [resolvable:$true] %s285_s23 }
  0x12   : > { %p4286_p9 = pneg %p4679_p8  ;;  %s4693_s25 = sadd.s32 1, %s4557_s16  }
  0x13   : > { %6601 = sst [smem:[#allocation14_spill]] %s4693_s25  ;;  %s34_s26 = sadd.s32 1, %s4553_s15 }
  0x14   : > { %p4688_p11 = pnand %p4286_p9, %p6572_p1  ;;  %s31_s27 = ssub.s32 %s4557_s16, %s4693_s25 }
  0x15   : > { %s4446_s28 = scalar_lea.vmem %s286_s23, 2048  ;;  %p4454_p5 = scmp.lt.s32.totalorder %s286_s23, %s286_s23 }
  0x16   : > { %p4437_p12 = pneg %p4688_p11  ;;  %p4447_p13 = scmp.ne.s32.totalorder %s286_s23, %s4446_s28 }
  0x17   : > { %p4455_p7 = scmp.lt.s32.totalorder %s4446_s28, %s4446_s28 }
  0x18   : > { %p4449_p0 = pnand %p4447_p13, %p4437_p12 }
  0x19   : > { %p4456_p10 = por %p4455_p7, %p4454_p5 }
  0x1a   : > { %p4450_p3 = pneg %p4449_p0 }
  0x1c   : > { %p4457_p2 = pnand %p4456_p10, %p4450_p3 }
  0x1e   : > { %4460 = shalt.err (!%p4457_p2)
}
  0x1f   : > { %s4560_s29 = smov 512   ;;  %s4561_s30 = smov 32  }
  0x20   : > { %s6602_s1 = sld [smem:[#allocation16_spill]]  ;;  %p32_p9 = scmp.eq.s32.totalorder %s31_s27, 0 }
  0x21   : > { %p41_p12 = scmp.ne.s32.totalorder %s4553_s15, %s4549_s14  ;;  %p42_p10 = scmp.eq.s32.totalorder %s4557_s16, 0 }
  0x22   : > { %p4299_p2 = scmp.lt.s32.totalorder %s4557_s16, 2  ;;  %p6604_p0 = scmp.eq.s32.totalorder %s4660_s17, 1 }
  0x23   : > { %s4710_s18 = scalar_select %p32_p9, %s4553_s15, %s34_s26  }
  0x24   : > { %p43_p13 = por %p42_p10, %p41_p12  ;;  %p4714_p3 = por %p6604_p0, %p41_p12 }
  0x25   : > { %6603 = sst [smem:[#allocation15_spill]] %s4710_s18  ;;  %s323_s28 = sand.u32 1, %s4553_s15  }
  0x26   : > { %4289 = dma.hbm_to_vmem [thread:$0]  (!%p4688_p11), %s6602_s1, 2048, %s286_s23, [#allocation7], %s4560_s29, %s4560_s29, %s4561_s30  }
  0x27   : > { %s6605_s22 = scalar_select %p4714_p3, 1, 0 }
  0x28   : > { %s4276_s25 = sshll.u32 %s4557_s16, 8  ;;  %s4240_s20 = sshll.u32 %s323_s28, 4 }
  0x29   : > { %s4723_s11 = scalar_lea.hbm %s6557_s0, %s4276_s25  ;;  %s327_s23 = scalar_lea.vmem [#allocation3], %s4240_s20 }
  0x2a   : > { %s335_s26 = sshll.u32 %s327_s23, 4  ;;  %p4725_p11 = pnand %p4299_p2, %p43_p13  ;;  %s336_s26 = int_to_ptr.vmem [resolvable:$true] %s335_s26 }
  0x2b   : > { %s324_s29 = scalar_lea.sflag [#allocation4], %s323_s28  ;;  %s4461_s30 = scalar_lea.hbm %s4723_s11, 256 }
  0x2c   : > { %p4462_p5 = scmp.ne.s32.totalorder %s4723_s11, %s4461_s30  ;;  %p4463_p7 = pneg %p4725_p11 }
  0x2d   : > { %s4466_s12 = scalar_lea.hbm %s6557_s0, 512  ;;  %p4467_p10 = scmp.lt.s32.totalorder %s4723_s11, %s6557_s0 }
  0x2e   : > { %p4464_p9 = pnand %p4463_p7, %p4462_p5  ;;  %p4468_p2 = scmp.lt.s32.totalorder %s4466_s12, %s4461_s30 }
  0x30   : > { %p4465_p12 = pneg %p4464_p9  ;;  %p4469_p13 = por %p4468_p2, %p4467_p10 }
  0x32   : > { %p4470_p0 = pnand %p4469_p13, %p4465_p12 }
  0x34   : > { %4473 = shalt.err (!%p4470_p0)
}
  0x35   : > { %s4474_s23 = scalar_lea.vmem %s336_s26, 256  ;;  %s4562_s28 = smov [#allocation3]  }
  0x36   : > { %p4475_p1 = scmp.ne.s32.totalorder %s336_s26, %s4474_s23  ;;  %s4479_s1 = sshll.u32 %s4562_s28, 4  ;;  %s4480_s1 = int_to_ptr.vmem [resolvable:$false] %s4479_s1 }
  0x37   : > { %s4481_s18 = scalar_lea.vmem %s4480_s1, 512  ;;  %p4482_p5 = scmp.lt.s32.totalorder %s336_s26, %s4480_s1 }
  0x38   : > { %p4477_p6 = pnand %p4475_p1, %p4463_p7  ;;  %p4483_p9 = scmp.lt.s32.totalorder %s4481_s18, %s4474_s23 }
  0x3a   : > { %p4478_p3 = pneg %p4477_p6  ;;  %p4484_p4 = por %p4483_p9, %p4482_p5 }
  0x3c   : > { %p4485_p8 = pnand %p4484_p4, %p4478_p3 }
  0x3e   : > { %4488 = shalt.err (!%p4485_p8)
}
  0x3f   : > { %4293 = dma.hbm_to_vmem [thread:$0]  (!%p4725_p11), %s4723_s11, 256, %s336_s26, %s324_s29  }
  0x40   : > { %p6607_p12 = scmp.ne.s32.totalorder %s6599_s21, 0 }
  0x41   : > { %s4746_s30 = sand.u32 (!%p6607_p12), 1, %s4549_s14   ;;  %p6608_p1 = scmp.ne.s32.totalorder (!%p6607_p12), %s6596_s19, 0 }
  0x42   : > { %344 = sbr.rel (%p6607_p12) target bundleno = 1910 (0x776), region = 60  ;;  %s6576_s13 = sshll.u32 (!%p6607_p12), %s4746_s30, 4 }
  0x43   : > { %s347_s1 = scalar_lea.sflag (!%p6607_p12), [#allocation4], %s4746_s30  ;;  %s4752_s18 = scalar_lea.vmem (!%p6607_p12), [#allocation3], %s6576_s13 }
  0x47   : > { %4532 = dma.done.wait (%p6608_p1), %s347_s1, 256  }
  0x48   : > { %4534 = vsyncadd (%p6608_p1), %s347_s1, 4294967040  ;;  %p6609_p4 = scmp.eq.s32.totalorder %s4660_s17, 0 }
  0x4a   : > { %4536 = dma.done.wait (%p6609_p4), [#allocation7], 2048   ;;  %p6610_p6 = pmov %p6609_p4 }
  0x4b   : > { %v4763_v0 = vld [vmem:[%s4752_s18 + $0x8] sm:$0xff]  ;;  %s4563_s21 = smov 55   ;;  %s4564_s11 = smov 56   ;;  %v4770_v1 = vld [vmem:[%s4752_s18] sm:$0xff]  ;;  %v407_v4 = vlaneseq  ;;  %vm1673_vm4 = vcmask 1043456  }
  0x4c   : > { %4538 = vsyncadd (%p6610_p6), [#allocation7], 4294965248  ;;  %804 = vrot.lane.b32.xlu1 %v4763_v0, %s4563_s21  ;;  %748 = vrot.lane.b32.xlu0 %v4763_v0, %s4564_s11  ;;  %v4778_v2 = vcombine.high %v4770_v1, %v4770_v1  ;;  %s4565_s19 = smov 63   ;;  %s4566_s26 = smov 57   ;;  %v4806_v3 = vcombine.high %v4763_v0, %v4763_v0 }
  0x4d   : > { %s4567_s27 = smov 65   ;;  %s4568_s29 = smov 64   ;;  %v417_v5 = vshrl.u32 %v407_v4, 7  ;;  %v1045_v8 = vld [vmem:[#allocation6 + $0x25] ss:$8 sm:$0xf] }
  0x4e   : > { %s4569_s25 = smov 72   ;;  %s4570_s12 = smov 71   ;;  %v4905_v18 = vand.u32 127, %v407_v4  ;;  %v4915_v22 = vld [vmem:[#allocation6 + $0x20] ss:$8 sm:$0xf] }
  0x4f   : > { %s6577_s24 = smov 73   ;;  %s6579_s20 = smov 119   ;;  %v4864_v6 = vsub.s32 0, %v417_v5  ;;  %v4866_v7 = vsub.s32 1, %v417_v5  ;;  %v4895_v14 = vsub.s32 2, %v417_v5  ;;  %v4897_v15 = vsub.s32 3, %v417_v5 }
  0x50   : > { %800 = vrot.lane.b32.xlu1 %v4770_v1, %s4563_s21  ;;  %744 = vrot.lane.b32.xlu0 %v4770_v1, %s4564_s11  ;;  %s4573_s23 = smov 121   ;;  %s6581_s28 = smov 120   ;;  %vm808_vm0 = vcmp.lt.s32.totalorder %v4905_v18, 55  ;;  %v4919_v24 = vld [vmem:[#allocation6 + $0x62] ss:$8 sm:$0xf] }
  0x51   : > { %s4575_s1 = smov 127   ;;  %v1050_v9 = vrot.slane %v1045_v8, %v4864_v6  ;;  %v1054_v10 = vrot.slane %v1045_v8, %v4866_v7  ;;  %s4576_s13 = smov 7   ;;  %v1058_v16 = vrot.slane %v1045_v8, %v4895_v14  ;;  %v1062_v17 = vrot.slane %v1045_v8, %v4897_v15  ;;  %v4925_v27 = vld [vmem:[#allocation6 + $0x7] ss:$8 sm:$0xf] }
  0x52   : > { %v4927_v28 = vld [vmem:[#allocation6 + $0x61] ss:$8 sm:$0xf]  ;;  %v823_v30 = vrot.slane %v4915_v22, %v4866_v7  ;;  %v4931_v31 = vld [vmem:[#allocation6 + $0x5] ss:$8 sm:$0xf]  ;;  %v827_v33 = vrot.slane %v4915_v22, %v4895_v14  ;;  %v1581_v34 = vrot.slane %v4919_v24, %v4864_v6  ;;  %v1585_v35 = vrot.slane %v4919_v24, %v4866_v7 }
  0x53   : > { %v1063_v11 = vcombine.low %v1050_v9, %v1054_v10  ;;  %v1064_v19 = vcombine.low %v1058_v16, %v1062_v17  ;;  %v4933_v32 = vld [vmem:[#allocation6 + $0x47] ss:$8 sm:$0xf]  ;;  %vm752_vm1 = vcmp.lt.s32.totalorder %v4905_v18, 56  ;;  %v767_v36 = vrot.slane %v4925_v27, %v4866_v7  ;;  %p6642_p3 = scmp.ne.s32.totalorder %s6605_s22, 0 }
  0x54   : > { %802 = vrot.lane.b32.xlu1 %v4778_v2, %s4563_s21  ;;  %746 = vrot.lane.b32.xlu0 %v4778_v2, %s4564_s11  ;;  %v771_v37 = vrot.slane %v4925_v27, %v4895_v14  ;;  %v1538_v38 = vrot.slane %v4927_v28, %v4864_v6  ;;  %v1542_v39 = vrot.slane %v4927_v28, %v4866_v7  ;;  %vm652_vm2 = vcmp.lt.s32.totalorder %v4905_v18, 63  ;;  %v4975_v56 = vld [vmem:[#allocation6 + $0x6] ss:$8 sm:$0xf] }
  0x55   : > { %v1067_v12 = vmul.f32 %v1063_v11, %v4770_v1  ;;  %v1068_v23 = vmul.f32 %v1064_v19, %v4763_v0  ;;  %v671_v42 = vrot.slane %v4931_v31, %v4895_v14  ;;  %v1468_v43 = vrot.slane %v4933_v32, %v4866_v7  ;;  %v4977_v57 = vld [vmem:[#allocation6 + $0x60] ss:$8 sm:$0xf] }
  0x56   : > { %vm708_vm3 = vcmp.lt.s32.totalorder %v4905_v18, 57  ;;  %v727_v4 = vrot.slane %v4975_v56, %v4895_v14  ;;  %v1511_v5 = vrot.slane %v4977_v57, %v4866_v7  ;;  %v1507_v19 = vrot.slane %v4977_v57, %v4864_v6 }
  0x57   : > { %1076 = vst [vmem:[#allocation2 + $0xf8] sm:$0xf0] %v1067_v12  ;;  %v1071_v13 = vcombine.low %v1067_v12, %v1067_v12  ;;  %1078 = vst [vmem:[#allocation2 + $0xb8] sm:$0xf0] %v1068_v23  ;;  %v1072_v29 = vcombine.low %v1068_v23, %v1068_v23  ;;  %v723_v12 = vrot.slane %v4975_v56, %v4866_v7  ;;  %vm552_vm5 = vcmp.lt.s32.totalorder %v4905_v18, 65 }
  0x58   : > { %648 = vrot.lane.b32.xlu1 %v4763_v0, %s4565_s19  ;;  %646 = vrot.lane.b32.xlu0 %v4778_v2, %s4565_s19  ;;  %v5002_v23 = vld [vmem:[#allocation6 + $0x3] ss:$8 sm:$0xf]  ;;  %vm608_vm6 = vcmp.lt.s32.totalorder %v4905_v18, 64  ;;  %vm452_vm7 = vcmp.lt.s32.totalorder %v4905_v18, 72  ;;  %vm508_vm8 = vcmp.lt.s32.totalorder %v4905_v18, 71 }
  0x59   : > { %1075 = vst [vmem:[#allocation2 + $0xe8] sm:$0xf0] %v1071_v13  ;;  %1077 = vst [vmem:[#allocation2 + $0x190] sm:$0xf0] %v1072_v29  ;;  %vm409_vm9 = vcmp.lt.s32.totalorder %v4905_v18, 73  ;;  %vm1231_vm10 = vcmp.lt.s32.totalorder %v4905_v18, 119 }
  0x5a   : > { %vm6588_vm11 = vcmp.lt.s32.totalorder %v4905_v18, 121  ;;  %vm6587_vm12 = vcmp.lt.s32.totalorder %v4905_v18, 120  ;;  %vm1087_vm13 = vcmp.lt.s32.totalorder %v4905_v18, 127  ;;  %vm6593_vm14 = vcmp.lt.s32.totalorder %v4905_v18, 7 }
  0x5b   : > { %vm6592_vm15 = vcmp.lt.s32.totalorder %v4905_v18, 1 }
  0x5c   : > { %704 = vrot.lane.b32.xlu1 %v4763_v0, %s4566_s26  ;;  %702 = vrot.lane.b32.xlu0 %v4778_v2, %s4566_s26 }
  0x60   : > { %700 = vrot.lane.b32.xlu1 %v4770_v1, %s4566_s26  ;;  %644 = vrot.lane.b32.xlu0 %v4770_v1, %s4565_s19 }
  0x64   : > { %548 = vrot.lane.b32.xlu1 %v4763_v0, %s4567_s27  ;;  %546 = vrot.lane.b32.xlu0 %v4778_v2, %s4567_s27 }
  0x68   : > { %604 = vrot.lane.b32.xlu1 %v4763_v0, %s4568_s29  ;;  %602 = vrot.lane.b32.xlu0 %v4778_v2, %s4568_s29 }
  0x6c   : > { %806 = vrot.lane.b32.xlu1 %v4806_v3, %s4563_s21  ;;  %750 = vrot.lane.b32.xlu0 %v4806_v3, %s4564_s11 }
  0x70   : > { %600 = vrot.lane.b32.xlu1 %v4770_v1, %s4568_s29  ;;  %544 = vrot.lane.b32.xlu0 %v4770_v1, %s4567_s27 }
  0x74   : > { %448 = vrot.lane.b32.xlu1 %v4763_v0, %s4569_s25  ;;  %446 = vrot.lane.b32.xlu0 %v4778_v2, %s4569_s25 }
  0x78   : > { %504 = vrot.lane.b32.xlu1 %v4763_v0, %s4570_s12  ;;  %502 = vrot.lane.b32.xlu0 %v4778_v2, %s4570_s12 }
  0x7c   : > { %706 = vrot.lane.b32.xlu1 %v4806_v3, %s4566_s26  ;;  %650 = vrot.lane.b32.xlu0 %v4806_v3, %s4565_s19 }
  0x80   : > { %500 = vrot.lane.b32.xlu1 %v4770_v1, %s4570_s12  ;;  %444 = vrot.lane.b32.xlu0 %v4770_v1, %s4569_s25 }
  0x84   : > { %403 = vrot.lane.b32.xlu1 %v4763_v0, %s6577_s24  ;;  %401 = vrot.lane.b32.xlu0 %v4778_v2, %s6577_s24 }
  0x88   : > { %606 = vrot.lane.b32.xlu1 %v4806_v3, %s4568_s29  ;;  %550 = vrot.lane.b32.xlu0 %v4806_v3, %s4567_s27 }
  0x8c   : > { %1227 = vrot.lane.b32.xlu1 %v4763_v0, %s6579_s20  ;;  %1225 = vrot.lane.b32.xlu0 %v4778_v2, %s6579_s20 }
  0x90   : > { %1223 = vrot.lane.b32.xlu1 %v4770_v1, %s6579_s20  ;;  %399 = vrot.lane.b32.xlu0 %v4770_v1, %s6577_s24 }
  0x94   : > { %506 = vrot.lane.b32.xlu1 %v4806_v3, %s4570_s12  ;;  %450 = vrot.lane.b32.xlu0 %v4806_v3, %s4569_s25 }
  0x98   : > { %1127 = vrot.lane.b32.xlu1 %v4763_v0, %s4573_s23  ;;  %1125 = vrot.lane.b32.xlu0 %v4778_v2, %s4573_s23 }
  0x9c   : > { %1183 = vrot.lane.b32.xlu1 %v4763_v0, %s6581_s28  ;;  %1181 = vrot.lane.b32.xlu0 %v4778_v2, %s6581_s28 }
  0xa0   : > { %1179 = vrot.lane.b32.xlu1 %v4770_v1, %s6581_s28  ;;  %1123 = vrot.lane.b32.xlu0 %v4770_v1, %s4573_s23 }
  0xa4   : > { %1081 = vrot.lane.b32.xlu1 %v4778_v2, %s4575_s1  ;;  %405 = vrot.lane.b32.xlu0 %v4806_v3, %s6577_s24  ;;  %s4577_s24 = smov 1  }
  0xa8   : > { %1229 = vrot.lane.b32.xlu1 %v4806_v3, %s6579_s20  ;;  %1083 = vrot.lane.b32.xlu0 %v4763_v0, %s4575_s1  ;;  %s6585_s20 = smov 9  }
  0xac   : > { %944 = vrot.lane.b32.xlu1 %v4770_v1, %s4576_s13  ;;  %1079 = vrot.lane.b32.xlu0 %v4770_v1, %s4575_s1 }
  0xb0   : > { %1000 = vrot.lane.b32.xlu1 %v4770_v1, %s4577_s24  ;;  %946 = vrot.lane.b32.xlu0 %v4778_v2, %s4576_s13 }
  0xb4   : > { %1129 = vrot.lane.b32.xlu1 %v4806_v3, %s4573_s23  ;;  %1002 = vrot.lane.b32.xlu0 %v4778_v2, %s4577_s24 }
  0xb8   : > { %950 = vrot.lane.b32.xlu1 %v4806_v3, %s4576_s13  ;;  %1185 = vrot.lane.b32.xlu0 %v4806_v3, %s6581_s28  ;;  %s6583_s28 = smov 8  }
  0xbc   : > { %844 = vrot.lane.b32.xlu1 %v4770_v1, %s6585_s20  ;;  %1006 = vrot.lane.b32.xlu0 %v4806_v3, %s4577_s24 }
  0xbe   : > { %v4907_v20 = vpop.permute.xlu1 %804  ;;  %v4909_v21 = vpop.permute.xlu0 %748 }
  0xc0   : > { %900 = vrot.lane.b32.xlu1 %v4770_v1, %s6583_s28  ;;  %846 = vrot.lane.b32.xlu0 %v4778_v2, %s6585_s20 }
  0xc2   : > { %v4921_v25 = vpop.permute.xlu1 %800  ;;  %v4923_v26 = vpop.permute.xlu0 %744 }
  0xc4   : > { %1085 = vrot.lane.b32.xlu1 %v4806_v3, %s4575_s1  ;;  %902 = vrot.lane.b32.xlu0 %v4778_v2, %s6583_s28 }
  0xc6   : > { %v803_v40 = vpop.permute.xlu1 %802  ;;  %v747_v41 = vpop.permute.xlu0 %746 }
  0xc7   : > { %v810_v44 = vsel %vm808_vm0, %v803_v40, %v4907_v20  ;;  %v811_v45 = vsel %vm808_vm0, %v4921_v25, %v803_v40  ;;  %v754_v46 = vsel %vm752_vm1, %v747_v41, %v4909_v21  ;;  %v755_v47 = vsel %vm752_vm1, %v4923_v26, %v747_v41 }
  0xc8   : > { %v837_v48 = vmul.f32 %v823_v30, %v811_v45  ;;  %v838_v49 = vmul.f32 %v827_v33, %v810_v44  ;;  %v1598_v50 = vmul.f32 %v1581_v34, %v811_v45  ;;  %v1599_v51 = vmul.f32 %v1585_v35, %v810_v44  ;;  %906 = vrot.lane.b32.xlu1 %v4806_v3, %s6583_s28  ;;  %v5010_v35 = vld [vmem:[#allocation6 + $0x45] ss:$8 sm:$0xf] }
  0xc9   : > { %v781_v52 = vmul.f32 %v767_v36, %v755_v47  ;;  %v782_v53 = vmul.f32 %v771_v37, %v754_v46  ;;  %v1555_v54 = vmul.f32 %v1538_v38, %v755_v47  ;;  %v1556_v55 = vmul.f32 %v1542_v39, %v754_v46  ;;  %850 = vrot.lane.b32.xlu0 %v4806_v3, %s6585_s20 }
  0xca   : > { %841 = vst [vmem:[#allocation2 + $0x188] sm:$0xf] %v837_v48  ;;  %842 = vst [vmem:[#allocation2 + $0x138] sm:$0xf] %v838_v49  ;;  %v4979_v58 = vpop.permute.xlu1 %648  ;;  %v647_v59 = vpop.permute.xlu0 %646  ;;  %v667_v33 = vrot.slane %v4931_v31, %v4866_v7  ;;  %v1464_v34 = vrot.slane %v4933_v32, %v4864_v6  ;;  %v571_v40 = vrot.slane %v5002_v23, %v4895_v14  ;;  %v4580_v47 = vmov 0.0  }
  0xcb   : > { %1602 = vst [vmem:[#allocation2 + $0x58] sm:$0xf] %v1598_v50  ;;  %1603 = vst [vmem:[#allocation2 + $0xf0] sm:$0xf] %v1599_v51  ;;  %v789_v60 = vrot.slane %v781_v52, 4  ;;  %v790_v61 = vrot.slane %v782_v53, 4  ;;  %v654_v1 = vsel %vm652_vm2, %v647_v59, %v4979_v58  ;;  %1750 = vmatprep.mubr.f32.mxu0 %v4580_v47  ;;  %1821 = vmatprep.mubr.f32.mxu1 %v4580_v47 }
  0xcc   : > { %v1563_v62 = vrot.slane %v1555_v54, 4  ;;  %v1564_v63 = vrot.slane %v1556_v55, 4  ;;  %1004 = vrot.lane.b32.xlu1 %v4763_v0, %s4577_s24  ;;  %v682_v8 = vmul.f32 %v671_v42, %v654_v1  ;;  %v1482_v9 = vmul.f32 %v1468_v43, %v654_v1  ;;  %v5032_v48 = vld [vmem:[#allocation6 + $0x4] ss:$8 sm:$0xf] }
  0xcd   : > { %797 = vst [vmem:[#allocation2 + $0x150] sm:$0xf0] %v789_v60  ;;  %798 = vst [vmem:[#allocation2 + $0x108] sm:$0xf0] %v790_v61  ;;  %948 = vrot.lane.b32.xlu0 %v4763_v0, %s4576_s13  ;;  %v1394_v42 = vrot.slane %v5010_v35, %v4866_v7  ;;  %v627_v60 = vrot.slane %v5032_v48, %v4895_v14 }
  0xce   : > { %1571 = vst [vmem:[#allocation2 + $0x128] sm:$0xf0] %v1563_v62  ;;  %1572 = vst [vmem:[#allocation2 + $0x38] sm:$0xf0] %v1564_v63  ;;  %v4993_v10 = vpop.permute.xlu1 %704  ;;  %v703_v11 = vpop.permute.xlu0 %702  ;;  %v690_v13 = vrot.slane %v682_v8, 4  ;;  %v1490_v16 = vrot.slane %v1482_v9, 4  ;;  %v819_v8 = vrot.slane %v4915_v22, %v4864_v6 }
  0xcf   : > { %v710_v17 = vsel %vm708_vm3, %v703_v11, %v4993_v10  ;;  %v5034_v49 = vld [vmem:[#allocation6 + $0x46] ss:$8 sm:$0xf] }
  0xd0   : > { %v738_v29 = vmul.f32 %v727_v4, %v710_v17  ;;  %v1525_v30 = vmul.f32 %v1511_v5, %v710_v17  ;;  %904 = vrot.lane.b32.xlu1 %v4763_v0, %s6583_s28  ;;  %698 = vst [vmem:[#allocation2 + $0x118] sm:$0xf0] %v690_v13  ;;  %1498 = vst [vmem:[#allocation2 + $0x78] sm:$0xf0] %v1490_v16  ;;  %v1437_v61 = vrot.slane %v5034_v49, %v4866_v7  ;;  %v1663_v13 = vld [vmem:[%s6560_s3] sm:$0xf] }
  0xd1   : > { %848 = vrot.lane.b32.xlu0 %v4763_v0, %s6585_s20 }
  0xd2   : > { %v1660_v36 = vld [vmem:[#allocation2 + $0xf0] sm:$0xf]  ;;  %v1659_v37 = vld [vmem:[#allocation2 + $0x58] sm:$0xf]  ;;  %742 = vst [vmem:[#allocation2 + $0x108] sm:$0xf] %v738_v29  ;;  %v5015_v38 = vpop.permute.xlu1 %700  ;;  %v5017_v39 = vpop.permute.xlu0 %644 }
  0xd3   : > { %1529 = vst [vmem:[#allocation2 + $0x38] sm:$0xf] %v1525_v30  ;;  %4247 = vmatprep.subr.msk.mxu0 %vm1673_vm4, %v1660_v36  ;;  %v711_v41 = vsel %vm708_vm3, %v5015_v38, %v703_v11  ;;  %v655_v0 = vsel %vm652_vm2, %v5017_v39, %v647_v59  ;;  %v831_v11 = vrot.slane %v4915_v22, %v4897_v15  ;;  %v4581_v29 = vmov 0  }
  0xd4   : > { %4248 = vmatpush1.msk.msra.mxu0 %vm1673_vm4, %v1659_v37  ;;  %v737_v43 = vmul.f32 %v723_v12, %v711_v41  ;;  %v1524_v44 = vmul.f32 %v1507_v19, %v711_v41  ;;  %v681_v45 = vmul.f32 %v667_v33, %v655_v0  ;;  %v1481_v46 = vmul.f32 %v1464_v34, %v655_v0 }
  0xd5   : > { %v1589_v12 = vrot.slane %v4919_v24, %v4895_v14  ;;  %v1593_v19 = vrot.slane %v4919_v24, %v4897_v15  ;;  %4357 = vset.pattern.permute.xlu0 %v4581_v29  ;;  %4358 = vset.pattern.permute.xlu1 %v4581_v29  ;;  %v763_v22 = vrot.slane %v4925_v27, %v4864_v6 }
  0xd6   : > { %741 = vst [vmem:[#allocation2 + $0x150] sm:$0xf] %v737_v43  ;;  %1528 = vst [vmem:[#allocation2 + $0x128] sm:$0xf] %v1524_v44  ;;  %v689_v50 = vrot.slane %v681_v45, 4  ;;  %v1489_v51 = vrot.slane %v1481_v46, 4  ;;  %v5037_v52 = vpop.permute.xlu1 %548  ;;  %v5039_v53 = vpop.permute.xlu0 %546  ;;  %v775_v33 = vrot.slane %v4925_v27, %v4897_v15  ;;  %v1546_v34 = vrot.slane %v4927_v28, %v4895_v14  ;;  %1666 = vperm.xlu0 %4357, %v1663_v13  }
  0xd7   : > { %v554_v54 = vsel %vm552_vm5, %v5039_v53, %v5037_v52  ;;  %v1550_v36 = vrot.slane %v4927_v28, %v4897_v15  ;;  %v1433_v41 = vrot.slane %v5034_v49, %v4864_v6  ;;  %v567_v27 = vrot.slane %v5002_v23, %v4866_v7  ;;  %v5114_v13 = vld [vmem:[#allocation6 + $0x2] ss:$8 sm:$0xf] }
  0xd8   : > { %697 = vst [vmem:[#allocation2 + $0x110] sm:$0xf0] %v689_v50  ;;  %1497 = vst [vmem:[#allocation2 + $0x70] sm:$0xf0] %v1489_v51  ;;  %v582_v55 = vmul.f32 %v571_v40, %v554_v54  ;;  %v1408_v59 = vmul.f32 %v1394_v42, %v554_v54  ;;  %v623_v40 = vrot.slane %v5032_v48, %v4866_v7 }
  0xd9   : > { %v1390_v0 = vrot.slane %v5010_v35, %v4864_v6 }
  0xda   : > { %v1656_v62 = vld [vmem:[#allocation2 + $0x38] sm:$0xff]  ;;  %v590_v63 = vrot.slane %v582_v55, 4  ;;  %v1416_v1 = vrot.slane %v1408_v59, 4  ;;  %v5050_v4 = vpop.permute.xlu1 %604  ;;  %v603_v5 = vpop.permute.xlu0 %602 }
  0xdb   : > { %1692 = vmatprep.subr.mxu0 %v1656_v62  ;;  %v610_v9 = vsel %vm608_vm6, %v603_v5, %v5050_v4 }
  0xdc   : > { %598 = vst [vmem:[#allocation2 + $0x130] sm:$0xf0] %v590_v63  ;;  %1424 = vst [vmem:[#allocation2 + $0x100] sm:$0xf0] %v1416_v1  ;;  %v638_v16 = vmul.f32 %v627_v60, %v610_v9  ;;  %v1451_v17 = vmul.f32 %v1437_v61, %v610_v9 }
  0xdd   : > { %v1655_v30 = vld [vmem:[#allocation2 + $0x128] sm:$0xff] }
  0xde   : > { %642 = vst [vmem:[#allocation2 + $0x118] sm:$0xf] %v638_v16  ;;  %1455 = vst [vmem:[#allocation2 + $0x78] sm:$0xf] %v1451_v17  ;;  %v807_v24 = vpop.permute.xlu1 %806  ;;  %1693 = vmatpush1.msra.mxu0 %v1655_v30  ;;  %v751_v37 = vpop.permute.xlu0 %750 }
  0xdf   : > { %v809_v28 = vsel %vm808_vm0, %v4907_v20, %v807_v24  ;;  %v812_v42 = vsel %vm808_vm0, %v807_v24, %v4921_v25  ;;  %v753_v43 = vsel %vm752_vm1, %v4909_v21, %v751_v37  ;;  %v756_v44 = vsel %vm752_vm1, %v751_v37, %v4923_v26  ;;  %v5094_v60 = vld [vmem:[#allocation6 + $0x1] ss:$8 sm:$0xf]  ;;  %v5096_v61 = vld [vmem:[#allocation6 + $0x43] ss:$8 sm:$0xf] }
  0xe0   : > { %v836_v45 = vmul.f32 %v819_v8, %v812_v42  ;;  %v839_v46 = vmul.f32 %v831_v11, %v809_v28  ;;  %v1600_v50 = vmul.f32 %v1589_v12, %v809_v28  ;;  %v1601_v51 = vmul.f32 %v1593_v19, %v812_v42  ;;  %v5116_v30 = vld [vmem:[#allocation6 + $0x44] ss:$8 sm:$0xf] }
  0xe1   : > { %v780_v54 = vmul.f32 %v763_v22, %v756_v44  ;;  %v783_v55 = vmul.f32 %v775_v33, %v753_v43  ;;  %v1557_v59 = vmul.f32 %v1546_v34, %v753_v43  ;;  %v1558_v20 = vmul.f32 %v1550_v36, %v756_v44 }
  0xe2   : > { %840 = vst [vmem:[#allocation2 + $0xe0] sm:$0xf] %v836_v45  ;;  %843 = vst [vmem:[#allocation2 + $0x140] sm:$0xf] %v839_v46  ;;  %v5098_v21 = vpop.permute.xlu1 %600  ;;  %v5100_v25 = vpop.permute.xlu0 %544  ;;  %v471_v11 = vrot.slane %v5094_v60, %v4895_v14  ;;  %v1320_v12 = vrot.slane %v5096_v61, %v4866_v7  ;;  %v719_v46 = vrot.slane %v4975_v56, %v4864_v6 }
  0xe3   : > { %1604 = vst [vmem:[#allocation2 + $0x30] sm:$0xf] %v1600_v50  ;;  %1605 = vst [vmem:[#allocation2 + $0x198] sm:$0xf] %v1601_v51  ;;  %v788_v26 = vrot.slane %v780_v54, 4  ;;  %v791_v62 = vrot.slane %v783_v55, 4  ;;  %v611_v8 = vsel %vm608_vm6, %v5098_v21, %v603_v5  ;;  %v555_v9 = vsel %vm552_vm5, %v5100_v25, %v5039_v53 }
  0xe4   : > { %v1565_v63 = vrot.slane %v1557_v59, 4  ;;  %v1566_v1 = vrot.slane %v1558_v20, 4  ;;  %v637_v16 = vmul.f32 %v623_v40, %v611_v8  ;;  %v1450_v17 = vmul.f32 %v1433_v41, %v611_v8 }
  0xe5   : > { %796 = vst [vmem:[#allocation2 + $0x120] sm:$0xf0] %v788_v26  ;;  %799 = vst [vmem:[#allocation2 + $0x60] sm:$0xf0] %v791_v62  ;;  %v581_v5 = vmul.f32 %v567_v27, %v555_v9  ;;  %v1407_v19 = vmul.f32 %v1390_v0, %v555_v9  ;;  %v1652_v29 = vld [vmem:[#allocation2 + $0x78] sm:$0xff]  ;;  %v527_v40 = vrot.slane %v5114_v13, %v4895_v14 }
  0xe6   : > { %1573 = vst [vmem:[#allocation2 + $0x88] sm:$0xf0] %v1565_v63  ;;  %1574 = vst [vmem:[#allocation2 + $0x170] sm:$0xf0] %v1566_v1  ;;  %v5118_v53 = vpop.permute.xlu1 %448  ;;  %1694 = vmatprep.subr.mxu0 %v1652_v29  ;;  %v5120_v22 = vpop.permute.xlu0 %446  ;;  %v1363_v41 = vrot.slane %v5116_v30, %v4866_v7  ;;  %v731_v50 = vrot.slane %v4975_v56, %v4897_v15  ;;  %v1515_v55 = vrot.slane %v4977_v57, %v4895_v14 }
  0xe7   : > { %641 = vst [vmem:[#allocation2 + $0x110] sm:$0xf] %v637_v16  ;;  %1454 = vst [vmem:[#allocation2 + $0x70] sm:$0xf] %v1450_v17  ;;  %v589_v33 = vrot.slane %v581_v5, 4  ;;  %v1415_v34 = vrot.slane %v1407_v19, 4  ;;  %v454_v36 = vsel %vm452_vm7, %v5120_v22, %v5118_v53  ;;  %v1519_v59 = vrot.slane %v4977_v57, %v4897_v15 }
  0xe8   : > { %v482_v24 = vmul.f32 %v471_v11, %v454_v36  ;;  %v1334_v37 = vmul.f32 %v1320_v12, %v454_v36  ;;  %v663_v20 = vrot.slane %v4931_v31, %v4864_v6  ;;  %v675_v26 = vrot.slane %v4931_v31, %v4897_v15 }
  0xe9   : > { %597 = vst [vmem:[#allocation2 + $0x168] sm:$0xf0] %v589_v33  ;;  %1423 = vst [vmem:[#allocation2 + $0x10] sm:$0xf0] %v1415_v34  ;;  %v1472_v62 = vrot.slane %v4933_v32, %v4895_v14  ;;  %v1476_v56 = vrot.slane %v4933_v32, %v4897_v15  ;;  %v523_v57 = vrot.slane %v5114_v13, %v4866_v7 }
  0xea   : > { %v1662_v27 = vld [vmem:[#allocation2 + $0x198] sm:$0xf]  ;;  %v1661_v0 = vld [vmem:[#allocation2 + $0x30] sm:$0xf]  ;;  %v490_v28 = vrot.slane %v482_v24, 4  ;;  %v1342_v42 = vrot.slane %v1334_v37, 4  ;;  %v5132_v43 = vpop.permute.xlu1 %504  ;;  %v503_v44 = vpop.permute.xlu0 %502  ;;  %v1359_v9 = vrot.slane %v5116_v30, %v4864_v6  ;;  %v467_v31 = vrot.slane %v5094_v60, %v4866_v7 }
  0xeb   : > { %4250 = vmatprep.subr.msk.mxu1 %vm1673_vm4, %v1662_v27  ;;  %v510_v45 = vsel %vm508_vm8, %v503_v44, %v5132_v43  ;;  %v1316_v11 = vrot.slane %v5096_v61, %v4864_v6  ;;  %v5174_v37 = vld [vmem:[#allocation6] ss:$8 sm:$0xf] }
  0xec   : > { %4251 = vmatpush1.msk.msra.mxu1 %vm1673_vm4, %v1661_v0  ;;  %498 = vst [vmem:[#allocation2 + $0xd8] sm:$0xf0] %v490_v28  ;;  %1350 = vst [vmem:[#allocation2 + $0xa8] sm:$0xf0] %v1342_v42  ;;  %v538_v51 = vmul.f32 %v527_v40, %v510_v45  ;;  %v1377_v54 = vmul.f32 %v1363_v41, %v510_v45  ;;  %v427_v45 = vrot.slane %v5174_v37, %v4895_v14 }
  0xee   : > { %542 = vst [vmem:[#allocation2 + $0x130] sm:$0xf] %v538_v51  ;;  %1381 = vst [vmem:[#allocation2 + $0x100] sm:$0xf] %v1377_v54  ;;  %v707_v63 = vpop.permute.xlu1 %706  ;;  %v1651_v1 = vld [vmem:[#allocation2 + $0x70] sm:$0xff]  ;;  %v651_v8 = vpop.permute.xlu0 %650 }
  0xef   : > { %v709_v32 = vsel %vm708_vm3, %v4993_v10, %v707_v63  ;;  %v712_v12 = vsel %vm708_vm3, %v707_v63, %v5015_v38  ;;  %1695 = vmatpush1.msra.mxu0 %v1651_v1  ;;  %v653_v16 = vsel %vm652_vm2, %v4979_v58, %v651_v8  ;;  %v656_v17 = vsel %vm652_vm2, %v651_v8, %v5017_v39  ;;  %v5176_v38 = vld [vmem:[#allocation6 + $0x42] ss:$8 sm:$0xf]  ;;  %v5206_v1 = vld [vmem:[#allocation6 + $0x41] ss:$8 sm:$0xf] }
  0xf0   : > { %v736_v5 = vmul.f32 %v719_v46, %v712_v12  ;;  %v739_v19 = vmul.f32 %v731_v50, %v709_v32  ;;  %v1526_v29 = vmul.f32 %v1515_v55, %v709_v32  ;;  %v1527_v33 = vmul.f32 %v1519_v59, %v712_v12 }
  0xf1   : > { %v680_v34 = vmul.f32 %v663_v20, %v656_v17  ;;  %v683_v36 = vmul.f32 %v675_v26, %v653_v16  ;;  %v1483_v10 = vmul.f32 %v1472_v62, %v653_v16  ;;  %v1484_v24 = vmul.f32 %v1476_v56, %v656_v17 }
  0xf2   : > { %740 = vst [vmem:[#allocation2 + $0x120] sm:$0xf] %v736_v5  ;;  %743 = vst [vmem:[#allocation2 + $0x60] sm:$0xf] %v739_v19  ;;  %v5178_v58 = vpop.permute.xlu1 %500  ;;  %v5180_v40 = vpop.permute.xlu0 %444  ;;  %v1289_v46 = vrot.slane %v5176_v38, %v4866_v7  ;;  %v631_v63 = vrot.slane %v5032_v48, %v4897_v15  ;;  %v563_v32 = vrot.slane %v5002_v23, %v4864_v6 }
  0xf3   : > { %1530 = vst [vmem:[#allocation2 + $0x88] sm:$0xf] %v1526_v29  ;;  %1531 = vst [vmem:[#allocation2 + $0x170] sm:$0xf] %v1527_v33  ;;  %v688_v39 = vrot.slane %v680_v34, 4  ;;  %v691_v41 = vrot.slane %v683_v36, 4  ;;  %v511_v28 = vsel %vm508_vm8, %v5178_v58, %v503_v44  ;;  %v455_v42 = vsel %vm452_vm7, %v5180_v40, %v5120_v22 }
  0xf4   : > { %v1491_v27 = vrot.slane %v1483_v10, 4  ;;  %v1492_v0 = vrot.slane %v1484_v24, 4  ;;  %v537_v50 = vmul.f32 %v523_v57, %v511_v28  ;;  %v1376_v51 = vmul.f32 %v1359_v9, %v511_v28 }
  0xf5   : > { %696 = vst [vmem:[#allocation2 + $0x180] sm:$0xf0] %v688_v39  ;;  %699 = vst [vmem:[#allocation2 + $0x98] sm:$0xf0] %v691_v41  ;;  %v481_v54 = vmul.f32 %v467_v31, %v455_v42  ;;  %v1333_v55 = vmul.f32 %v1316_v11, %v455_v42  ;;  %v1648_v44 = vld [vmem:[#allocation2 + $0x100] sm:$0xff]  ;;  %v619_v22 = vrot.slane %v5032_v48, %v4864_v6 }
  0xf6   : > { %1499 = vst [vmem:[#allocation2 + $0xa0] sm:$0xf0] %v1491_v27  ;;  %1500 = vst [vmem:[#allocation2 + $0x158] sm:$0xf0] %v1492_v0  ;;  %v5194_v59 = vpop.permute.xlu1 %403  ;;  %1696 = vmatprep.subr.mxu0 %v1648_v44  ;;  %v5196_v20 = vpop.permute.xlu0 %401  ;;  %v1441_v9 = vrot.slane %v5034_v49, %v4895_v14  ;;  %v1445_v31 = vrot.slane %v5034_v49, %v4897_v15  ;;  %v575_v12 = vrot.slane %v5002_v23, %v4897_v15 }
  0xf7   : > { %541 = vst [vmem:[#allocation2 + $0x168] sm:$0xf] %v537_v50  ;;  %1380 = vst [vmem:[#allocation2 + $0x10] sm:$0xf] %v1376_v51  ;;  %v489_v26 = vrot.slane %v481_v54, 4  ;;  %v1341_v62 = vrot.slane %v1333_v55, 4  ;;  %v411_v56 = vsel %vm409_vm9, %v5196_v20, %v5194_v59  ;;  %v1398_v48 = vrot.slane %v5010_v35, %v4895_v14 }
  0xf8   : > { %v438_v8 = vmul.f32 %v427_v45, %v411_v56  ;;  %v1303_v57 = vmul.f32 %v1289_v46, %v411_v56  ;;  %v1402_v16 = vrot.slane %v5010_v35, %v4897_v15  ;;  %v1246_v19 = vrot.slane %v5206_v1, %v4866_v7 }
  0xf9   : > { %497 = vst [vmem:[#allocation2 + $0x1b0] sm:$0xf0] %v489_v26  ;;  %1349 = vst [vmem:[#allocation2 + $0x40] sm:$0xf0] %v1341_v62  ;;  %v1242_v50 = vrot.slane %v5206_v1, %v4864_v6  ;;  %v423_v51 = vrot.slane %v5174_v37, %v4866_v7  ;;  %v1285_v54 = vrot.slane %v5176_v38, %v4864_v6 }
  0xfa   : > { %v1658_v11 = vld [vmem:[#allocation2 + $0x170] sm:$0xff]  ;;  %v1657_v17 = vld [vmem:[#allocation2 + $0x88] sm:$0xff]  ;;  %442 = vst [vmem:[#allocation2 + $0xd8] sm:$0xf] %v438_v8  ;;  %1307 = vst [vmem:[#allocation2 + $0xa8] sm:$0xf] %v1303_v57  ;;  %v607_v5 = vpop.permute.xlu1 %606  ;;  %v551_v49 = vpop.permute.xlu0 %550  ;;  %v519_v62 = vrot.slane %v5114_v13, %v4864_v6  ;;  %v531_v56 = vrot.slane %v5114_v13, %v4897_v15  ;;  %v1371_v13 = vrot.slane %v5116_v30, %v4897_v15 }
  0xfb   : > { %1763 = vmatprep.subr.mxu1 %v1658_v11  ;;  %v609_v23 = vsel %vm608_vm6, %v5050_v4, %v607_v5  ;;  %v612_v29 = vsel %vm608_vm6, %v607_v5, %v5098_v21  ;;  %v553_v35 = vsel %vm552_vm5, %v5037_v52, %v551_v49  ;;  %v556_v33 = vsel %vm552_vm5, %v551_v49, %v5100_v25 }
  0xfc   : > { %1764 = vmatpush1.msra.mxu1 %v1657_v17  ;;  %v636_v34 = vmul.f32 %v619_v22, %v612_v29  ;;  %v639_v36 = vmul.f32 %v631_v63, %v609_v23  ;;  %v1452_v10 = vmul.f32 %v1441_v9, %v609_v23  ;;  %v1453_v24 = vmul.f32 %v1445_v31, %v612_v29  ;;  %v5263_v31 = vld [vmem:[#allocation6 + $0x27] ss:$8 sm:$0xf] }
  0xfd   : > { %v580_v39 = vmul.f32 %v563_v32, %v556_v33  ;;  %v583_v41 = vmul.f32 %v575_v12, %v553_v35  ;;  %v1409_v4 = vmul.f32 %v1398_v48, %v553_v35  ;;  %v1410_v27 = vmul.f32 %v1402_v16, %v556_v33 }
  0xfe   : > { %640 = vst [vmem:[#allocation2 + $0x180] sm:$0xf] %v636_v34  ;;  %643 = vst [vmem:[#allocation2 + $0x98] sm:$0xf] %v639_v36  ;;  %v5235_v21 = vpop.permute.xlu1 %1227  ;;  %v1647_v52 = vld [vmem:[#allocation2 + $0x10] sm:$0xff]  ;;  %v1226_v0 = vpop.permute.xlu0 %1225  ;;  %v1367_v9 = vrot.slane %v5116_v30, %v4895_v14  ;;  %v463_v16 = vrot.slane %v5094_v60, %v4864_v6  ;;  %v475_v17 = vrot.slane %v5094_v60, %v4897_v15 }
  0xff   : > { %1456 = vst [vmem:[#allocation2 + $0xa0] sm:$0xf] %v1452_v10  ;;  %1457 = vst [vmem:[#allocation2 + $0x158] sm:$0xf] %v1453_v24  ;;  %v588_v28 = vrot.slane %v580_v39, 4  ;;  %v591_v42 = vrot.slane %v583_v41, 4  ;;  %1697 = vmatpush1.msra.mxu0 %v1647_v52  ;;  %v1233_v46 = vsel %vm1231_vm10, %v1226_v0, %v5235_v21  ;;  %v1328_v5 = vrot.slane %v5096_v61, %v4897_v15 }
 0x100   : > { %v1417_v25 = vrot.slane %v1409_v4, 4  ;;  %v1418_v45 = vrot.slane %v1410_v27, 4  ;;  %v1260_v55 = vmul.f32 %v1246_v19, %v1233_v46  ;;  %v1146_v29 = vrot.slane %v5263_v31, %v4866_v7  ;;  %v5290_v27 = vld [vmem:[#allocation6 + $0x40] ss:$8 sm:$0xf] }
 0x101   : > { %596 = vst [vmem:[#allocation2 + $0x50] sm:$0xf0] %v588_v28  ;;  %599 = vst [vmem:[#allocation2 + $0x48] sm:$0xf0] %v591_v42  ;;  %v1644_v44 = vld [vmem:[#allocation2 + $0xa8] sm:$0xff] }
 0x102   : > { %1425 = vst [vmem:[#allocation2 + $0x160] sm:$0xf0] %v1417_v25  ;;  %1426 = vst [vmem:[#allocation2 + $0x20] sm:$0xf0] %v1418_v45  ;;  %v5246_v22 = vpop.permute.xlu1 %1223  ;;  %1698 = vmatprep.subr.mxu0 %v1644_v44  ;;  %v5248_v26 = vpop.permute.xlu0 %399  ;;  %v1268_v63 = vrot.slane %v1260_v55, 4  ;;  %v1202_v25 = vrot.slane %v5290_v27, %v4866_v7 }
 0x103   : > { %v1234_v8 = vsel %vm1231_vm10, %v5246_v22, %v1226_v0  ;;  %v412_v57 = vsel %vm409_vm9, %v5248_v26, %v5196_v20  ;;  %v1324_v20 = vrot.slane %v5096_v61, %v4895_v14 }
 0x104   : > { %v1259_v11 = vmul.f32 %v1242_v50, %v1234_v8  ;;  %v437_v32 = vmul.f32 %v423_v51, %v412_v57  ;;  %v1302_v12 = vmul.f32 %v1285_v54, %v412_v57  ;;  %1276 = vst [vmem:[#allocation2 + $0x68] sm:$0xf0] %v1268_v63 }
 0x106   : > { %v1654_v48 = vld [vmem:[#allocation2 + $0x158] sm:$0xff]  ;;  %v1653_v49 = vld [vmem:[#allocation2 + $0xa0] sm:$0xff]  ;;  %v1267_v19 = vrot.slane %v1259_v11, 4  ;;  %441 = vst [vmem:[#allocation2 + $0x1b0] sm:$0xf] %v437_v32  ;;  %v507_v23 = vpop.permute.xlu1 %506  ;;  %v451_v30 = vpop.permute.xlu0 %450 }
 0x107   : > { %1306 = vst [vmem:[#allocation2 + $0x40] sm:$0xf] %v1302_v12  ;;  %1765 = vmatprep.subr.mxu1 %v1654_v48  ;;  %v509_v60 = vsel %vm508_vm8, %v5132_v43, %v507_v23  ;;  %v512_v61 = vsel %vm508_vm8, %v507_v23, %v5178_v58  ;;  %v453_v35 = vsel %vm452_vm7, %v5118_v53, %v451_v30 }
 0x108   : > { %v456_v33 = vsel %vm452_vm7, %v451_v30, %v5180_v40  ;;  %1766 = vmatpush1.msra.mxu1 %v1653_v49  ;;  %1275 = vst [vmem:[#allocation2] sm:$0xf0] %v1267_v19  ;;  %v536_v34 = vmul.f32 %v519_v62, %v512_v61  ;;  %v539_v36 = vmul.f32 %v531_v56, %v509_v60 }
 0x109   : > { %v1378_v10 = vmul.f32 %v1367_v9, %v509_v60  ;;  %v1379_v24 = vmul.f32 %v1371_v13, %v512_v61  ;;  %v480_v39 = vmul.f32 %v463_v16, %v456_v33  ;;  %v483_v43 = vmul.f32 %v475_v17, %v453_v35 }
 0x10a   : > { %v1335_v41 = vmul.f32 %v1324_v20, %v453_v35  ;;  %v1336_v4 = vmul.f32 %v1328_v5, %v456_v33  ;;  %540 = vst [vmem:[#allocation2 + $0x50] sm:$0xf] %v536_v34  ;;  %543 = vst [vmem:[#allocation2 + $0x48] sm:$0xf] %v539_v36  ;;  %v5292_v53 = vpop.permute.xlu1 %1127  ;;  %v1126_v58 = vpop.permute.xlu0 %1125  ;;  %v1198_v62 = vrot.slane %v5290_v27, %v4864_v6 }
 0x10b   : > { %1382 = vst [vmem:[#allocation2 + $0x160] sm:$0xf] %v1378_v10  ;;  %1383 = vst [vmem:[#allocation2 + $0x20] sm:$0xf] %v1379_v24  ;;  %v488_v40 = vrot.slane %v480_v39, 4  ;;  %v491_v52 = vrot.slane %v483_v43, 4  ;;  %v1133_v42 = vsel %vm6588_vm11, %v1126_v58, %v5292_v53  ;;  %v1142_v56 = vrot.slane %v5263_v31, %v4864_v6 }
 0x10c   : > { %v1343_v0 = vrot.slane %v1335_v41, 4  ;;  %v1344_v28 = vrot.slane %v1336_v4, 4  ;;  %v1160_v45 = vmul.f32 %v1146_v29, %v1133_v42  ;;  %v419_v12 = vrot.slane %v5174_v37, %v4864_v6  ;;  %v5327_v5 = vld [vmem:[#allocation6 + $0x26] ss:$8 sm:$0xf] }
 0x10d   : > { %496 = vst [vmem:[#allocation2 + $0xb0] sm:$0xf0] %v488_v40  ;;  %499 = vst [vmem:[#allocation2 + $0x18] sm:$0xf0] %v491_v52  ;;  %v431_v13 = vrot.slane %v5174_v37, %v4897_v15  ;;  %v1293_v17 = vrot.slane %v5176_v38, %v4895_v14  ;;  %v1297_v20 = vrot.slane %v5176_v38, %v4897_v15 }
 0x10e   : > { %1351 = vst [vmem:[#allocation2 + $0xd0] sm:$0xf0] %v1343_v0  ;;  %1352 = vst [vmem:[#allocation2 + $0x1a0] sm:$0xf0] %v1344_v28  ;;  %v1643_v46 = vld [vmem:[#allocation2 + $0x40] sm:$0xff]  ;;  %v5300_v50 = vpop.permute.xlu1 %1183  ;;  %v1182_v51 = vpop.permute.xlu0 %1181  ;;  %v1168_v54 = vrot.slane %v1160_v45, 4  ;;  %v1250_v30 = vrot.slane %v5206_v1, %v4895_v14  ;;  %v1254_v37 = vrot.slane %v5206_v1, %v4897_v15  ;;  %v1102_v60 = vrot.slane %v5327_v5, %v4866_v7 }
 0x10f   : > { %1699 = vmatpush1.msra.mxu0 %v1643_v46  ;;  %v1189_v55 = vsel %vm6587_vm12, %v1182_v51, %v5300_v50  ;;  %v1098_v4 = vrot.slane %v5327_v5, %v4864_v6  ;;  %v5355_v40 = vld [vmem:[#allocation6 + $0x23] ss:$8 sm:$0xf] }
 0x110   : > { %v1216_v44 = vmul.f32 %v1202_v25, %v1189_v55  ;;  %1176 = vst [vmem:[#allocation2 + $0xc0] sm:$0xf0] %v1168_v54  ;;  %v967_v25 = vrot.slane %v5355_v40, %v4866_v7 }
 0x112   : > { %v1650_v63 = vld [vmem:[#allocation2 + $0x20] sm:$0xff]  ;;  %1220 = vst [vmem:[#allocation2 + $0x68] sm:$0xf] %v1216_v44  ;;  %v5309_v57 = vpop.permute.xlu1 %1179  ;;  %v5311_v9 = vpop.permute.xlu0 %1123 }
 0x113   : > { %v1649_v8 = vld [vmem:[#allocation2 + $0x160] sm:$0xff]  ;;  %1767 = vmatprep.subr.mxu1 %v1650_v63  ;;  %v1190_v11 = vsel %vm6587_vm12, %v5309_v57, %v1182_v51  ;;  %v1134_v32 = vsel %vm6588_vm11, %v5311_v9, %v1126_v58  ;;  %v1154_v63 = vrot.slane %v5263_v31, %v4897_v15 }
 0x114   : > { %1768 = vmatpush1.msra.mxu1 %v1649_v8  ;;  %v1215_v48 = vmul.f32 %v1198_v62, %v1190_v11  ;;  %v1159_v16 = vmul.f32 %v1142_v56, %v1134_v32  ;;  %v5365_v51 = vld [vmem:[#allocation6 + $0x24] ss:$8 sm:$0xf]  ;;  %v1150_v62 = vrot.slane %v5263_v31, %v4895_v14 }
 0x115   : > { %v1023_v8 = vrot.slane %v5365_v51, %v4866_v7 }
 0x116   : > { %1219 = vst [vmem:[#allocation2] sm:$0xf] %v1215_v48  ;;  %v1167_v49 = vrot.slane %v1159_v16, 4  ;;  %v1082_v19 = vpop.permute.xlu1 %1081  ;;  %v406_v23 = vpop.permute.xlu0 %405  ;;  %v963_v48 = vrot.slane %v5355_v40, %v4864_v6 }
 0x117   : > { %v410_v29 = vsel %vm409_vm9, %v5194_v59, %v406_v23  ;;  %v413_v38 = vsel %vm409_vm9, %v406_v23, %v5248_v26 }
 0x118   : > { %1175 = vst [vmem:[#allocation2 + $0x90] sm:$0xf0] %v1167_v49  ;;  %v436_v61 = vmul.f32 %v419_v12, %v413_v38  ;;  %v439_v35 = vmul.f32 %v431_v13, %v410_v29  ;;  %v1304_v33 = vmul.f32 %v1293_v17, %v410_v29  ;;  %v1305_v34 = vmul.f32 %v1297_v20, %v413_v38 }
 0x119   : > { %v1640_v36 = vld [vmem:[#allocation2 + $0x68] sm:$0xff]  ;;  %v1206_v20 = vrot.slane %v5290_v27, %v4895_v14 }
 0x11a   : > { %440 = vst [vmem:[#allocation2 + $0xb0] sm:$0xf] %v436_v61  ;;  %443 = vst [vmem:[#allocation2 + $0x18] sm:$0xf] %v439_v35  ;;  %v1230_v59 = vpop.permute.xlu1 %1229  ;;  %1700 = vmatprep.subr.mxu0 %v1640_v36  ;;  %v5342_v1 = vpop.permute.xlu0 %1083  ;;  %v1019_v36 = vrot.slane %v5365_v51, %v4864_v6 }
 0x11b   : > { %1308 = vst [vmem:[#allocation2 + $0xd0] sm:$0xf] %v1304_v33  ;;  %1309 = vst [vmem:[#allocation2 + $0x1a0] sm:$0xf] %v1305_v34  ;;  %v1232_v26 = vsel %vm1231_vm10, %v5235_v21, %v1230_v59  ;;  %v1235_v10 = vsel %vm1231_vm10, %v1230_v59, %v5246_v22  ;;  %v1089_v24 = vsel %vm1087_vm13, %v1082_v19, %v5342_v1 }
 0x11c   : > { %v1261_v39 = vmul.f32 %v1250_v30, %v1232_v26  ;;  %v1262_v43 = vmul.f32 %v1254_v37, %v1235_v10  ;;  %v1116_v41 = vmul.f32 %v1102_v60, %v1089_v24  ;;  %v1210_v30 = vrot.slane %v5290_v27, %v4897_v15  ;;  %v5409_v59 = vld [vmem:[#allocation6 + $0x21] ss:$8 sm:$0xf] }
 0x11d   : > { %v1639_v58 = vld [vmem:[#allocation2] sm:$0xff] }
 0x11e   : > { %v1269_v52 = vrot.slane %v1261_v39, 4  ;;  %v1270_v0 = vrot.slane %v1262_v43, 4  ;;  %1120 = vst [vmem:[#allocation2 + $0xc0] sm:$0xf] %v1116_v41  ;;  %v945_v21 = vpop.permute.xlu1 %944  ;;  %1701 = vmatpush1.msra.mxu0 %v1639_v58  ;;  %v5357_v28 = vpop.permute.xlu0 %1079  ;;  %v867_v39 = vrot.slane %v5409_v59, %v4866_v7 }
 0x11f   : > { %v1090_v22 = vsel %vm1087_vm13, %v5357_v28, %v1082_v19  ;;  %v5416_v41 = vld [vmem:[#allocation6 + $0x22] ss:$8 sm:$0xf] }
 0x120   : > { %1277 = vst [vmem:[#allocation2 + $0x148] sm:$0xf0] %v1269_v52  ;;  %1278 = vst [vmem:[#allocation2 + $0x8] sm:$0xf0] %v1270_v0  ;;  %v1115_v42 = vmul.f32 %v1098_v4, %v1090_v22  ;;  %v1106_v0 = vrot.slane %v5327_v5, %v4895_v14  ;;  %v1110_v22 = vrot.slane %v5327_v5, %v4897_v15 }
 0x122   : > { %v1646_v45 = vld [vmem:[#allocation2 + $0x1a0] sm:$0xff]  ;;  %v1645_v46 = vld [vmem:[#allocation2 + $0xd0] sm:$0xff]  ;;  %1119 = vst [vmem:[#allocation2 + $0x90] sm:$0xf] %v1115_v42  ;;  %v1001_v54 = vpop.permute.xlu1 %1000  ;;  %v5367_v55 = vpop.permute.xlu0 %946  ;;  %v923_v42 = vrot.slane %v5416_v41, %v4866_v7 }
 0x123   : > { %1769 = vmatprep.subr.mxu1 %v1646_v45  ;;  %v955_v44 = vsel %vm6593_vm14, %v945_v21, %v5367_v55 }
 0x124   : > { %1770 = vmatpush1.msra.mxu1 %v1645_v46  ;;  %v981_v56 = vmul.f32 %v967_v25, %v955_v44 }
 0x125   : > { %v1636_v11 = vld [vmem:[#allocation2 + $0xc0] sm:$0xff] }
 0x126   : > { %v989_v32 = vrot.slane %v981_v56, 4  ;;  %v1130_v12 = vpop.permute.xlu1 %1129  ;;  %1702 = vmatprep.subr.mxu0 %v1636_v11  ;;  %v5379_v13 = vpop.permute.xlu0 %1002 }
 0x127   : > { %v1132_v16 = vsel %vm6588_vm11, %v5292_v53, %v1130_v12  ;;  %v1135_v31 = vsel %vm6588_vm11, %v1130_v12, %v5311_v9  ;;  %v1011_v17 = vsel %vm6592_vm15, %v1001_v54, %v5379_v13  ;;  %vm6589_vm11 = vcmp.lt.s32.totalorder %v4905_v18, 8 }
 0x128   : > { %997 = vst [vmem:[#allocation2 + $0x1a8] sm:$0xf0] %v989_v32  ;;  %v1161_v49 = vmul.f32 %v1150_v62, %v1132_v16  ;;  %v1162_v19 = vmul.f32 %v1154_v63, %v1135_v31  ;;  %v1037_v23 = vmul.f32 %v1023_v8, %v1011_v17  ;;  %v919_v32 = vrot.slane %v5416_v41, %v4864_v6 }
 0x129   : > { %v1635_v37 = vld [vmem:[#allocation2 + $0x90] sm:$0xff] }
 0x12a   : > { %v1169_v53 = vrot.slane %v1161_v49, 4  ;;  %v1170_v29 = vrot.slane %v1162_v19, 4  ;;  %1041 = vst [vmem:[#allocation2 + $0xf8] sm:$0xf] %v1037_v23  ;;  %v5396_v38 = vpop.permute.xlu1 %950  ;;  %1703 = vmatpush1.msra.mxu0 %v1635_v37  ;;  %v1186_v9 = vpop.permute.xlu0 %1185  ;;  %v1031_v49 = vrot.slane %v5365_v51, %v4897_v15  ;;  %v971_v23 = vrot.slane %v5355_v40, %v4895_v14 }
 0x12b   : > { %v956_v60 = vsel %vm6593_vm14, %v5396_v38, %v945_v21  ;;  %v1188_v61 = vsel %vm6587_vm12, %v5300_v50, %v1186_v9  ;;  %v1191_v27 = vsel %vm6587_vm12, %v1186_v9, %v5309_v57  ;;  %vm6591_vm12 = vcmp.lt.s32.totalorder %v4905_v18, 9 }
 0x12c   : > { %1177 = vst [vmem:[#allocation2 + $0x178] sm:$0xf0] %v1169_v53  ;;  %1178 = vst [vmem:[#allocation2 + $0xc8] sm:$0xf0] %v1170_v29  ;;  %v980_v35 = vmul.f32 %v963_v48, %v956_v60  ;;  %v1217_v33 = vmul.f32 %v1206_v20, %v1188_v61  ;;  %v1218_v34 = vmul.f32 %v1210_v30, %v1191_v27 }
 0x12d   : > { %v863_v48 = vrot.slane %v5409_v59, %v4864_v6  ;;  %v1027_v20 = vrot.slane %v5365_v51, %v4895_v14  ;;  %v975_v30 = vrot.slane %v5355_v40, %v4897_v15  ;;  %v927_v53 = vrot.slane %v5416_v41, %v4895_v14 }
 0x12e   : > { %v988_v26 = vrot.slane %v980_v35, 4  ;;  %1221 = vst [vmem:[#allocation2 + $0x148] sm:$0xf] %v1217_v33  ;;  %1222 = vst [vmem:[#allocation2 + $0x8] sm:$0xf] %v1218_v34  ;;  %v845_v10 = vpop.permute.xlu1 %844  ;;  %v1007_v24 = vpop.permute.xlu0 %1006  ;;  %v931_v61 = vrot.slane %v5416_v41, %v4897_v15 }
 0x12f   : > { %v1012_v50 = vsel %vm6592_vm15, %v1007_v24, %v1001_v54 }
 0x130   : > { %996 = vst [vmem:[#allocation2 + $0x80] sm:$0xf0] %v988_v26  ;;  %v1036_v57 = vmul.f32 %v1019_v36, %v1012_v50 }
 0x131   : > { %v1632_v43 = vld [vmem:[#allocation2 + $0xf8] sm:$0xff] }
 0x132   : > { %1040 = vst [vmem:[#allocation2 + $0xe8] sm:$0xf] %v1036_v57  ;;  %v901_v4 = vpop.permute.xlu1 %900  ;;  %1704 = vmatprep.subr.mxu0 %v1632_v43  ;;  %v5418_v58 = vpop.permute.xlu0 %846 }
 0x133   : > { %v855_v52 = vsel %vm6591_vm12, %v845_v10, %v5418_v58 }
 0x134   : > { %v881_v21 = vmul.f32 %v867_v39, %v855_v52 }
 0x135   : > { %v1642_v25 = vld [vmem:[#allocation2 + $0x8] sm:$0xff] }
 0x136   : > { %v1641_v45 = vld [vmem:[#allocation2 + $0x148] sm:$0xff]  ;;  %v889_v46 = vrot.slane %v881_v21, 4  ;;  %v1086_v54 = vpop.permute.xlu1 %1085  ;;  %1771 = vmatprep.subr.mxu1 %v1642_v25  ;;  %v903_v44 = vpop.permute.xlu0 %902 }
 0x137   : > { %v1088_v62 = vsel %vm1087_vm13, %v5342_v1, %v1086_v54  ;;  %v1091_v56 = vsel %vm1087_vm13, %v1086_v54, %v5357_v28  ;;  %v911_v5 = vsel %vm6589_vm11, %v901_v4, %v903_v44  ;;  %1772 = vmatpush1.msra.mxu1 %v1641_v45 }
 0x138   : > { %897 = vst [vmem:[#allocation2 + $0x188] sm:$0xf0] %v889_v46  ;;  %v1117_v63 = vmul.f32 %v1106_v0, %v1088_v62  ;;  %v1118_v8 = vmul.f32 %v1110_v22, %v1091_v56  ;;  %v937_v11 = vmul.f32 %v923_v42, %v911_v5  ;;  %v1616_v5 = vld [vmem:[#allocation2 + $0x110] sm:$0xff] }
 0x139   : > { %v1631_v12 = vld [vmem:[#allocation2 + $0xe8] sm:$0xff] }
 0x13a   : > { %1121 = vst [vmem:[#allocation2 + $0x178] sm:$0xf] %v1117_v63  ;;  %1122 = vst [vmem:[#allocation2 + $0xc8] sm:$0xf] %v1118_v8  ;;  %v907_v1 = vpop.permute.xlu1 %906  ;;  %1705 = vmatpush1.msra.mxu0 %v1631_v12  ;;  %v1615_v63 = vld [vmem:[#allocation2 + $0x180] sm:$0xff]  ;;  %v1612_v8 = vld [vmem:[#allocation2 + $0x168] sm:$0xff] }
 0x13b   : > { %941 = vst [vmem:[#allocation2 + $0x1a8] sm:$0xf] %v937_v11  ;;  %v912_v28 = vsel %vm6589_vm11, %v907_v1, %v901_v4  ;;  %v851_v16 = vpop.permute.xlu0 %850  ;;  %v1611_v12 = vld [vmem:[#allocation2 + $0x50] sm:$0xff] }
 0x13c   : > { %v936_v31 = vmul.f32 %v919_v32, %v912_v28  ;;  %v856_v17 = vsel %vm6591_vm12, %v851_v16, %v845_v10  ;;  %v1607_v28 = vld [vmem:[#allocation2 + $0xb0] sm:$0xff] }
 0x13d   : > { %v880_v19 = vmul.f32 %v863_v48, %v856_v17  ;;  %v1608_v48 = vld [vmem:[#allocation2 + $0x1b0] sm:$0xff]  ;;  %v1622_v17 = vld [vmem:[#allocation2 + $0x60] sm:$0xff] }
 0x13e   : > { %940 = vst [vmem:[#allocation2 + $0x80] sm:$0xf] %v936_v31  ;;  %v1005_v37 = vpop.permute.xlu1 %1004 }
 0x13f   : > { %v888_v29 = vrot.slane %v880_v19, 4  ;;  %v1009_v9 = vsel %vm6592_vm15, %v1005_v37, %v1007_v24  ;;  %v1010_v51 = vsel %vm6592_vm15, %v5379_v13, %v1005_v37  ;;  %v949_v60 = vpop.permute.xlu0 %948  ;;  %v871_v13 = vrot.slane %v5409_v59, %v4895_v14  ;;  %v1624_v25 = vld [vmem:[#allocation2 + $0x188] sm:$0xff]  ;;  %v1617_v19 = vld [vmem:[#allocation2 + $0x118] sm:$0xff] }
 0x140   : > { %v1038_v27 = vmul.f32 %v1027_v20, %v1010_v51  ;;  %v1039_v35 = vmul.f32 %v1031_v49, %v1009_v9  ;;  %v953_v40 = vsel %vm6593_vm14, %v949_v60, %v5396_v38  ;;  %v954_v33 = vsel %vm6593_vm14, %v5367_v55, %v949_v60  ;;  %v1621_v20 = vld [vmem:[#allocation2 + $0x108] sm:$0xff]  ;;  %v1618_v49 = vld [vmem:[#allocation2 + $0x98] sm:$0xff] }
 0x141   : > { %896 = vst [vmem:[#allocation2 + $0xe0] sm:$0xf0] %v888_v29  ;;  %v982_v34 = vmul.f32 %v971_v23, %v954_v33  ;;  %v983_v36 = vmul.f32 %v975_v30, %v953_v40  ;;  %v1638_v10 = vld [vmem:[#allocation2 + $0xc8] sm:$0xff]  ;;  %v875_v24 = vrot.slane %v5409_v59, %v4897_v15  ;;  %v1637_v50 = vld [vmem:[#allocation2 + $0x178] sm:$0xff]  ;;  %v1613_v30 = vld [vmem:[#allocation2 + $0x130] sm:$0xff] }
 0x142   : > { %v1628_v26 = vld [vmem:[#allocation2 + $0x1a8] sm:$0xff]  ;;  %1042 = vst [vmem:[#allocation2 + $0x190] sm:$0xf] %v1038_v27  ;;  %1043 = vst [vmem:[#allocation2 + $0xb8] sm:$0xf] %v1039_v35  ;;  %v905_v57 = vpop.permute.xlu1 %904  ;;  %1773 = vmatprep.subr.mxu1 %v1638_v10  ;;  %v1610_v37 = vld [vmem:[#allocation2 + $0x18] sm:$0xff] }
 0x143   : > { %1706 = vmatprep.subr.mxu0 %v1628_v26  ;;  %v990_v38 = vrot.slane %v982_v34, 4  ;;  %v991_v39 = vrot.slane %v983_v36, 4  ;;  %v909_v55 = vsel %vm6589_vm11, %v905_v57, %v907_v1  ;;  %v910_v43 = vsel %vm6589_vm11, %v903_v44, %v905_v57  ;;  %v849_v41 = vpop.permute.xlu0 %848  ;;  %1774 = vmatpush1.msra.mxu1 %v1637_v50  ;;  %v1620_v44 = vld [vmem:[#allocation2 + $0x150] sm:$0xff]  ;;  %v1606_v1 = vld [vmem:[%s6559_s2] sm:$0xf]  ;;  %v1614_v23 = vld [vmem:[#allocation2 + $0x48] sm:$0xff] }
 0x144   : > { %v938_v4 = vmul.f32 %v927_v53, %v910_v43  ;;  %v939_v52 = vmul.f32 %v931_v61, %v909_v55  ;;  %v853_v59 = vsel %vm6591_vm12, %v849_v41, %v851_v16  ;;  %v854_v0 = vsel %vm6591_vm12, %v5418_v58, %v849_v41  ;;  %v1619_v58 = vld [vmem:[#allocation2 + $0x120] sm:$0xff]  ;;  %v1609_v53 = vld [vmem:[#allocation2 + $0xd8] sm:$0xff] }
 0x145   : > { %998 = vst [vmem:[#allocation2 + $0x1b8] sm:$0xf0] %v990_v38  ;;  %999 = vst [vmem:[#allocation2 + $0x28] sm:$0xf0] %v991_v39  ;;  %v882_v21 = vmul.f32 %v871_v13, %v854_v0  ;;  %v883_v22 = vmul.f32 %v875_v24, %v853_v59  ;;  %v1627_v42 = vld [vmem:[#allocation2 + $0x80] sm:$0xff]  ;;  %vm6590_vm11 = vcmask 883712  }
 0x146   : > { %942 = vst [vmem:[#allocation2 + $0x1b8] sm:$0xf] %v938_v4  ;;  %943 = vst [vmem:[#allocation2 + $0x28] sm:$0xf] %v939_v52  ;;  %1707 = vmatpush1.msra.mxu0 %v1627_v42 }
 0x147   : > { %v890_v45 = vrot.slane %v882_v21, 4  ;;  %v891_v46 = vrot.slane %v883_v22, 4  ;;  %1708 = vmatprep.subr.mxu0 %v1624_v25 }
 0x148   : > { %v1623_v54 = vld [vmem:[#allocation2 + $0xe0] sm:$0xff] }
 0x149   : > { %898 = vst [vmem:[#allocation2 + $0x138] sm:$0xf0] %v890_v45  ;;  %899 = vst [vmem:[#allocation2 + $0x140] sm:$0xf0] %v891_v46  ;;  %1709 = vmatpush1.msra.mxu0 %v1623_v54  ;;  %v1634_v62 = vld [vmem:[#allocation2 + $0xb8] sm:$0xff]  ;;  %v1633_v56 = vld [vmem:[#allocation2 + $0x190] sm:$0xff] }
 0x14a   : > { %1710 = vmatprep.subr.mxu0 %v1620_v44  ;;  %1775 = vmatprep.subr.mxu1 %v1634_v62 }
 0x14b   : > { %1711 = vmatpush1.msra.mxu0 %v1619_v58  ;;  %1776 = vmatpush1.msra.mxu1 %v1633_v56 }
 0x14c   : > { %1712 = vmatprep.subr.mxu0 %v1616_v5 }
 0x14d   : > { %1713 = vmatpush1.msra.mxu0 %v1615_v63  ;;  %v1630_v11 = vld [vmem:[#allocation2 + $0x28] sm:$0xff]  ;;  %v1629_v32 = vld [vmem:[#allocation2 + $0x1b8] sm:$0xff] }
 0x14e   : > { %1714 = vmatprep.subr.mxu0 %v1612_v8  ;;  %1777 = vmatprep.subr.mxu1 %v1630_v11 }
 0x14f   : > { %1715 = vmatpush1.msra.mxu0 %v1611_v12  ;;  %1778 = vmatpush1.msra.mxu1 %v1629_v32 }
 0x150   : > { %1716 = vmatprep.subr.mxu0 %v1608_v48  ;;  %v1626_v16 = vld [vmem:[#allocation2 + $0x140] sm:$0xff]  ;;  %v1625_v31 = vld [vmem:[#allocation2 + $0x138] sm:$0xff] }
 0x151   : > { %1717 = vmatpush1.msra.mxu0 %v1607_v28  ;;  %1779 = vmatprep.subr.mxu1 %v1626_v16  ;;  %v1667_v29 = vpop.permute.xlu0 %1666 }
 0x152   : > { %1780 = vmatpush1.msra.mxu1 %v1625_v31  ;;  %4249 = vmatmul.mubr.msk.f32.vlgmr.msra.gmra.mxu0 %vm6590_vm11, %v1606_v1 }
 0x153   : > { %1781 = vmatprep.subr.mxu1 %v1622_v17  ;;  %3285 = vmatprep.mubr.f32.mxu0 %v4580_v47 }
 0x154   : > { %1782 = vmatpush1.msra.mxu1 %v1621_v20 }
 0x155   : > { %1783 = vmatprep.subr.mxu1 %v1618_v49 }
 0x156   : > { %1784 = vmatpush1.msra.mxu1 %v1617_v19 }
 0x157   : > { %1785 = vmatprep.subr.mxu1 %v1614_v23 }
 0x158   : > { %1786 = vmatpush1.msra.mxu1 %v1613_v30 }
 0x159   : > { %1787 = vmatprep.subr.mxu1 %v1610_v37 }
 0x15a   : > { %1788 = vmatpush1.msra.mxu1 %v1609_v53 }
 0x15b   : > { %4252 = vmatmul.mubr.msk.f32.vlgmr.msra.gmra.mxu1 %vm6590_vm11, %v1606_v1 }
 0x15c   : > { %3356 = vmatprep.mubr.f32.mxu1 %v4580_v47 }
 0x212   : > { %v1752_v9 = vpop.f32.mrf.mxu0 }
 0x213   : > { %v1753_v60 = vadd.f32 %v1752_v9, %v1667_v29 }
 0x214   : > { %v1754_v51 = vpop.f32.mrf.mxu0 }
 0x215   : > { %v1755_v61 = vadd.f32 %v1754_v51, %v1667_v29  ;;  %v1837_v27 = vmul.f32 %v1753_v60, %v1753_v60  ;;  %v1828_v40 = vsel %vm1673_vm4, %v1753_v60, 0.0 }
 0x217   : > { %v1838_v35 = vmul.f32 %v1755_v61, %v1755_v61  ;;  %v1829_v33 = vsel %vm1673_vm4, %v1755_v61, 0.0  ;;  %v1841_v26 = vsel %vm1673_vm4, %v1837_v27, 0.0 }
 0x218   : > { %v1830_v24 = vadd.f32 %v1829_v33, %v1828_v40 }
 0x219   : > { %v1842_v10 = vsel %vm1673_vm4, %v1838_v35, 0.0 }
 0x21a   : > { %v1843_v55 = vadd.f32 %v1842_v10, %v1841_v26 }
 0x21b   : > { %v1823_v34 = vpop.f32.mrf.mxu1 }
 0x21c   : > { %v1824_v36 = vadd.f32 %v1823_v34, %v1667_v29 }
 0x21d   : > { %v1825_v13 = vpop.f32.mrf.mxu1 }
 0x21e   : > { %v1839_v50 = vmul.f32 %v1824_v36, %v1824_v36  ;;  %v1826_v57 = vadd.f32 %v1825_v13, %v1667_v29  ;;  %v1831_v38 = vsel %vm1673_vm4, %v1824_v36, 0.0 }
 0x21f   : > { %v1832_v39 = vadd.f32 %v1831_v38, %v1830_v24 }
 0x220   : > { %v1833_v43 = vsel %vm1673_vm4, %v1826_v57, 0.0  ;;  %v1840_v41 = vmul.f32 %v1826_v57, %v1826_v57  ;;  %v1844_v4 = vsel %vm1673_vm4, %v1839_v50, 0.0 }
 0x221   : > { %v1834_v52 = vadd.f32 %v1833_v43, %v1832_v39  ;;  %v1845_v59 = vadd.f32 %v1844_v4, %v1843_v55 }
 0x222   : > { %v1846_v0 = vsel %vm1673_vm4, %v1840_v41, 0.0 }
 0x223   : > { %1835 = vadd.xlane.f32.xlu1 %v1834_v52  ;;  %v1847_v21 = vadd.f32 %v1846_v0, %v1845_v59 }
 0x225   : > { %1848 = vadd.xlane.f32.xlu0 %v1847_v21 }
 0x2ac   : > { %v1836_v22 = vpop.xlane.xlu1 %1835 }
 0x2ad   : > { %v1850_v42 = vmul.f32 0.001953125, %v1836_v22 }
 0x2ae   : > { %v1849_v25 = vpop.xlane.xlu0 %1848 }
 0x2af   : > { %v1851_v45 = vmul.f32 0.001953125, %v1849_v25  ;;  %v1852_v46 = vmul.f32 %v1850_v42, %v1850_v42  ;;  %v1855_v56 = vsub.f32 %v1753_v60, %v1850_v42  ;;  %v1856_v58 = vsub.f32 %v1755_v61, %v1850_v42 }
 0x2b0   : > { %v1857_v5 = vsub.f32 %v1824_v36, %v1850_v42  ;;  %v1858_v63 = vsub.f32 %v1826_v57, %v1850_v42 }
 0x2b1   : > { %v1853_v54 = vsub.f32 %v1851_v45, %v1852_v46 }
 0x2b3   : > { %v1854_v44 = vmax.f32 %v1853_v54, 0.0 }
 0x2b5   : > { %v1859_v62 = vadd.f32 1e-05, %v1854_v44 }
 0x2b7   : > { %4361 = vrsqrt.f32 %v1859_v62 }
 0x2c4   : > { %v4362_v8 = vpop.eup %4361 }
 0x2c5   : > { %v5497_v11 = vmul.f32 %v4362_v8, %v1855_v56  ;;  %v5499_v32 = vmul.f32 %v4362_v8, %v1856_v58  ;;  %v5501_v12 = vmul.f32 %v4362_v8, %v1857_v5  ;;  %v5503_v48 = vmul.f32 %v4362_v8, %v1858_v63 }
 0x2c7   : > { %v5506_v1 = vmul.f32 0.70710677, %v5497_v11  ;;  %v5509_v28 = vmul.f32 0.70710677, %v5499_v32  ;;  %v5512_v16 = vmul.f32 0.70710677, %v5501_v12 }
 0x2c8   : > { %v5515_v31 = vmul.f32 0.70710677, %v5503_v48 }
 0x2c9   : > { %v1881_v17 = vand.u32 2147483647, %v5506_v1  ;;  %v1882_v20 = vand.u32 2147483647, %v5509_v28  ;;  %v1883_v49 = vand.u32 2147483647, %v5512_v16 }
 0x2ca   : > { %v1884_v19 = vand.u32 2147483647, %v5515_v31  ;;  %vm1873_vm11 = vcmp.ge.f32.partialorder %v5506_v1, 0.0  ;;  %vm1874_vm12 = vcmp.ge.f32.partialorder %v5509_v28, 0.0  ;;  %vm1875_vm15 = vcmp.ge.f32.partialorder %v5512_v16, 0.0 }
 0x2cb   : > { %v1885_v23 = vmul.f32 0.3275911, %v1881_v17  ;;  %v1886_v30 = vmul.f32 0.3275911, %v1882_v20  ;;  %v1887_v37 = vmul.f32 0.3275911, %v1883_v49 }
 0x2cc   : > { %v1888_v53 = vmul.f32 0.3275911, %v1884_v19  ;;  %v1937_v61 = vsub.f32 0.0, %v1881_v17  ;;  %v1938_v27 = vsub.f32 0.0, %v1882_v20  ;;  %v1939_v35 = vsub.f32 0.0, %v1883_v49 }
 0x2cd   : > { %v1889_v29 = vadd.f32 1.0, %v1885_v23  ;;  %v1890_v9 = vadd.f32 1.0, %v1886_v30  ;;  %v1891_v51 = vadd.f32 1.0, %v1887_v37  ;;  %v1940_v40 = vsub.f32 0.0, %v1884_v19 }
 0x2ce   : > { %v1892_v60 = vadd.f32 1.0, %v1888_v53  ;;  %v1941_v33 = vmul.f32 %v1937_v61, %v1881_v17  ;;  %v1942_v34 = vmul.f32 %v1938_v27, %v1882_v20  ;;  %v1943_v36 = vmul.f32 %v1939_v35, %v1883_v49 }
 0x2cf   : > { %4363 = vrcp.f32 %v1889_v29  ;;  %v1944_v10 = vmul.f32 %v1940_v40, %v1884_v19  ;;  %vm1876_vm14 = vcmp.ge.f32.partialorder %v5515_v31, 0.0 }
 0x2d0   : > { %4365 = vrcp.f32 %v1890_v9  ;;  %v1945_v50 = vmul.f32 1.442695, %v1941_v33  ;;  %v1947_v39 = vmul.f32 1.442695, %v1942_v34  ;;  %v1949_v4 = vmul.f32 1.442695, %v1943_v36 }
 0x2d1   : > { %4367 = vrcp.f32 %v1891_v51  ;;  %v1951_v0 = vmul.f32 1.442695, %v1944_v10 }
 0x2d2   : > { %4369 = vrcp.f32 %v1892_v60 }
 0x2d3   : > { %4371 = vpow2.f32 %v1945_v50 }
 0x2d4   : > { %4373 = vpow2.f32 %v1947_v39 }
 0x2d5   : > { %4375 = vpow2.f32 %v1949_v4 }
 0x2d6   : > { %4377 = vpow2.f32 %v1951_v0  ;;  %v1865_v0 = vmul.f32 0.5, %v5497_v11 }
 0x2dc   : > { %v4364_v26 = vpop.eup %4363 }
 0x2dd   : > { %v4366_v13 = vpop.eup %4365  ;;  %v1901_v24 = vmul.f32 1.0614054, %v4364_v26 }
 0x2de   : > { %v4368_v57 = vpop.eup %4367  ;;  %v1902_v38 = vmul.f32 1.0614054, %v4366_v13 }
 0x2df   : > { %v4370_v55 = vpop.eup %4369  ;;  %v1903_v43 = vmul.f32 1.0614054, %v4368_v57  ;;  %v1905_v41 = vadd.f32 -1.4531521, %v1901_v24 }
 0x2e0   : > { %v1904_v52 = vmul.f32 1.0614054, %v4370_v55  ;;  %v1906_v59 = vadd.f32 -1.4531521, %v1902_v38  ;;  %v4372_v61 = vpop.eup %4371 }
 0x2e1   : > { %v1907_v21 = vadd.f32 -1.4531521, %v1903_v43  ;;  %v1909_v22 = vmul.f32 %v4364_v26, %v1905_v41  ;;  %v4374_v40 = vpop.eup %4373  ;;  %v2591_v43 = vld [vmem:[#allocation6 + $0x25] ss:$8 sm:$0xf] }
 0x2e2   : > { %v1908_v42 = vadd.f32 -1.4531521, %v1904_v52  ;;  %v1910_v25 = vmul.f32 %v4366_v13, %v1906_v59  ;;  %v4376_v36 = vpop.eup %4375  ;;  %v2596_v16 = vrot.slane %v2591_v43, %v4864_v6 }
 0x2e3   : > { %v1911_v45 = vmul.f32 %v4368_v57, %v1907_v21  ;;  %v1913_v46 = vadd.f32 1.4214138, %v1909_v22  ;;  %v4378_v50 = vpop.eup %4377 }
 0x2e4   : > { %v1912_v54 = vmul.f32 %v4370_v55, %v1908_v42  ;;  %v1914_v44 = vadd.f32 1.4214138, %v1910_v25  ;;  %v1866_v42 = vmul.f32 0.5, %v5499_v32 }
 0x2e5   : > { %v1915_v62 = vadd.f32 1.4214138, %v1911_v45  ;;  %v1917_v56 = vmul.f32 %v4364_v26, %v1913_v46  ;;  %v2600_v46 = vrot.slane %v2591_v43, %v4866_v7 }
 0x2e6   : > { %v1916_v58 = vadd.f32 1.4214138, %v1912_v54  ;;  %v1918_v5 = vmul.f32 %v4366_v13, %v1914_v44  ;;  %v1867_v54 = vmul.f32 0.5, %v5501_v12 }
 0x2e7   : > { %v1919_v63 = vmul.f32 %v4368_v57, %v1915_v62  ;;  %v1921_v8 = vadd.f32 -0.28449672, %v1917_v56  ;;  %v2604_v56 = vrot.slane %v2591_v43, %v4895_v14 }
 0x2e8   : > { %v1920_v17 = vmul.f32 %v4370_v55, %v1916_v58  ;;  %v1922_v20 = vadd.f32 -0.28449672, %v1918_v5  ;;  %v1868_v58 = vmul.f32 0.5, %v5503_v48 }
 0x2e9   : > { %v1923_v49 = vadd.f32 -0.28449672, %v1919_v63  ;;  %v1925_v19 = vmul.f32 %v4364_v26, %v1921_v8  ;;  %v2608_v63 = vrot.slane %v2591_v43, %v4897_v15 }
 0x2ea   : > { %v1924_v23 = vadd.f32 -0.28449672, %v1920_v17  ;;  %v1926_v30 = vmul.f32 %v4366_v13, %v1922_v20 }
 0x2eb   : > { %v1927_v37 = vmul.f32 %v4368_v57, %v1923_v49  ;;  %v1929_v53 = vadd.f32 0.2548296, %v1925_v19 }
 0x2ec   : > { %v1928_v29 = vmul.f32 %v4370_v55, %v1924_v23  ;;  %v1930_v9 = vadd.f32 0.2548296, %v1926_v30 }
 0x2ed   : > { %v1931_v51 = vadd.f32 0.2548296, %v1927_v37  ;;  %v1933_v60 = vmul.f32 %v4364_v26, %v1929_v53  ;;  %v4582_v26 = vmov -1.0   ;;  %v5661_v37 = vld [vmem:[#allocation6 + $0x7] ss:$8 sm:$0xf] }
 0x2ee   : > { %v1932_v27 = vadd.f32 0.2548296, %v1928_v29  ;;  %v1934_v35 = vmul.f32 %v4366_v13, %v1930_v9  ;;  %v1877_v13 = vsel %vm1873_vm11, 1.0, %v4582_v26  ;;  %v1879_v28 = vsel %vm1875_vm15, 1.0, %v4582_v26 }
 0x2ef   : > { %v1935_v33 = vmul.f32 %v4368_v57, %v1931_v51  ;;  %v1953_v34 = vmul.f32 %v4372_v61, %v1933_v60  ;;  %v1878_v57 = vsel %vm1874_vm12, 1.0, %v4582_v26  ;;  %v1880_v21 = vsel %vm1876_vm14, 1.0, %v4582_v26  ;;  %v5663_v53 = vld [vmem:[#allocation6 + $0x61] ss:$8 sm:$0xf] }
 0x2f0   : > { %v1936_v10 = vmul.f32 %v4370_v55, %v1932_v27  ;;  %v1954_v24 = vmul.f32 %v4374_v40, %v1934_v35  ;;  %v2328_v29 = vrot.slane %v5661_v37, %v4895_v14  ;;  %v3080_v9 = vrot.slane %v5663_v53, %v4866_v7 }
 0x2f1   : > { %v1955_v38 = vmul.f32 %v4376_v36, %v1935_v33  ;;  %v1957_v39 = vsub.f32 1.0, %v1953_v34  ;;  %v2324_v40 = vrot.slane %v5661_v37, %v4866_v7  ;;  %v3076_v33 = vrot.slane %v5663_v53, %v4864_v6  ;;  %v5686_v34 = vld [vmem:[#allocation6 + $0x20] ss:$8 sm:$0xf] }
 0x2f2   : > { %v1956_v41 = vmul.f32 %v4378_v50, %v1936_v10  ;;  %v1958_v1 = vsub.f32 1.0, %v1954_v24  ;;  %v5688_v36 = vld [vmem:[#allocation6 + $0x62] ss:$8 sm:$0xf]  ;;  %v2382_v43 = vrot.slane %v5686_v34, %v4895_v14  ;;  %vm6628_vm14 = vcmp.lt.s32.totalorder %v4905_v18, 9 }
 0x2f3   : > { %v1959_v4 = vsub.f32 1.0, %v1955_v38  ;;  %v1961_v52 = vmul.f32 %v1957_v39, %v1877_v13  ;;  %v3122_v13 = vrot.slane %v5688_v36, %v4866_v7  ;;  %vm6629_vm15 = vcmp.lt.s32.totalorder %v4905_v18, 8 }
 0x2f4   : > { %v1960_v55 = vsub.f32 1.0, %v1956_v41  ;;  %v1962_v59 = vmul.f32 %v1958_v1, %v1878_v57 }
 0x2f5   : > { %v1963_v31 = vmul.f32 %v1959_v4, %v1879_v28  ;;  %v1965_v22 = vadd.f32 1.0, %v1961_v52 }
 0x2f6   : > { %v1964_v25 = vmul.f32 %v1960_v55, %v1880_v21  ;;  %v1966_v45 = vadd.f32 1.0, %v1962_v59  ;;  %v3118_v21 = vrot.slane %v5688_v36, %v4864_v6 }
 0x2f7   : > { %v1967_v44 = vadd.f32 1.0, %v1963_v31  ;;  %v5534_v62 = vmul.f32 %v1965_v22, %v1865_v0  ;;  %v2378_v0 = vrot.slane %v5686_v34, %v4866_v7  ;;  %v5716_v31 = vld [vmem:[#allocation6 + $0x5] ss:$8 sm:$0xf] }
 0x2f8   : > { %v1968_v11 = vadd.f32 1.0, %v1964_v25  ;;  %v5538_v5 = vmul.f32 %v1966_v45, %v1866_v42  ;;  %v5718_v22 = vld [vmem:[#allocation6 + $0x47] ss:$8 sm:$0xf] }
 0x2f9   : > { %v5541_v8 = vmul.f32 %v1967_v44, %v1867_v54  ;;  %v2613_v32 = vmul.f32 %v2596_v16, %v5534_v62  ;;  %v2232_v44 = vrot.slane %v5716_v31, %v4895_v14 }
 0x2fa   : > { %v5544_v17 = vmul.f32 %v1968_v11, %v1868_v58  ;;  %2305 = vrot.lane.b32.xlu1 %v5538_v5, %s4564_s11  ;;  %v2614_v12 = vmul.f32 %v2600_v46, %v5538_v5  ;;  %v2228_v58 = vrot.slane %v5716_v31, %v4866_v7  ;;  %v3004_v11 = vrot.slane %v5718_v22, %v4864_v6 }
 0x2fb   : > { %2307 = vrot.lane.b32.xlu0 %v5541_v8, %s4564_s11  ;;  %v2621_v48 = vrot.slane %v2613_v32, 4  ;;  %v2615_v20 = vmul.f32 %v2604_v56, %v5541_v8  ;;  %v5731_v56 = vld [vmem:[#allocation6 + $0x6] ss:$8 sm:$0xf]  ;;  %v3200_v32 = vld [vmem:[%s6562_s5] sm:$0xf] }
 0x2fc   : > { %v2616_v49 = vmul.f32 %v2608_v63, %v5544_v17  ;;  %v2622_v19 = vrot.slane %v2614_v12, 4 }
 0x2fd   : > { %2629 = vst [vmem:[#allocation2 + $0xe8] sm:$0xf0] %v2621_v48  ;;  %v2623_v23 = vrot.slane %v2615_v20, 4  ;;  %v2286_v48 = vrot.slane %v5731_v56, %v4895_v14 }
 0x2fe   : > { %2359 = vrot.lane.b32.xlu1 %v5538_v5, %s4563_s21  ;;  %v2624_v30 = vrot.slane %v2616_v49, 4  ;;  %2630 = vst [vmem:[#allocation2 + $0xf8] sm:$0xf0] %v2622_v19 }
 0x2ff   : > { %2303 = vrot.lane.b32.xlu0 %v5534_v62, %s4564_s11  ;;  %2631 = vst [vmem:[#allocation2 + $0x190] sm:$0xf0] %v2623_v23 }
 0x300   : > { %2632 = vst [vmem:[#allocation2 + $0xb8] sm:$0xf0] %v2624_v30 }
 0x302   : > { %2361 = vrot.lane.b32.xlu1 %v5541_v8, %s4563_s21 }
 0x303   : > { %2209 = vrot.lane.b32.xlu0 %v5538_v5, %s4565_s19 }
 0x306   : > { %2357 = vrot.lane.b32.xlu1 %v5534_v62, %s4563_s21 }
 0x307   : > { %2263 = vrot.lane.b32.xlu0 %v5538_v5, %s4566_s26 }
 0x30a   : > { %2211 = vrot.lane.b32.xlu1 %v5541_v8, %s4565_s19 }
 0x30b   : > { %2207 = vrot.lane.b32.xlu0 %v5534_v62, %s4565_s19 }
 0x30e   : > { %2265 = vrot.lane.b32.xlu1 %v5541_v8, %s4566_s26 }
 0x30f   : > { %2113 = vrot.lane.b32.xlu0 %v5538_v5, %s4567_s27 }
 0x312   : > { %2261 = vrot.lane.b32.xlu1 %v5534_v62, %s4566_s26 }
 0x313   : > { %2167 = vrot.lane.b32.xlu0 %v5538_v5, %s4568_s29 }
 0x316   : > { %2115 = vrot.lane.b32.xlu1 %v5541_v8, %s4567_s27 }
 0x317   : > { %2309 = vrot.lane.b32.xlu0 %v5544_v17, %s4564_s11  ;;  %s6612_s11 = smov 119  }
 0x31a   : > { %2169 = vrot.lane.b32.xlu1 %v5541_v8, %s4568_s29 }
 0x31b   : > { %2111 = vrot.lane.b32.xlu0 %v5534_v62, %s4567_s27 }
 0x31e   : > { %2363 = vrot.lane.b32.xlu1 %v5544_v17, %s4563_s21  ;;  %s6611_s21 = smov 73  }
 0x31f   : > { %2017 = vrot.lane.b32.xlu0 %v5538_v5, %s4569_s25 }
 0x322   : > { %2165 = vrot.lane.b32.xlu1 %v5534_v62, %s4568_s29 }
 0x323   : > { %2071 = vrot.lane.b32.xlu0 %v5538_v5, %s4570_s12 }
 0x326   : > { %2019 = vrot.lane.b32.xlu1 %v5541_v8, %s4569_s25 }
 0x327   : > { %2213 = vrot.lane.b32.xlu0 %v5544_v17, %s4565_s19  ;;  %s6613_s19 = smov 120  }
 0x32a   : > { %2073 = vrot.lane.b32.xlu1 %v5541_v8, %s4570_s12 }
 0x32b   : > { %2015 = vrot.lane.b32.xlu0 %v5534_v62, %s4569_s25 }
 0x32e   : > { %2267 = vrot.lane.b32.xlu1 %v5544_v17, %s4566_s26  ;;  %s6614_s26 = smov 9  }
 0x32f   : > { %1975 = vrot.lane.b32.xlu0 %v5538_v5, %s6611_s21 }
 0x332   : > { %2069 = vrot.lane.b32.xlu1 %v5534_v62, %s4570_s12 }
 0x333   : > { %2117 = vrot.lane.b32.xlu0 %v5544_v17, %s4567_s27  ;;  %s6615_s27 = smov 8  }
 0x336   : > { %1977 = vrot.lane.b32.xlu1 %v5541_v8, %s6611_s21 }
 0x337   : > { %2773 = vrot.lane.b32.xlu0 %v5538_v5, %s6612_s11 }
 0x33a   : > { %2171 = vrot.lane.b32.xlu1 %v5544_v17, %s4568_s29 }
 0x33b   : > { %1973 = vrot.lane.b32.xlu0 %v5534_v62, %s6611_s21 }
 0x33e   : > { %2775 = vrot.lane.b32.xlu1 %v5541_v8, %s6612_s11 }
 0x33f   : > { %2021 = vrot.lane.b32.xlu0 %v5544_v17, %s4569_s25 }
 0x342   : > { %2771 = vrot.lane.b32.xlu1 %v5534_v62, %s6612_s11 }
 0x343   : > { %2677 = vrot.lane.b32.xlu0 %v5538_v5, %s4573_s23 }
 0x346   : > { %2075 = vrot.lane.b32.xlu1 %v5544_v17, %s4570_s12 }
 0x347   : > { %2731 = vrot.lane.b32.xlu0 %v5538_v5, %s6613_s19 }
 0x34a   : > { %2679 = vrot.lane.b32.xlu1 %v5541_v8, %s4573_s23 }
 0x34b   : > { %2675 = vrot.lane.b32.xlu0 %v5534_v62, %s4573_s23 }
 0x34e   : > { %2733 = vrot.lane.b32.xlu1 %v5541_v8, %s6613_s19 }
 0x34f   : > { %1979 = vrot.lane.b32.xlu0 %v5544_v17, %s6611_s21 }
 0x352   : > { %2729 = vrot.lane.b32.xlu1 %v5534_v62, %s6613_s19 }
 0x353   : > { %2637 = vrot.lane.b32.xlu0 %v5541_v8, %s4575_s1 }
 0x356   : > { %2635 = vrot.lane.b32.xlu1 %v5538_v5, %s4575_s1 }
 0x357   : > { %2633 = vrot.lane.b32.xlu0 %v5534_v62, %s4575_s1 }
 0x35a   : > { %2777 = vrot.lane.b32.xlu1 %v5544_v17, %s6612_s11 }
 0x35b   : > { %2497 = vrot.lane.b32.xlu0 %v5538_v5, %s4576_s13 }
 0x35e   : > { %2495 = vrot.lane.b32.xlu1 %v5534_v62, %s4576_s13 }
 0x35f   : > { %2551 = vrot.lane.b32.xlu0 %v5538_v5, %s4577_s24 }
 0x362   : > { %2549 = vrot.lane.b32.xlu1 %v5534_v62, %s4577_s24 }
 0x363   : > { %2735 = vrot.lane.b32.xlu0 %v5544_v17, %s6613_s19  ;;  %s4277_s19 = sshll.u32 %s4660_s17, 8  ;;  %s4583_s17 = smov [#allocation8]  }
 0x364   : > { %s4154_s12 = scalar_lea.hbm %s6567_s10, %s4277_s19 }
 0x366   : > { %2681 = vrot.lane.b32.xlu1 %v5544_v17, %s4573_s23 }
 0x367   : > { %2555 = vrot.lane.b32.xlu0 %v5544_v17, %s4577_s24 }
 0x36a   : > { %2501 = vrot.lane.b32.xlu1 %v5544_v17, %s4576_s13 }
 0x36b   : > { %2401 = vrot.lane.b32.xlu0 %v5538_v5, %s6614_s26 }
 0x36c   : > { %v2306_v51 = vpop.permute.xlu1 %2305 }
 0x36d   : > { %v5673_v60 = vpop.permute.xlu0 %2307 }
 0x36e   : > { %v2312_v61 = vsel %vm752_vm1, %v2306_v51, %v5673_v60  ;;  %2399 = vrot.lane.b32.xlu1 %v5534_v62, %s6614_s26 }
 0x36f   : > { %v2339_v27 = vmul.f32 %v2328_v29, %v2312_v61  ;;  %v3094_v35 = vmul.f32 %v3080_v9, %v2312_v61  ;;  %2455 = vrot.lane.b32.xlu0 %v5538_v5, %s6615_s27  ;;  %v5739_v5 = vld [vmem:[#allocation6 + $0x60] ss:$8 sm:$0xf] }
 0x370   : > { %v2360_v10 = vpop.permute.xlu1 %2359  ;;  %v3050_v23 = vrot.slane %v5739_v5, %v4866_v7 }
 0x371   : > { %v2347_v24 = vrot.slane %v2339_v27, 4  ;;  %v3102_v50 = vrot.slane %v3094_v35, 4  ;;  %v5690_v38 = vpop.permute.xlu0 %2303 }
 0x372   : > { %v2313_v39 = vsel %vm752_vm1, %v5690_v38, %v2306_v51  ;;  %2453 = vrot.lane.b32.xlu1 %v5534_v62, %s6615_s27  ;;  %v3008_v62 = vrot.slane %v5718_v22, %v4866_v7 }
 0x373   : > { %2355 = vst [vmem:[#allocation2 + $0x108] sm:$0xf0] %v2347_v24  ;;  %3110 = vst [vmem:[#allocation2 + $0x38] sm:$0xf0] %v3102_v50  ;;  %v2338_v41 = vmul.f32 %v2324_v40, %v2313_v39  ;;  %v3093_v1 = vmul.f32 %v3076_v33, %v2313_v39  ;;  %2405 = vrot.lane.b32.xlu0 %v5544_v17, %s6614_s26  ;;  %v2282_v39 = vrot.slane %v5731_v56, %v4866_v7 }
 0x374   : > { %v5703_v57 = vpop.permute.xlu1 %2361 }
 0x375   : > { %v2346_v4 = vrot.slane %v2338_v41, 4  ;;  %v3101_v52 = vrot.slane %v3093_v1, 4  ;;  %v2366_v28 = vsel %vm808_vm0, %v2360_v10, %v5703_v57  ;;  %v2210_v55 = vpop.permute.xlu0 %2209  ;;  %v5774_v1 = vld [vmem:[#allocation6 + $0x45] ss:$8 sm:$0xf] }
 0x376   : > { %v2393_v59 = vmul.f32 %v2382_v43, %v2366_v28  ;;  %v3136_v16 = vmul.f32 %v3122_v13, %v2366_v28  ;;  %2639 = vrot.lane.b32.xlu1 %v5544_v17, %s4575_s1  ;;  %v3046_v43 = vrot.slane %v5739_v5, %v4864_v6  ;;  %v5772_v13 = vld [vmem:[#allocation6 + $0x3] ss:$8 sm:$0xf]  ;;  %v5784_v28 = vld [vmem:[#allocation6 + $0x4] ss:$8 sm:$0xf] }
 0x377   : > { %2354 = vst [vmem:[#allocation2 + $0x150] sm:$0xf0] %v2346_v4  ;;  %3109 = vst [vmem:[#allocation2 + $0x128] sm:$0xf0] %v3101_v52  ;;  %2499 = vrot.lane.b32.xlu0 %v5541_v8, %s4576_s13  ;;  %s4493_s1 = sshll.u32 %s4583_s17, 4  ;;  %s4494_s1 = int_to_ptr.vmem [resolvable:$false] %s4493_s1 }
 0x378   : > { %2397 = vst [vmem:[#allocation2 + $0x138] sm:$0xf] %v2393_v59  ;;  %3140 = vst [vmem:[#allocation2 + $0xf0] sm:$0xf] %v3136_v16  ;;  %v5720_v42 = vpop.permute.xlu1 %2357  ;;  %v2136_v16 = vrot.slane %v5772_v13, %v4895_v14  ;;  %s4495_s20 = scalar_lea.vmem %s4494_s1, 512 }
 0x379   : > { %v2367_v25 = vsel %vm808_vm0, %v5720_v42, %v2360_v10  ;;  %v2264_v45 = vpop.permute.xlu0 %2263 }
 0x37a   : > { %v2392_v46 = vmul.f32 %v2378_v0, %v2367_v25  ;;  %v3135_v54 = vmul.f32 %v3118_v21, %v2367_v25  ;;  %2459 = vrot.lane.b32.xlu1 %v5544_v17, %s6615_s27  ;;  %v2936_v0 = vrot.slane %v5774_v1, %v4866_v7  ;;  %v5790_v21 = vld [vmem:[#allocation6 + $0x46] ss:$8 sm:$0xf]  ;;  %v2320_v25 = vrot.slane %v5661_v37, %v4864_v6 }
 0x37b   : > { %2403 = vrot.lane.b32.xlu0 %v5541_v8, %s6614_s26  ;;  %s6641_s26 = sshll.u32 %s4746_s30, 4 }
 0x37c   : > { %2396 = vst [vmem:[#allocation2 + $0x188] sm:$0xf] %v2392_v46  ;;  %3139 = vst [vmem:[#allocation2 + $0x58] sm:$0xf] %v3135_v54  ;;  %v5741_v63 = vpop.permute.xlu1 %2211  ;;  %v3084_v46 = vrot.slane %v5663_v53, %v4895_v14  ;;  %v3088_v54 = vrot.slane %v5663_v53, %v4897_v15  ;;  %v2932_v53 = vrot.slane %v5774_v1, %v4864_v6 }
 0x37d   : > { %v2216_v17 = vsel %vm652_vm2, %v2210_v55, %v5741_v63  ;;  %v5749_v12 = vpop.permute.xlu0 %2207 }
 0x37e   : > { %v2243_v20 = vmul.f32 %v2232_v44, %v2216_v17  ;;  %v3022_v49 = vmul.f32 %v3008_v62, %v2216_v17  ;;  %v2217_v19 = vsel %vm652_vm2, %v5749_v12, %v2210_v55  ;;  %2553 = vrot.lane.b32.xlu1 %v5541_v8, %s4577_s24  ;;  %v2190_v62 = vrot.slane %v5784_v28, %v4895_v14  ;;  %s4142_s24 = scalar_lea.sflag [#allocation5], %s4746_s30 }
 0x37f   : > { %v2242_v30 = vmul.f32 %v2228_v58, %v2217_v19  ;;  %v3021_v29 = vmul.f32 %v3004_v11, %v2217_v19  ;;  %3203 = vperm.xlu0 %4357, %v3200_v32   ;;  %v3197_v9 = vld [vmem:[#allocation2 + $0xf0] sm:$0xf]  ;;  %v2132_v32 = vrot.slane %v5772_v13, %v4866_v7 }
 0x380   : > { %v2251_v51 = vrot.slane %v2243_v20, 4  ;;  %v3030_v61 = vrot.slane %v3022_v49, 4  ;;  %4253 = vmatprep.subr.msk.mxu0 %vm1673_vm4, %v3197_v9  ;;  %v5761_v27 = vpop.permute.xlu1 %2265 }
 0x381   : > { %v2250_v35 = vrot.slane %v2242_v30, 4  ;;  %v3029_v40 = vrot.slane %v3021_v29, 4  ;;  %v2270_v33 = vsel %vm708_vm3, %v2264_v45, %v5761_v27  ;;  %v2114_v10 = vpop.permute.xlu0 %2113 }
 0x382   : > { %2259 = vst [vmem:[#allocation2 + $0x118] sm:$0xf0] %v2251_v51  ;;  %3038 = vst [vmem:[#allocation2 + $0x78] sm:$0xf0] %v3030_v61  ;;  %v2297_v24 = vmul.f32 %v2286_v48, %v2270_v33  ;;  %v3064_v50 = vmul.f32 %v3050_v23, %v2270_v33  ;;  %2457 = vrot.lane.b32.xlu1 %v5541_v8, %s6615_s27  ;;  %s390_s27 = scalar_lea.vmem [#allocation8], %s6641_s26 }
 0x383   : > { %2258 = vst [vmem:[#allocation2 + $0x110] sm:$0xf0] %v2250_v35  ;;  %3037 = vst [vmem:[#allocation2 + $0x70] sm:$0xf0] %v3029_v40  ;;  %v3196_v41 = vld [vmem:[#allocation2 + $0x58] sm:$0xf]  ;;  %v2374_v40 = vrot.slane %v5686_v34, %v4864_v6 }
 0x384   : > { %2301 = vst [vmem:[#allocation2 + $0x108] sm:$0xf] %v2297_v24  ;;  %3068 = vst [vmem:[#allocation2 + $0x38] sm:$0xf] %v3064_v50  ;;  %4254 = vmatpush1.msk.msra.mxu0 %vm1673_vm4, %v3196_v41  ;;  %v5777_v4 = vpop.permute.xlu1 %2261  ;;  %s4156_s13 = sshll.u32 %s390_s27, 4  ;;  %s4157_s13 = int_to_ptr.vmem [resolvable:$true] %s4156_s13 }
 0x385   : > { %v2271_v8 = vsel %vm708_vm3, %v5777_v4, %v2264_v45  ;;  %v5782_v52 = vpop.permute.xlu0 %2167  ;;  %v2332_v45 = vrot.slane %v5661_v37, %v4897_v15  ;;  %v2978_v37 = vrot.slane %v5790_v21, %v4866_v7  ;;  %s4489_s23 = scalar_lea.vmem %s4157_s13, 256  ;;  %p4496_p10 = scmp.lt.s32.totalorder %s4157_s13, %s4494_s1 }
 0x386   : > { %v2296_v55 = vmul.f32 %v2282_v39, %v2271_v8  ;;  %v3063_v59 = vmul.f32 %v3046_v43, %v2271_v8  ;;  %v3130_v8 = vrot.slane %v5688_v36, %v4897_v15  ;;  %p4490_p8 = scmp.ne.s32.totalorder %s4157_s13, %s4489_s23  ;;  %p4497_p2 = scmp.lt.s32.totalorder %s4495_s20, %s4489_s23 }
 0x388   : > { %2300 = vst [vmem:[#allocation2 + $0x150] sm:$0xf] %v2296_v55  ;;  %3067 = vst [vmem:[#allocation2 + $0x128] sm:$0xf] %v3063_v59  ;;  %v5800_v44 = vpop.permute.xlu1 %2115  ;;  %p4491_p11 = pnand %p4490_p8, %p6642_p3  ;;  %p4498_p13 = por %p4497_p2, %p4496_p10 }
 0x389   : > { %v2120_v58 = vsel %vm552_vm5, %v2114_v10, %v5800_v44  ;;  %v2310_v11 = vpop.permute.xlu0 %2309 }
 0x38a   : > { %v2147_v17 = vmul.f32 %v2136_v16, %v2120_v58  ;;  %v2950_v48 = vmul.f32 %v2936_v0, %v2120_v58  ;;  %v2311_v20 = vsel %vm752_vm1, %v5673_v60, %v2310_v11  ;;  %v2314_v49 = vsel %vm752_vm1, %v2310_v11, %v5690_v38  ;;  %p4492_p7 = pneg %p4491_p11 }
 0x38b   : > { %v2337_v19 = vmul.f32 %v2320_v25, %v2314_v49  ;;  %v2340_v23 = vmul.f32 %v2332_v45, %v2311_v20  ;;  %v3095_v30 = vmul.f32 %v3084_v46, %v2311_v20  ;;  %v3096_v29 = vmul.f32 %v3088_v54, %v2314_v49  ;;  %v3193_v9 = vld [vmem:[#allocation2 + $0x38] sm:$0xff] }
 0x38c   : > { %v2155_v51 = vrot.slane %v2147_v17, 4  ;;  %v2958_v61 = vrot.slane %v2950_v48, 4  ;;  %v5819_v35 = vpop.permute.xlu1 %2169  ;;  %3227 = vmatprep.subr.mxu0 %v3193_v9  ;;  %v2386_v60 = vrot.slane %v5686_v34, %v4897_v15  ;;  %v3126_v34 = vrot.slane %v5688_v36, %v4895_v14  ;;  %v3509_v36 = vld [vmem:[%s6564_s7] sm:$0xf]  ;;  %p4499_p0 = pnand %p4498_p13, %p4492_p7 }
 0x38d   : > { %v2345_v33 = vrot.slane %v2337_v19, 4  ;;  %v2348_v24 = vrot.slane %v2340_v23, 4  ;;  %v3103_v50 = vrot.slane %v3095_v30, 4  ;;  %v3104_v38 = vrot.slane %v3096_v29, 4  ;;  %v5825_v39 = vpop.permute.xlu0 %2111  ;;  %3512 = vperm.xlu1 %4358, %v3509_v36  }
 0x38e   : > { %2163 = vst [vmem:[#allocation2 + $0x130] sm:$0xf0] %v2155_v51  ;;  %2966 = vst [vmem:[#allocation2 + $0x100] sm:$0xf0] %v2958_v61  ;;  %v2174_v43 = vsel %vm608_vm6, %v5782_v52, %v5819_v35  ;;  %v2121_v41 = vsel %vm552_vm5, %v5825_v39, %v2114_v10  ;;  %v2186_v10 = vrot.slane %v5784_v28, %v4866_v7 }
 0x38f   : > { %2353 = vst [vmem:[#allocation2 + $0x120] sm:$0xf0] %v2345_v33  ;;  %2356 = vst [vmem:[#allocation2 + $0x60] sm:$0xf0] %v2348_v24  ;;  %v2201_v55 = vmul.f32 %v2190_v62, %v2174_v43  ;;  %v2992_v59 = vmul.f32 %v2978_v37, %v2174_v43  ;;  %v2146_v16 = vmul.f32 %v2132_v32, %v2121_v41  ;;  %v3192_v25 = vld [vmem:[#allocation2 + $0x128] sm:$0xff] }
 0x390   : > { %3111 = vst [vmem:[#allocation2 + $0x88] sm:$0xf0] %v3103_v50  ;;  %3112 = vst [vmem:[#allocation2 + $0x170] sm:$0xf0] %v3104_v38  ;;  %v2949_v0 = vmul.f32 %v2932_v53, %v2121_v41  ;;  %v2364_v45 = vpop.permute.xlu1 %2363  ;;  %3228 = vmatpush1.msra.mxu0 %v3192_v25  ;;  %v2974_v46 = vrot.slane %v5790_v21, %v4864_v6  ;;  %v3016_v33 = vrot.slane %v5718_v22, %v4897_v15 }
 0x391   : > { %2205 = vst [vmem:[#allocation2 + $0x118] sm:$0xf] %v2201_v55  ;;  %2996 = vst [vmem:[#allocation2 + $0x78] sm:$0xf] %v2992_v59  ;;  %v2154_v54 = vrot.slane %v2146_v16, 4  ;;  %v2365_v58 = vsel %vm808_vm0, %v5703_v57, %v2364_v45  ;;  %v2368_v11 = vsel %vm808_vm0, %v2364_v45, %v5720_v42  ;;  %v5851_v37 = vpop.permute.xlu0 %2017  ;;  %vm6616_vm0 = vcmp.lt.s32.totalorder %v4905_v18, 121 }
 0x392   : > { %v2957_v62 = vrot.slane %v2949_v0, 4  ;;  %v2391_v32 = vmul.f32 %v2374_v40, %v2368_v11  ;;  %v2394_v53 = vmul.f32 %v2386_v60, %v2365_v58  ;;  %v3137_v17 = vmul.f32 %v3126_v34, %v2365_v58  ;;  %v5853_v20 = vld [vmem:[#allocation6 + $0x1] ss:$8 sm:$0xf]  ;;  %vm6617_vm1 = vmmov %vm6616_vm0 }
 0x393   : > { %v3138_v48 = vmul.f32 %v3130_v8, %v2368_v11  ;;  %2162 = vst [vmem:[#allocation2 + $0x168] sm:$0xf0] %v2154_v54  ;;  %v5855_v49 = vld [vmem:[#allocation6 + $0x43] ss:$8 sm:$0xf]  ;;  %v2040_v9 = vrot.slane %v5853_v20, %v4895_v14  ;;  %v2224_v40 = vrot.slane %v5716_v31, %v4864_v6  ;;  %v3012_v60 = vrot.slane %v5718_v22, %v4895_v14 }
 0x394   : > { %2965 = vst [vmem:[#allocation2 + $0x10] sm:$0xf0] %v2957_v62  ;;  %2395 = vst [vmem:[#allocation2 + $0xe0] sm:$0xf] %v2391_v32  ;;  %v5857_v57 = vpop.permute.xlu1 %2165  ;;  %v2864_v51 = vrot.slane %v5855_v49, %v4866_v7  ;;  %v2036_v22 = vrot.slane %v5853_v20, %v4866_v7  ;;  %v2860_v34 = vrot.slane %v5855_v49, %v4864_v6 }
 0x395   : > { %2398 = vst [vmem:[#allocation2 + $0x140] sm:$0xf] %v2394_v53  ;;  %3141 = vst [vmem:[#allocation2 + $0x30] sm:$0xf] %v3137_v17  ;;  %v2175_v42 = vsel %vm608_vm6, %v5857_v57, %v5782_v52  ;;  %v5863_v19 = vpop.permute.xlu0 %2071  ;;  %v2236_v52 = vrot.slane %v5716_v31, %v4897_v15  ;;  %v2278_v11 = vrot.slane %v5731_v56, %v4864_v6 }
 0x396   : > { %3142 = vst [vmem:[#allocation2 + $0x198] sm:$0xf] %v3138_v48  ;;  %v5865_v23 = vld [vmem:[#allocation6 + $0x2] ss:$8 sm:$0xf]  ;;  %v2200_v30 = vmul.f32 %v2186_v10, %v2175_v42  ;;  %v2991_v29 = vmul.f32 %v2974_v46, %v2175_v42 }
 0x397   : > { %v5871_v61 = vld [vmem:[#allocation6 + $0x44] ss:$8 sm:$0xf]  ;;  %v2094_v38 = vrot.slane %v5865_v23, %v4895_v14 }
 0x398   : > { %2204 = vst [vmem:[#allocation2 + $0x110] sm:$0xf] %v2200_v30  ;;  %2995 = vst [vmem:[#allocation2 + $0x70] sm:$0xf] %v2991_v29  ;;  %v5881_v24 = vpop.permute.xlu1 %2019  ;;  %v3189_v50 = vld [vmem:[#allocation2 + $0x78] sm:$0xff]  ;;  %v2906_v41 = vrot.slane %v5871_v61, %v4866_v7  ;;  %v3054_v30 = vrot.slane %v5739_v5, %v4895_v14  ;;  %v3058_v29 = vrot.slane %v5739_v5, %v4897_v15 }
 0x399   : > { %v2024_v43 = vsel %vm452_vm7, %v5851_v37, %v5881_v24  ;;  %3229 = vmatprep.subr.mxu0 %v3189_v50  ;;  %v2214_v31 = vpop.permute.xlu0 %2213  ;;  %v2902_v50 = vrot.slane %v5871_v61, %v4864_v6 }
 0x39a   : > { %v2051_v8 = vmul.f32 %v2040_v9, %v2024_v43  ;;  %v2878_v55 = vmul.f32 %v2864_v51, %v2024_v43  ;;  %v2215_v59 = vsel %vm652_vm2, %v5741_v63, %v2214_v31  ;;  %v2218_v16 = vsel %vm652_vm2, %v2214_v31, %v5749_v12 }
 0x39b   : > { %v2241_v0 = vmul.f32 %v2224_v40, %v2218_v16  ;;  %v2244_v25 = vmul.f32 %v2236_v52, %v2215_v59  ;;  %v3023_v45 = vmul.f32 %v3012_v60, %v2215_v59  ;;  %v3024_v10 = vmul.f32 %v3016_v33, %v2218_v16  ;;  %v5935_v59 = vld [vmem:[#allocation6] ss:$8 sm:$0xf]  ;;  %v5937_v16 = vld [vmem:[#allocation6 + $0x42] ss:$8 sm:$0xf] }
 0x39c   : > { %v3198_v36 = vld [vmem:[#allocation2 + $0x30] sm:$0xf]  ;;  %v2059_v54 = vrot.slane %v2051_v8, 4  ;;  %v2886_v62 = vrot.slane %v2878_v55, 4  ;;  %v5902_v58 = vpop.permute.xlu1 %2073  ;;  %v2290_v63 = vrot.slane %v5731_v56, %v4897_v15  ;;  %vm6618_vm2 = vcmp.lt.s32.totalorder %v4905_v18, 120 }
 0x39d   : > { %v3199_v46 = vld [vmem:[#allocation2 + $0x198] sm:$0xf]  ;;  %v2249_v32 = vrot.slane %v2241_v0, 4  ;;  %v2252_v12 = vrot.slane %v2244_v25, 4  ;;  %v3031_v53 = vrot.slane %v3023_v45, 4  ;;  %v3032_v17 = vrot.slane %v3024_v10, 4  ;;  %v5908_v48 = vpop.permute.xlu0 %2015 }
 0x39e   : > { %4256 = vmatprep.subr.msk.mxu1 %vm1673_vm4, %v3199_v46  ;;  %2067 = vst [vmem:[#allocation2 + $0xd8] sm:$0xf0] %v2059_v54  ;;  %2894 = vst [vmem:[#allocation2 + $0xa8] sm:$0xf0] %v2886_v62  ;;  %v2078_v42 = vsel %vm508_vm8, %v5863_v19, %v5902_v58  ;;  %v2025_v56 = vsel %vm452_vm7, %v5908_v48, %v5851_v37  ;;  %v2090_v37 = vrot.slane %v5865_v23, %v4866_v7 }
 0x39f   : > { %4257 = vmatpush1.msk.msra.mxu1 %vm1673_vm4, %v3198_v36  ;;  %2257 = vst [vmem:[#allocation2 + $0x180] sm:$0xf0] %v2249_v32  ;;  %2260 = vst [vmem:[#allocation2 + $0x98] sm:$0xf0] %v2252_v12  ;;  %v2105_v9 = vmul.f32 %v2094_v38, %v2078_v42  ;;  %v2920_v51 = vmul.f32 %v2906_v41, %v2078_v42  ;;  %v2050_v40 = vmul.f32 %v2036_v22, %v2025_v56  ;;  %v3188_v60 = vld [vmem:[#allocation2 + $0x70] sm:$0xff] }
 0x3a0   : > { %3039 = vst [vmem:[#allocation2 + $0xa0] sm:$0xf0] %v3031_v53  ;;  %3040 = vst [vmem:[#allocation2 + $0x158] sm:$0xf0] %v3032_v17  ;;  %v2877_v52 = vmul.f32 %v2860_v34, %v2025_v56  ;;  %v2268_v33 = vpop.permute.xlu1 %2267  ;;  %3230 = vmatpush1.msra.mxu0 %v3188_v60  ;;  %v2128_v0 = vrot.slane %v5772_v13, %v4864_v6  ;;  %v2944_v25 = vrot.slane %v5774_v1, %v4897_v15 }
 0x3a1   : > { %2109 = vst [vmem:[#allocation2 + $0x130] sm:$0xf] %v2105_v9  ;;  %2924 = vst [vmem:[#allocation2 + $0x100] sm:$0xf] %v2920_v51  ;;  %v2058_v5 = vrot.slane %v2050_v40, 4  ;;  %v2269_v38 = vsel %vm708_vm3, %v5761_v27, %v2268_v33  ;;  %v2272_v31 = vsel %vm708_vm3, %v2268_v33, %v5777_v4  ;;  %v5933_v41 = vpop.permute.xlu0 %1975  ;;  %v2140_v27 = vrot.slane %v5772_v13, %v4897_v15 }
 0x3a2   : > { %v2885_v43 = vrot.slane %v2877_v52, 4  ;;  %v2295_v22 = vmul.f32 %v2278_v11, %v2272_v31  ;;  %v2298_v34 = vmul.f32 %v2290_v63, %v2269_v38  ;;  %v3065_v8 = vmul.f32 %v3054_v30, %v2269_v38  ;;  %v5979_v60 = vld [vmem:[#allocation6 + $0x41] ss:$8 sm:$0xf]  ;;  %vm6619_vm3 = vmmov %vm6618_vm2 }
 0x3a3   : > { %v3066_v55 = vmul.f32 %v3058_v29, %v2272_v31  ;;  %2066 = vst [vmem:[#allocation2 + $0x1b0] sm:$0xf0] %v2058_v5  ;;  %v2940_v4 = vrot.slane %v5774_v1, %v4895_v14  ;;  %v1998_v13 = vrot.slane %v5935_v59, %v4895_v14  ;;  %v2834_v36 = vrot.slane %v5937_v16, %v4866_v7 }
 0x3a4   : > { %2893 = vst [vmem:[#allocation2 + $0x40] sm:$0xf0] %v2885_v43  ;;  %2299 = vst [vmem:[#allocation2 + $0x120] sm:$0xf] %v2295_v22  ;;  %v5947_v45 = vpop.permute.xlu1 %2069  ;;  %v2182_v42 = vrot.slane %v5784_v28, %v4864_v6  ;;  %v2194_v51 = vrot.slane %v5784_v28, %v4897_v15  ;;  %v2982_v40 = vrot.slane %v5790_v21, %v4895_v14 }
 0x3a5   : > { %2302 = vst [vmem:[#allocation2 + $0x60] sm:$0xf] %v2298_v34  ;;  %3069 = vst [vmem:[#allocation2 + $0x88] sm:$0xf] %v3065_v8  ;;  %v2079_v10 = vsel %vm508_vm8, %v5947_v45, %v5863_v19  ;;  %v2118_v46 = vpop.permute.xlu0 %2117  ;;  %v2986_v52 = vrot.slane %v5790_v21, %v4897_v15  ;;  %v1994_v28 = vrot.slane %v5935_v59, %v4866_v7 }
 0x3a6   : > { %3070 = vst [vmem:[#allocation2 + $0x170] sm:$0xf] %v3066_v55  ;;  %v2104_v54 = vmul.f32 %v2090_v37, %v2079_v10  ;;  %v2919_v1 = vmul.f32 %v2902_v50, %v2079_v10  ;;  %v2119_v62 = vsel %vm552_vm5, %v5800_v44, %v2118_v46  ;;  %v2122_v11 = vsel %vm552_vm5, %v2118_v46, %v5825_v39 }
 0x3a7   : > { %v2145_v63 = vmul.f32 %v2128_v0, %v2122_v11  ;;  %v2148_v32 = vmul.f32 %v2140_v27, %v2119_v62  ;;  %v2951_v19 = vmul.f32 %v2940_v4, %v2119_v62  ;;  %v2952_v12 = vmul.f32 %v2944_v25, %v2122_v11 }
 0x3a8   : > { %2108 = vst [vmem:[#allocation2 + $0x168] sm:$0xf] %v2104_v54  ;;  %2923 = vst [vmem:[#allocation2 + $0x10] sm:$0xf] %v2919_v1  ;;  %v5963_v53 = vpop.permute.xlu1 %1977  ;;  %v3185_v17 = vld [vmem:[#allocation2 + $0x100] sm:$0xff]  ;;  %v2830_v38 = vrot.slane %v5937_v16, %v4864_v6  ;;  %v2792_v34 = vrot.slane %v5979_v60, %v4866_v7  ;;  %v2032_v8 = vrot.slane %v5853_v20, %v4864_v6  ;;  %vm6620_vm5 = vcmp.lt.s32.totalorder %v4905_v18, 7 }
 0x3a9   : > { %v2153_v56 = vrot.slane %v2145_v63, 4  ;;  %v2156_v30 = vrot.slane %v2148_v32, 4  ;;  %v2959_v29 = vrot.slane %v2951_v19, 4  ;;  %v2960_v44 = vrot.slane %v2952_v12, 4  ;;  %3231 = vmatprep.subr.mxu0 %v3185_v17  ;;  %v5967_v9 = vpop.permute.xlu0 %2773  ;;  %vm6627_vm12 = vmmov %vm6620_vm5 }
 0x3aa   : > { %v1982_v39 = vsel %vm409_vm9, %v5933_v41, %v5963_v53  ;;  %v2868_v10 = vrot.slane %v5855_v49, %v4895_v14  ;;  %v2872_v46 = vrot.slane %v5855_v49, %v4897_v15  ;;  %v2788_v11 = vrot.slane %v5979_v60, %v4864_v6 }
 0x3ab   : > { %2161 = vst [vmem:[#allocation2 + $0x50] sm:$0xf0] %v2153_v56  ;;  %2164 = vst [vmem:[#allocation2 + $0x48] sm:$0xf0] %v2156_v30  ;;  %v2009_v33 = vmul.f32 %v1998_v13, %v1982_v39  ;;  %v2848_v37 = vmul.f32 %v2834_v36, %v1982_v39  ;;  %v2086_v30 = vrot.slane %v5865_v23, %v4864_v6 }
 0x3ac   : > { %2967 = vst [vmem:[#allocation2 + $0x160] sm:$0xf0] %v2959_v29  ;;  %2968 = vst [vmem:[#allocation2 + $0x20] sm:$0xf0] %v2960_v44  ;;  %v3194_v5 = vld [vmem:[#allocation2 + $0x88] sm:$0xff]  ;;  %v2172_v43 = vpop.permute.xlu1 %2171 }
 0x3ad   : > { %v3195_v50 = vld [vmem:[#allocation2 + $0x170] sm:$0xff]  ;;  %2013 = vst [vmem:[#allocation2 + $0xd8] sm:$0xf] %v2009_v33  ;;  %2852 = vst [vmem:[#allocation2 + $0xa8] sm:$0xf] %v2848_v37  ;;  %v2173_v21 = vsel %vm608_vm6, %v5819_v35, %v2172_v43  ;;  %v2176_v31 = vsel %vm608_vm6, %v2172_v43, %v5857_v57  ;;  %v5991_v22 = vpop.permute.xlu0 %1973  ;;  %v2044_v57 = vrot.slane %v5853_v20, %v4897_v15  ;;  %vm6621_vm6 = vcmp.lt.s32.totalorder %v4905_v18, 1 }
 0x3ae   : > { %3298 = vmatprep.subr.mxu1 %v3195_v50  ;;  %v2199_v55 = vmul.f32 %v2182_v42, %v2176_v31  ;;  %v2202_v0 = vmul.f32 %v2194_v51, %v2173_v21  ;;  %v2993_v27 = vmul.f32 %v2982_v40, %v2173_v21  ;;  %v2994_v4 = vmul.f32 %v2986_v52, %v2176_v31  ;;  %v6035_v37 = vld [vmem:[#allocation6 + $0x27] ss:$8 sm:$0xf]  ;;  %vm6626_vm11 = vmmov %vm6621_vm6 }
 0x3af   : > { %3299 = vmatpush1.msra.mxu1 %v3194_v5  ;;  %v1983_v35 = vsel %vm409_vm9, %v5991_v22, %v5933_v41  ;;  %v3184_v25 = vld [vmem:[#allocation2 + $0x10] sm:$0xff]  ;;  %v2098_v40 = vrot.slane %v5865_v23, %v4897_v15  ;;  %v2910_v52 = vrot.slane %v5871_v61, %v4895_v14  ;;  %v2914_v33 = vrot.slane %v5871_v61, %v4897_v15 }
 0x3b0   : > { %2203 = vst [vmem:[#allocation2 + $0x180] sm:$0xf] %v2199_v55  ;;  %2206 = vst [vmem:[#allocation2 + $0x98] sm:$0xf] %v2202_v0  ;;  %v2008_v13 = vmul.f32 %v1994_v28, %v1983_v35  ;;  %v2847_v36 = vmul.f32 %v2830_v38, %v1983_v35  ;;  %v6007_v54 = vpop.permute.xlu1 %2775  ;;  %3232 = vmatpush1.msra.mxu0 %v3184_v25  ;;  %v2696_v31 = vrot.slane %v6035_v37, %v4866_v7  ;;  %v3153_v18 = vld [vmem:[#allocation2 + $0x110] sm:$0xff] }
 0x3b1   : > { %2997 = vst [vmem:[#allocation2 + $0xa0] sm:$0xf] %v2993_v27  ;;  %2998 = vst [vmem:[#allocation2 + $0x158] sm:$0xf] %v2994_v4  ;;  %v2780_v20 = vsel %vm1231_vm10, %v5967_v9, %v6007_v54  ;;  %v2022_v41 = vpop.permute.xlu0 %2021  ;;  %v2692_v27 = vrot.slane %v6035_v37, %v4864_v6 }
 0x3b2   : > { %2012 = vst [vmem:[#allocation2 + $0x1b0] sm:$0xf] %v2008_v13  ;;  %2851 = vst [vmem:[#allocation2 + $0x40] sm:$0xf] %v2847_v36  ;;  %v2806_v1 = vmul.f32 %v2792_v34, %v2780_v20  ;;  %v2023_v49 = vsel %vm452_vm7, %v5881_v24, %v2022_v41  ;;  %v2026_v62 = vsel %vm452_vm7, %v2022_v41, %v5908_v48 }
 0x3b3   : > { %v2049_v63 = vmul.f32 %v2032_v8, %v2026_v62  ;;  %v2052_v32 = vmul.f32 %v2044_v57, %v2023_v49  ;;  %v2879_v19 = vmul.f32 %v2868_v10, %v2023_v49  ;;  %v2880_v12 = vmul.f32 %v2872_v46, %v2026_v62  ;;  %vm6622_vm7 = vmmov %vm6618_vm2 }
 0x3b4   : > { %v2814_v17 = vrot.slane %v2806_v1, 4  ;;  %v6021_v42 = vpop.permute.xlu1 %2771  ;;  %v3181_v56 = vld [vmem:[#allocation2 + $0xa8] sm:$0xff]  ;;  %v1990_v46 = vrot.slane %v5935_v59, %v4864_v6  ;;  %v2002_v36 = vrot.slane %v5935_v59, %v4897_v15  ;;  %v2838_v20 = vrot.slane %v5937_v16, %v4895_v14 }
 0x3b5   : > { %v2057_v29 = vrot.slane %v2049_v63, 4  ;;  %v2060_v24 = vrot.slane %v2052_v32, 4  ;;  %v2887_v44 = vrot.slane %v2879_v19, 4  ;;  %v2888_v39 = vrot.slane %v2880_v12, 4  ;;  %3233 = vmatprep.subr.mxu0 %v3181_v56  ;;  %v2678_v48 = vpop.permute.xlu0 %2677 }
 0x3b6   : > { %2822 = vst [vmem:[#allocation2 + $0x68] sm:$0xf0] %v2814_v17  ;;  %v2781_v51 = vsel %vm1231_vm10, %v6021_v42, %v5967_v9  ;;  %v2842_v41 = vrot.slane %v5937_v16, %v4897_v15 }
 0x3b7   : > { %2065 = vst [vmem:[#allocation2 + $0xb0] sm:$0xf0] %v2057_v29  ;;  %2068 = vst [vmem:[#allocation2 + $0x18] sm:$0xf0] %v2060_v24  ;;  %v2805_v50 = vmul.f32 %v2788_v11, %v2781_v51 }
 0x3b8   : > { %2895 = vst [vmem:[#allocation2 + $0xd0] sm:$0xf0] %v2887_v44  ;;  %2896 = vst [vmem:[#allocation2 + $0x1a0] sm:$0xf0] %v2888_v39  ;;  %v3191_v5 = vld [vmem:[#allocation2 + $0x158] sm:$0xff]  ;;  %v3190_v43 = vld [vmem:[#allocation2 + $0xa0] sm:$0xff]  ;;  %v2076_v28 = vpop.permute.xlu1 %2075 }
 0x3b9   : > { %3300 = vmatprep.subr.mxu1 %v3191_v5  ;;  %v2813_v9 = vrot.slane %v2805_v50, 4  ;;  %v2077_v23 = vsel %vm508_vm8, %v5902_v58, %v2076_v28  ;;  %v2080_v61 = vsel %vm508_vm8, %v2076_v28, %v5947_v45  ;;  %v3180_v38 = vld [vmem:[#allocation2 + $0x40] sm:$0xff]  ;;  %v2732_v21 = vpop.permute.xlu0 %2731  ;;  %v2796_v28 = vrot.slane %v5979_v60, %v4895_v14  ;;  %vm6623_vm8 = vmmov %vm6618_vm2 }
 0x3ba   : > { %3301 = vmatpush1.msra.mxu1 %v3190_v43  ;;  %v2103_v34 = vmul.f32 %v2086_v30, %v2080_v61  ;;  %v2106_v8 = vmul.f32 %v2098_v40, %v2077_v23  ;;  %v2921_v55 = vmul.f32 %v2910_v52, %v2077_v23  ;;  %v2922_v0 = vmul.f32 %v2914_v33, %v2080_v61  ;;  %v6047_v58 = vld [vmem:[#allocation6 + $0x40] ss:$8 sm:$0xf]  ;;  %v6082_v44 = vld [vmem:[#allocation6 + $0x26] ss:$8 sm:$0xf] }
 0x3bb   : > { %3234 = vmatpush1.msra.mxu0 %v3180_v38  ;;  %2821 = vst [vmem:[#allocation2] sm:$0xf0] %v2813_v9  ;;  %v2750_v10 = vrot.slane %v6047_v58, %v4866_v7  ;;  %v2746_v16 = vrot.slane %v6047_v58, %v4864_v6  ;;  %v2654_v51 = vrot.slane %v6082_v44, %v4866_v7  ;;  %v6107_v38 = vld [vmem:[#allocation6 + $0x23] ss:$8 sm:$0xf] }
 0x3bc   : > { %2107 = vst [vmem:[#allocation2 + $0x50] sm:$0xf] %v2103_v34  ;;  %2110 = vst [vmem:[#allocation2 + $0x48] sm:$0xf] %v2106_v8  ;;  %v6049_v45 = vpop.permute.xlu1 %2679  ;;  %v2650_v40 = vrot.slane %v6082_v44, %v4864_v6  ;;  %v2800_v9 = vrot.slane %v5979_v60, %v4897_v15 }
 0x3bd   : > { %2925 = vst [vmem:[#allocation2 + $0x160] sm:$0xf] %v2921_v55  ;;  %2926 = vst [vmem:[#allocation2 + $0x20] sm:$0xf] %v2922_v0  ;;  %v2684_v4 = vsel %vm6616_vm0, %v2678_v48, %v6049_v45  ;;  %v6054_v35 = vpop.permute.xlu0 %2675 }
 0x3be   : > { %v2710_v25 = vmul.f32 %v2696_v31, %v2684_v4  ;;  %v2685_v57 = vsel %vm6617_vm1, %v6054_v35, %v2678_v48  ;;  %v2516_v4 = vrot.slane %v6107_v38, %v4866_v7  ;;  %vm6631_vm1 = vmmov %vm6620_vm5 }
 0x3bf   : > { %v2709_v13 = vmul.f32 %v2692_v27, %v2685_v57  ;;  %v6119_v57 = vld [vmem:[#allocation6 + $0x24] ss:$8 sm:$0xf] }
 0x3c0   : > { %v2718_v1 = vrot.slane %v2710_v25, 4  ;;  %v6069_v49 = vpop.permute.xlu1 %2733 }
 0x3c1   : > { %v2717_v62 = vrot.slane %v2709_v13, 4  ;;  %v2738_v11 = vsel %vm6618_vm2, %v2732_v21, %v6069_v49  ;;  %v1980_v63 = vpop.permute.xlu0 %1979  ;;  %vm6632_vm2 = vmmov %vm6631_vm1 }
 0x3c2   : > { %2726 = vst [vmem:[#allocation2 + $0xc0] sm:$0xf0] %v2718_v1  ;;  %v2764_v32 = vmul.f32 %v2750_v10, %v2738_v11  ;;  %v1981_v59 = vsel %vm409_vm9, %v5963_v53, %v1980_v63  ;;  %v1984_v19 = vsel %vm409_vm9, %v1980_v63, %v5991_v22  ;;  %v2754_v1 = vrot.slane %v6047_v58, %v4895_v14  ;;  %vm6624_vm9 = vmmov %vm6616_vm0 }
 0x3c3   : > { %2725 = vst [vmem:[#allocation2 + $0x90] sm:$0xf0] %v2717_v62  ;;  %v2007_v12 = vmul.f32 %v1990_v46, %v1984_v19  ;;  %v2010_v17 = vmul.f32 %v2002_v36, %v1981_v59  ;;  %v2849_v56 = vmul.f32 %v2838_v20, %v1981_v59  ;;  %v2850_v30 = vmul.f32 %v2842_v41, %v1984_v19 }
 0x3c4   : > { %v3187_v29 = vld [vmem:[#allocation2 + $0x20] sm:$0xff]  ;;  %2768 = vst [vmem:[#allocation2 + $0x68] sm:$0xf] %v2764_v32  ;;  %v6084_v39 = vpop.permute.xlu1 %2729  ;;  %v2570_v20 = vrot.slane %v6119_v57, %v4866_v7  ;;  %v2758_v62 = vrot.slane %v6047_v58, %v4897_v15 }
 0x3c5   : > { %v3186_v24 = vld [vmem:[#allocation2 + $0x160] sm:$0xff]  ;;  %3302 = vmatprep.subr.mxu1 %v3187_v29  ;;  %2011 = vst [vmem:[#allocation2 + $0xb0] sm:$0xf] %v2007_v12  ;;  %2014 = vst [vmem:[#allocation2 + $0x18] sm:$0xf] %v2010_v17  ;;  %v2739_v53 = vsel %vm6619_vm3, %v6084_v39, %v2732_v21  ;;  %v6089_v22 = vpop.permute.xlu0 %2637 }
 0x3c6   : > { %2853 = vst [vmem:[#allocation2 + $0xd0] sm:$0xf] %v2849_v56  ;;  %2854 = vst [vmem:[#allocation2 + $0x1a0] sm:$0xf] %v2850_v30  ;;  %3303 = vmatpush1.msra.mxu1 %v3186_v24  ;;  %v2763_v48 = vmul.f32 %v2746_v16, %v2739_v53  ;;  %v2700_v16 = vrot.slane %v6035_v37, %v4895_v14  ;;  %v2704_v56 = vrot.slane %v6035_v37, %v4897_v15 }
 0x3c7   : > { %v2566_v24 = vrot.slane %v6119_v57, %v4864_v6 }
 0x3c8   : > { %2767 = vst [vmem:[#allocation2] sm:$0xf] %v2763_v48  ;;  %v2636_v52 = vpop.permute.xlu1 %2635 }
 0x3c9   : > { %v2642_v33 = vsel %vm1087_vm13, %v2636_v52, %v6089_v22  ;;  %v6098_v50 = vpop.permute.xlu0 %2633 }
 0x3ca   : > { %v2668_v5 = vmul.f32 %v2654_v51, %v2642_v33  ;;  %v2643_v43 = vsel %vm1087_vm13, %v6098_v50, %v2636_v52  ;;  %v2512_v52 = vrot.slane %v6107_v38, %v4864_v6 }
 0x3cb   : > { %v2667_v23 = vmul.f32 %v2650_v40, %v2643_v43  ;;  %v3177_v61 = vld [vmem:[#allocation2 + $0x68] sm:$0xff] }
 0x3cc   : > { %2672 = vst [vmem:[#allocation2 + $0xc0] sm:$0xf] %v2668_v5  ;;  %v2778_v21 = vpop.permute.xlu1 %2777  ;;  %3235 = vmatprep.subr.mxu0 %v3177_v61  ;;  %v6160_v5 = vld [vmem:[#allocation6 + $0x21] ss:$8 sm:$0xf] }
 0x3cd   : > { %v3183_v31 = vld [vmem:[#allocation2 + $0x1a0] sm:$0xff]  ;;  %v3182_v34 = vld [vmem:[#allocation2 + $0xd0] sm:$0xff]  ;;  %2671 = vst [vmem:[#allocation2 + $0x90] sm:$0xf] %v2667_v23  ;;  %v2779_v8 = vsel %vm1231_vm10, %v6007_v54, %v2778_v21  ;;  %v2782_v55 = vsel %vm1231_vm10, %v2778_v21, %v6021_v42  ;;  %v6115_v60 = vpop.permute.xlu0 %2497  ;;  %vm6625_vm10 = vmmov %vm6616_vm0  ;;  %v2420_v61 = vrot.slane %v6160_v5, %v4866_v7 }
 0x3ce   : > { %3304 = vmatprep.subr.mxu1 %v3183_v31  ;;  %v2807_v0 = vmul.f32 %v2796_v28, %v2779_v8  ;;  %v2808_v27 = vmul.f32 %v2800_v9, %v2782_v55  ;;  %v6166_v31 = vld [vmem:[#allocation6 + $0x22] ss:$8 sm:$0xf]  ;;  %vm6630_vm0 = vmmov %vm6628_vm14 }
 0x3cf   : > { %3305 = vmatpush1.msra.mxu1 %v3182_v34  ;;  %v3176_v25 = vld [vmem:[#allocation2] sm:$0xff]  ;;  %vm6634_vm3 = vmmov %vm6630_vm0 }
 0x3d0   : > { %v2815_v10 = vrot.slane %v2807_v0, 4  ;;  %v2816_v46 = vrot.slane %v2808_v27, 4  ;;  %v2496_v13 = vpop.permute.xlu1 %2495  ;;  %3236 = vmatpush1.msra.mxu0 %v3176_v25 }
 0x3d1   : > { %v2505_v54 = vsel %vm6620_vm5, %v2496_v13, %v6115_v60  ;;  %v6124_v42 = vpop.permute.xlu0 %2551  ;;  %vm6635_vm5 = vmmov %vm6630_vm0 }
 0x3d2   : > { %2823 = vst [vmem:[#allocation2 + $0x148] sm:$0xf0] %v2815_v10  ;;  %2824 = vst [vmem:[#allocation2 + $0x8] sm:$0xf0] %v2816_v46  ;;  %v2530_v36 = vmul.f32 %v2516_v4, %v2505_v54  ;;  %v2474_v10 = vrot.slane %v6166_v31, %v4866_v7  ;;  %v2416_v46 = vrot.slane %v6160_v5, %v4864_v6 }
 0x3d3   : > { %v3173_v41 = vld [vmem:[#allocation2 + $0xc0] sm:$0xff]  ;;  %v2658_v7 = vrot.slane %v6082_v44, %v4895_v14 }
 0x3d4   : > { %v2538_v11 = vrot.slane %v2530_v36, 4  ;;  %v2550_v63 = vpop.permute.xlu1 %2549  ;;  %3237 = vmatprep.subr.mxu0 %v3173_v41  ;;  %v3172_v32 = vld [vmem:[#allocation2 + $0x90] sm:$0xff] }
 0x3d5   : > { %v2559_v59 = vsel %vm6621_vm6, %v2550_v63, %v6124_v42  ;;  %v2736_v19 = vpop.permute.xlu0 %2735  ;;  %3238 = vmatpush1.msra.mxu0 %v3172_v32  ;;  %v2520_v32 = vrot.slane %v6107_v38, %v4895_v14 }
 0x3d6   : > { %2546 = vst [vmem:[#allocation2 + $0x1a8] sm:$0xf0] %v2538_v11  ;;  %v2584_v12 = vmul.f32 %v2570_v20, %v2559_v59  ;;  %v2737_v17 = vsel %vm6622_vm7, %v6069_v49, %v2736_v19  ;;  %v2740_v58 = vsel %vm6623_vm8, %v2736_v19, %v6084_v39  ;;  %v2662_v11 = vrot.slane %v6082_v44, %v4897_v15  ;;  %vm6636_vm7 = vmmov %vm6621_vm6 }
 0x3d7   : > { %v2765_v30 = vmul.f32 %v2754_v1, %v2737_v17  ;;  %v2766_v29 = vmul.f32 %v2758_v62, %v2740_v58  ;;  %v2524_v59 = vrot.slane %v6107_v38, %v4897_v15  ;;  %v2470_v44 = vrot.slane %v6166_v31, %v4864_v6 }
 0x3d8   : > { %2588 = vst [vmem:[#allocation2 + $0xf8] sm:$0xf] %v2584_v12  ;;  %v2682_v53 = vpop.permute.xlu1 %2681 }
 0x3d9   : > { %2769 = vst [vmem:[#allocation2 + $0x148] sm:$0xf] %v2765_v30  ;;  %2770 = vst [vmem:[#allocation2 + $0x8] sm:$0xf] %v2766_v29  ;;  %v2683_v49 = vsel %vm6624_vm9, %v6049_v45, %v2682_v53  ;;  %v2686_v39 = vsel %vm6625_vm10, %v2682_v53, %v6054_v35  ;;  %v6153_v48 = vpop.permute.xlu0 %2555  ;;  %v2424_v53 = vrot.slane %v6160_v5, %v4895_v14  ;;  %vm6639_vm10 = vcmask 883712  }
 0x3da   : > { %v2711_v37 = vmul.f32 %v2700_v16, %v2683_v49  ;;  %v2712_v51 = vmul.f32 %v2704_v56, %v2686_v39  ;;  %v2560_v40 = vsel %vm6626_vm11, %v6153_v48, %v2550_v63  ;;  %vm3515_vm11 = vcmask 31744  }
 0x3db   : > { %v2583_v33 = vmul.f32 %v2566_v24, %v2560_v40 }
 0x3dc   : > { %v2719_v43 = vrot.slane %v2711_v37, 4  ;;  %v2720_v45 = vrot.slane %v2712_v51, 4  ;;  %v2502_v28 = vpop.permute.xlu1 %2501 }
 0x3dd   : > { %2587 = vst [vmem:[#allocation2 + $0xe8] sm:$0xf] %v2583_v33  ;;  %v2506_v35 = vsel %vm6627_vm12, %v2502_v28, %v2496_v13  ;;  %v2402_v9 = vpop.permute.xlu0 %2401  ;;  %vm6640_vm12 = vmmov %vm6639_vm10 }
 0x3de   : > { %2727 = vst [vmem:[#allocation2 + $0x178] sm:$0xf0] %v2719_v43  ;;  %2728 = vst [vmem:[#allocation2 + $0xc8] sm:$0xf0] %v2720_v45  ;;  %v2529_v23 = vmul.f32 %v2512_v52, %v2506_v35 }
 0x3df   : > { %v3169_v21 = vld [vmem:[#allocation2 + $0xf8] sm:$0xff] }
 0x3e0   : > { %v2537_v34 = vrot.slane %v2529_v23, 4  ;;  %v2400_v8 = vpop.permute.xlu1 %2399  ;;  %3239 = vmatprep.subr.mxu0 %v3169_v21  ;;  %v3179_v55 = vld [vmem:[#allocation2 + $0x8] sm:$0xff] }
 0x3e1   : > { %v3178_v0 = vld [vmem:[#allocation2 + $0x148] sm:$0xff]  ;;  %v2409_v27 = vsel %vm6628_vm14, %v2400_v8, %v2402_v9  ;;  %3306 = vmatprep.subr.mxu1 %v3179_v55  ;;  %v6170_v4 = vpop.permute.xlu0 %2455  ;;  %v2482_v55 = vrot.slane %v6166_v31, %v4897_v15 }
 0x3e2   : > { %2545 = vst [vmem:[#allocation2 + $0x80] sm:$0xf0] %v2537_v34  ;;  %v2434_v25 = vmul.f32 %v2420_v61, %v2409_v27  ;;  %3307 = vmatpush1.msra.mxu1 %v3178_v0 }
 0x3e4   : > { %v2442_v13 = vrot.slane %v2434_v25, 4  ;;  %v2454_v54 = vpop.permute.xlu1 %2453  ;;  %v3168_v36 = vld [vmem:[#allocation2 + $0xe8] sm:$0xff] }
 0x3e5   : > { %v2463_v20 = vsel %vm6629_vm15, %v2454_v54, %v6170_v4  ;;  %v2406_v41 = vpop.permute.xlu0 %2405  ;;  %3240 = vmatpush1.msra.mxu0 %v3168_v36 }
 0x3e6   : > { %2450 = vst [vmem:[#allocation2 + $0x188] sm:$0xf0] %v2442_v13  ;;  %v2488_v1 = vmul.f32 %v2474_v10, %v2463_v20  ;;  %v2410_v62 = vsel %vm6630_vm0, %v2406_v41, %v2400_v8  ;;  %v2478_v8 = vrot.slane %v6166_v31, %v4895_v14  ;;  %v3157_v13 = vld [vmem:[#allocation2 + $0x150] sm:$0xff] }
 0x3e7   : > { %v2433_v63 = vmul.f32 %v2416_v46, %v2410_v62 }
 0x3e8   : > { %2492 = vst [vmem:[#allocation2 + $0x1a8] sm:$0xf] %v2488_v1  ;;  %v2640_v19 = vpop.permute.xlu1 %2639  ;;  %v3148_v1 = vld [vmem:[#allocation2 + $0x50] sm:$0xff] }
 0x3e9   : > { %v2441_v16 = vrot.slane %v2433_v63, 4  ;;  %v2641_v12 = vsel %vm1087_vm13, %v6089_v22, %v2640_v19  ;;  %v2644_v17 = vsel %vm1087_vm13, %v2640_v19, %v6098_v50  ;;  %v2500_v58 = vpop.permute.xlu0 %2499  ;;  %v2428_v50 = vrot.slane %v6160_v5, %v4897_v15  ;;  %vm6633_vm13 = vmmov %vm6629_vm15  ;;  %v3143_v63 = vld [vmem:[%s6561_s4] sm:$0xf] }
 0x3ea   : > { %v2669_v56 = vmul.f32 %v2658_v7, %v2641_v12  ;;  %v2670_v30 = vmul.f32 %v2662_v11, %v2644_v17  ;;  %v2503_v38 = vsel %vm6631_vm1, %v2500_v58, %v2502_v28  ;;  %v2504_v29 = vsel %vm6632_vm2, %v6115_v60, %v2500_v58  ;;  %vm6637_vm8 = vmmov %vm6633_vm13  ;;  %v3145_v11 = vld [vmem:[#allocation2 + $0x1b0] sm:$0xff]  ;;  %v3158_v12 = vld [vmem:[#allocation2 + $0x108] sm:$0xff] }
 0x3eb   : > { %2449 = vst [vmem:[#allocation2 + $0xe0] sm:$0xf0] %v2441_v16  ;;  %v2531_v24 = vmul.f32 %v2520_v32, %v2504_v29  ;;  %v2532_v22 = vmul.f32 %v2524_v59, %v2503_v38  ;;  %v2574_v60 = vrot.slane %v6119_v57, %v4895_v14  ;;  %v2578_v5 = vrot.slane %v6119_v57, %v4897_v15  ;;  %vm6638_vm9 = vmmov %vm6637_vm8  ;;  %v3144_v32 = vld [vmem:[#allocation2 + $0xb0] sm:$0xff]  ;;  %v3159_v16 = vld [vmem:[#allocation2 + $0x60] sm:$0xff] }
 0x3ec   : > { %2673 = vst [vmem:[#allocation2 + $0x178] sm:$0xf] %v2669_v56  ;;  %2674 = vst [vmem:[#allocation2 + $0xc8] sm:$0xf] %v2670_v30  ;;  %v2460_v6 = vpop.permute.xlu1 %2459  ;;  %v3508_v17 = vld [vmem:[%s6563_s6] sm:$0xf] }
 0x3ed   : > { %v2539_v49 = vrot.slane %v2531_v24, 4  ;;  %v2540_v39 = vrot.slane %v2532_v22, 4  ;;  %v2464_v37 = vsel %vm6633_vm13, %v2460_v6, %v2454_v54  ;;  %v2404_v51 = vpop.permute.xlu0 %2403  ;;  %v3161_v15 = vld [vmem:[#allocation2 + $0x188] sm:$0xff]  ;;  %v3156_v54 = vld [vmem:[#allocation2 + $0x120] sm:$0xff]  ;;  %v3155_v58 = vld [vmem:[#allocation2 + $0x98] sm:$0xff] }
 0x3ee   : > { %v2487_v40 = vmul.f32 %v2470_v44, %v2464_v37  ;;  %v2407_v52 = vsel %vm6634_vm3, %v2404_v51, %v2406_v41  ;;  %v2408_v33 = vsel %vm6635_vm5, %v2402_v9, %v2404_v51  ;;  %v3149_v41 = vld [vmem:[#allocation2 + $0x168] sm:$0xff]  ;;  %v6241_v44 = vld [vmem:[%s4752_s18] sm:$0xff]  ;;  %v3154_v56 = vld [vmem:[#allocation2 + $0x118] sm:$0xff] }
 0x3ef   : > { %2547 = vst [vmem:[#allocation2 + $0x1b8] sm:$0xf0] %v2539_v49  ;;  %2548 = vst [vmem:[#allocation2 + $0x28] sm:$0xf0] %v2540_v39  ;;  %v2435_v43 = vmul.f32 %v2424_v53, %v2408_v33  ;;  %v2436_v45 = vmul.f32 %v2428_v50, %v2407_v52  ;;  %v3165_v28 = vld [vmem:[#allocation2 + $0x1a8] sm:$0xff]  ;;  %v3150_v38 = vld [vmem:[#allocation2 + $0x130] sm:$0xff] }
 0x3f0   : > { %2491 = vst [vmem:[#allocation2 + $0x80] sm:$0xf] %v2487_v40  ;;  %v2554_v35 = vpop.permute.xlu1 %2553  ;;  %3241 = vmatprep.subr.mxu0 %v3165_v28  ;;  %v3151_v30 = vld [vmem:[#allocation2 + $0x48] sm:$0xff]  ;;  %v3147_v29 = vld [vmem:[#allocation2 + $0x18] sm:$0xff] }
 0x3f1   : > { %v2443_v23 = vrot.slane %v2435_v43, 4  ;;  %v2444_v61 = vrot.slane %v2436_v45, 4  ;;  %v2557_v21 = vsel %vm6621_vm6, %v2554_v35, %v6153_v48  ;;  %v2558_v9 = vsel %vm6636_vm7, %v6124_v42, %v2554_v35  ;;  %v3146_v24 = vld [vmem:[#allocation2 + $0xd8] sm:$0xff] }
 0x3f2   : > { %v2585_v34 = vmul.f32 %v2574_v60, %v2558_v9  ;;  %v2586_v57 = vmul.f32 %v2578_v5, %v2557_v21  ;;  %v3160_v31 = vld [vmem:[#allocation2 + $0xe0] sm:$0xff]  ;;  %v6252_v22 = vld [vmem:[%s4752_s18 + $0x8] sm:$0xff] }
 0x3f3   : > { %2451 = vst [vmem:[#allocation2 + $0x138] sm:$0xf0] %v2443_v23  ;;  %2452 = vst [vmem:[#allocation2 + $0x140] sm:$0xf0] %v2444_v61  ;;  %v3175_v0 = vld [vmem:[#allocation2 + $0xc8] sm:$0xff]  ;;  %v3174_v27 = vld [vmem:[#allocation2 + $0x178] sm:$0xff] }
 0x3f4   : > { %2589 = vst [vmem:[#allocation2 + $0x190] sm:$0xf] %v2585_v34  ;;  %2590 = vst [vmem:[#allocation2 + $0xb8] sm:$0xf] %v2586_v57  ;;  %v2458_v25 = vpop.permute.xlu1 %2457  ;;  %3308 = vmatprep.subr.mxu1 %v3175_v0 }
 0x3f5   : > { %v2461_v48 = vsel %vm6637_vm8, %v2458_v25, %v2460_v6  ;;  %v2462_v42 = vsel %vm6638_vm9, %v6170_v4, %v2458_v25  ;;  %3309 = vmatpush1.msra.mxu1 %v3174_v27  ;;  %v3152_v4 = vld [vmem:[#allocation2 + $0x180] sm:$0xff] }
 0x3f6   : > { %v2489_v14 = vmul.f32 %v2478_v8, %v2462_v42  ;;  %v2490_v10 = vmul.f32 %v2482_v55, %v2461_v48 }
 0x3f7   : > { %v3164_v46 = vld [vmem:[#allocation2 + $0x80] sm:$0xff] }
 0x3f8   : > { %2493 = vst [vmem:[#allocation2 + $0x1b8] sm:$0xf] %v2489_v14  ;;  %2494 = vst [vmem:[#allocation2 + $0x28] sm:$0xf] %v2490_v10  ;;  %3242 = vmatpush1.msra.mxu0 %v3164_v46 }
 0x3f9   : > { %3243 = vmatprep.subr.mxu0 %v3161_v15 }
 0x3fa   : > { %3244 = vmatpush1.msra.mxu0 %v3160_v31  ;;  %v3163_v59 = vld [vmem:[#allocation2 + $0x140] sm:$0xff]  ;;  %v3162_v19 = vld [vmem:[#allocation2 + $0x138] sm:$0xff]  ;;  %v3204_v50 = vpop.permute.xlu0 %3203 }
 0x3fb   : > { %3245 = vmatprep.subr.mxu0 %v3157_v13  ;;  %v3171_v36 = vld [vmem:[#allocation2 + $0xb8] sm:$0xff]  ;;  %v3170_v20 = vld [vmem:[#allocation2 + $0x190] sm:$0xff] }
 0x3fc   : > { %3246 = vmatpush1.msra.mxu0 %v3156_v54  ;;  %3310 = vmatprep.subr.mxu1 %v3171_v36 }
 0x3fd   : > { %3247 = vmatprep.subr.mxu0 %v3153_v18  ;;  %3311 = vmatpush1.msra.mxu1 %v3170_v20 }
 0x3fe   : > { %3248 = vmatpush1.msra.mxu0 %v3152_v4 }
 0x3ff   : > { %3249 = vmatprep.subr.mxu0 %v3149_v41  ;;  %v3167_v62 = vld [vmem:[#allocation2 + $0x28] sm:$0xff]  ;;  %v3166_v7 = vld [vmem:[#allocation2 + $0x1b8] sm:$0xff] }
 0x400   : > { %3250 = vmatpush1.msra.mxu0 %v3148_v1  ;;  %3312 = vmatprep.subr.mxu1 %v3167_v62 }
 0x401   : > { %3251 = vmatprep.subr.mxu0 %v3145_v11  ;;  %3313 = vmatpush1.msra.mxu1 %v3166_v7 }
 0x402   : > { %3252 = vmatpush1.msra.mxu0 %v3144_v32  ;;  %3314 = vmatprep.subr.mxu1 %v3163_v59 }
 0x403   : > { %4255 = vmatmul.mubr.msk.f32.vlgmr.msra.gmra.mxu0 %vm6639_vm10, %v3143_v63  ;;  %3315 = vmatpush1.msra.mxu1 %v3162_v19 }
 0x404   : > { %3316 = vmatprep.subr.mxu1 %v3159_v16  ;;  %4259 = vmatprep.subr.msk.mxu0 %vm1673_vm4, %v4778_v2 }
 0x405   : > { %3317 = vmatpush1.msra.mxu1 %v3158_v12  ;;  %4260 = vmatpush1.msk.msra.mxu0 %vm1673_vm4, %v6241_v44 }
 0x406   : > { %3318 = vmatprep.subr.mxu1 %v3155_v58  ;;  %3591 = vmatprep.mubr.f32.mxu0 %v4580_v47 }
 0x407   : > { %3319 = vmatpush1.msra.mxu1 %v3154_v56  ;;  %4261 = vmatmul.mubr.msk.f32.vlgmr.msra.gmra.mxu0 %vm3515_vm11, %v3508_v17  ;;  %v3819_v56 = vld [vmem:[%s6566_s9] sm:$0xf] }
 0x408   : > { %3320 = vmatprep.subr.mxu1 %v3151_v30  ;;  %3904 = vmatprep.mubr.f32.mxu0 %v4580_v47  ;;  %v3513_v49 = vpop.permute.xlu1 %3512 }
 0x409   : > { %3321 = vmatpush1.msra.mxu1 %v3150_v38 }
 0x40a   : > { %3322 = vmatprep.subr.mxu1 %v3147_v29 }
 0x40b   : > { %3323 = vmatpush1.msra.mxu1 %v3146_v24 }
 0x40c   : > { %4258 = vmatmul.mubr.msk.f32.vlgmr.msra.gmra.mxu1 %vm6640_vm12, %v3143_v63  ;;  %4262 = vmatprep.subr.msk.mxu1 %vm1673_vm4, %v4806_v3 }
 0x40d   : > { %4263 = vmatpush1.msk.msra.mxu1 %vm1673_vm4, %v6252_v22  ;;  %3662 = vmatprep.mubr.f32.mxu1 %v4580_v47 }
 0x410   : > { %4264 = vmatmul.mubr.msk.f32.vlgmr.msra.gmra.mxu1 %vm3515_vm11, %v3508_v17 }
 0x411   : > { %3975 = vmatprep.mubr.f32.mxu1 %v4580_v47 }
 0x4c3   : > { %v3287_v53 = vpop.f32.mrf.mxu0 }
 0x4c4   : > { %v6259_v39 = vadd.f32 %v3287_v53, %v3204_v50 }
 0x4c5   : > { %v3289_v6 = vpop.f32.mrf.mxu0 }
 0x4c6   : > { %v6261_v37 = vadd.f32 %v3289_v6, %v3204_v50  ;;  %v3372_v33 = vmul.f32 %v6259_v39, %v6259_v39  ;;  %v3363_v45 = vsel %vm1673_vm4, %v6259_v39, 0.0 }
 0x4c7   : > { %v3593_v51 = vpop.f32.mrf.mxu0 }
 0x4c8   : > { %v6263_v60 = vadd.f32 %v3593_v51, %v3513_v49  ;;  %v3373_v40 = vmul.f32 %v6261_v37, %v6261_v37  ;;  %v3364_v43 = vsel %vm1673_vm4, %v6261_v37, 0.0  ;;  %v3376_v34 = vsel %vm1673_vm4, %v3372_v33, 0.0 }
 0x4c9   : > { %v3595_v52 = vpop.f32.mrf.mxu0  ;;  %v3365_v57 = vadd.f32 %v3364_v43, %v3363_v45 }
 0x4ca   : > { %v3678_v47 = vmul.f32 %v6263_v60, %v6263_v60  ;;  %v6271_v5 = vadd.f32 %v3595_v52, %v3513_v49  ;;  %v3377_v23 = vsel %vm1673_vm4, %v3373_v40, 0.0  ;;  %v3669_v21 = vsel %vm1673_vm4, %v6263_v60, 0.0 }
 0x4cb   : > { %v3378_v46 = vadd.f32 %v3377_v23, %v3376_v34 }
 0x4cc   : > { %v3358_v28 = vpop.f32.mrf.mxu1  ;;  %v3679_v35 = vmul.f32 %v6271_v5, %v6271_v5  ;;  %v3670_v9 = vsel %vm1673_vm4, %v6271_v5, 0.0  ;;  %v3682_v55 = vsel %vm1673_vm4, %v3678_v47, 0.0 }
 0x4cd   : > { %v6280_v61 = vadd.f32 %v3358_v28, %v3204_v50  ;;  %v3671_v42 = vadd.f32 %v3670_v9, %v3669_v21 }
 0x4ce   : > { %v3360_v8 = vpop.f32.mrf.mxu1  ;;  %v3683_v48 = vsel %vm1673_vm4, %v3679_v35, 0.0 }
 0x4cf   : > { %v3366_v0 = vsel %vm1673_vm4, %v6280_v61, 0.0  ;;  %v3374_v27 = vmul.f32 %v6280_v61, %v6280_v61  ;;  %v3361_v25 = vadd.f32 %v3360_v8, %v3204_v50  ;;  %v3684_v4 = vadd.f32 %v3683_v48, %v3682_v55 }
 0x4d0   : > { %v3664_v14 = vpop.f32.mrf.mxu1  ;;  %v3367_v10 = vadd.f32 %v3366_v0, %v3365_v57 }
 0x4d1   : > { %v3375_v15 = vmul.f32 %v3361_v25, %v3361_v25  ;;  %v6293_v31 = vadd.f32 %v3664_v14, %v3513_v49  ;;  %v3368_v13 = vsel %vm1673_vm4, %v3361_v25, 0.0  ;;  %v3379_v54 = vsel %vm1673_vm4, %v3374_v27, 0.0 }
 0x4d2   : > { %v3666_v36 = vpop.f32.mrf.mxu1  ;;  %v3369_v20 = vadd.f32 %v3368_v13, %v3367_v10  ;;  %v3380_v18 = vadd.f32 %v3379_v54, %v3378_v46 }
 0x4d3   : > { %v3672_v41 = vsel %vm1673_vm4, %v6293_v31, 0.0  ;;  %v3680_v1 = vmul.f32 %v6293_v31, %v6293_v31  ;;  %v3667_v62 = vadd.f32 %v3666_v36, %v3513_v49  ;;  %v3381_v7 = vsel %vm1673_vm4, %v3375_v15, 0.0 }
 0x4d4   : > { %3370 = vadd.xlane.f32.xlu0 %v3369_v20  ;;  %v3673_v11 = vadd.f32 %v3672_v41, %v3671_v42  ;;  %v3382_v16 = vadd.f32 %v3381_v7, %v3380_v18 }
 0x4d5   : > { %v3681_v63 = vmul.f32 %v3667_v62, %v3667_v62  ;;  %v3674_v32 = vsel %vm1673_vm4, %v3667_v62, 0.0  ;;  %v3685_v59 = vsel %vm1673_vm4, %v3680_v1, 0.0 }
 0x4d6   : > { %v3675_v19 = vadd.f32 %v3674_v32, %v3673_v11  ;;  %v3686_v12 = vadd.f32 %v3685_v59, %v3684_v4 }
 0x4d7   : > { %v3687_v17 = vsel %vm1673_vm4, %v3681_v63, 0.0 }
 0x4d8   : > { %3676 = vadd.xlane.f32.xlu1 %v3675_v19  ;;  %3383 = vadd.xlane.f32.xlu0 %v3382_v16  ;;  %v3688_v58 = vadd.f32 %v3687_v17, %v3686_v12 }
 0x4dc   : > { %3689 = vadd.xlane.f32.xlu0 %v3688_v58 }
 0x4e9   : > { %3822 = vperm.xlu1 %4358, %v3819_v56  }
 0x55d   : > { %v3371_v30 = vpop.xlane.xlu0 %3370 }
 0x55e   : > { %v3385_v38 = vmul.f32 0.001953125, %v3371_v30 }
 0x560   : > { %v3387_v6 = vmul.f32 %v3385_v38, %v3385_v38  ;;  %v3391_v35 = vsub.f32 %v6261_v37, %v3385_v38  ;;  %v3393_v23 = vsub.f32 %v3361_v25, %v3385_v38  ;;  %v3390_v48 = vsub.f32 %v6259_v39, %v3385_v38 }
 0x561   : > { %v3677_v29 = vpop.xlane.xlu1 %3676  ;;  %v3384_v24 = vpop.xlane.xlu0 %3383  ;;  %v3392_v41 = vsub.f32 %v6280_v61, %v3385_v38 }
 0x562   : > { %v3691_v53 = vmul.f32 0.001953125, %v3677_v29  ;;  %v3386_v50 = vmul.f32 0.001953125, %v3384_v24 }
 0x564   : > { %v3388_v49 = vsub.f32 %v3386_v50, %v3387_v6  ;;  %v3693_v40 = vmul.f32 %v3691_v53, %v3691_v53  ;;  %v3697_v57 = vsub.f32 %v6271_v5, %v3691_v53  ;;  %v3699_v8 = vsub.f32 %v3667_v62, %v3691_v53 }
 0x565   : > { %v3690_v51 = vpop.xlane.xlu0 %3689  ;;  %v3696_v62 = vsub.f32 %v6263_v60, %v3691_v53  ;;  %v3698_v19 = vsub.f32 %v6293_v31, %v3691_v53 }
 0x566   : > { %v3692_v52 = vmul.f32 0.001953125, %v3690_v51  ;;  %v3389_v33 = vmax.f32 %v3388_v49, 0.0 }
 0x568   : > { %v3694_v47 = vsub.f32 %v3692_v52, %v3693_v40  ;;  %v3394_v43 = vadd.f32 1e-05, %v3389_v33 }
 0x56a   : > { %v3695_v45 = vmax.f32 %v3694_v47, 0.0  ;;  %4379 = vrsqrt.f32 %v3394_v43 }
 0x56c   : > { %v3700_v28 = vadd.f32 1e-05, %v3695_v45 }
 0x56e   : > { %4381 = vrsqrt.f32 %v3700_v28 }
 0x577   : > { %v4380_v21 = vpop.eup %4379 }
 0x578   : > { %v3397_v9 = vmul.f32 %v4380_v21, %v3391_v35  ;;  %v3399_v34 = vmul.f32 %v4380_v21, %v3393_v23  ;;  %v6318_v25 = vmul.f32 %v4380_v21, %v3390_v48  ;;  %v6331_v63 = vmul.f32 %v4380_v21, %v3392_v41 }
 0x57a   : > { %v3405_v0 = vmul.f32 0.70710677, %v3397_v9  ;;  %v6310_v27 = vmul.f32 0.70710677, %v3399_v34  ;;  %v6325_v18 = vmul.f32 0.70710677, %v6318_v25 }
 0x57b   : > { %v4382_v55 = vpop.eup %4381  ;;  %v6340_v60 = vmul.f32 0.70710677, %v6331_v63  ;;  %v6348_v50 = vmul.f32 0.5, %v3397_v9  ;;  %v6350_v6 = vmul.f32 0.5, %v3399_v34 }
 0x57c   : > { %v3703_v42 = vmul.f32 %v4382_v55, %v3697_v57  ;;  %v6313_v14 = vmul.f32 %v4382_v55, %v3699_v8  ;;  %v3417_v10 = vand.u32 2147483647, %v3405_v0  ;;  %v3419_v46 = vand.u32 2147483647, %v6310_v27 }
 0x57d   : > { %v3416_v11 = vand.u32 2147483647, %v6325_v18  ;;  %v6333_v59 = vmul.f32 %v4382_v55, %v3696_v62  ;;  %v6342_v56 = vmul.f32 %v4382_v55, %v3698_v19  ;;  %vm3409_vm14 = vcmp.ge.f32.partialorder %v3405_v0, 0.0 }
 0x57e   : > { %v6316_v37 = vmul.f32 0.70710677, %v3703_v42  ;;  %v3421_v15 = vmul.f32 0.3275911, %v3417_v10  ;;  %v3423_v13 = vmul.f32 0.3275911, %v3419_v46 }
 0x57f   : > { %v6322_v54 = vmul.f32 0.70710677, %v6313_v14  ;;  %v3473_v16 = vsub.f32 0.0, %v3417_v10  ;;  %v3420_v12 = vmul.f32 0.3275911, %v3416_v11  ;;  %v3475_v17 = vsub.f32 0.0, %v3419_v46 }
 0x580   : > { %v3723_v5 = vand.u32 2147483647, %v6316_v37  ;;  %v3425_v36 = vadd.f32 1.0, %v3421_v15  ;;  %v3427_v20 = vadd.f32 1.0, %v3423_v13  ;;  %v6337_v61 = vmul.f32 0.70710677, %v6333_v59 }
 0x581   : > { %v3725_v4 = vand.u32 2147483647, %v6322_v54  ;;  %v3424_v58 = vadd.f32 1.0, %v3420_v12  ;;  %v3477_v29 = vmul.f32 %v3473_v16, %v3417_v10  ;;  %v3479_v31 = vmul.f32 %v3475_v17, %v3419_v46 }
 0x582   : > { %v3727_v39 = vmul.f32 0.3275911, %v3723_v5  ;;  %4383 = vrcp.f32 %v3425_v36  ;;  %v3779_v30 = vsub.f32 0.0, %v3723_v5  ;;  %v3722_v38 = vand.u32 2147483647, %v6337_v61 }
 0x583   : > { %4385 = vrcp.f32 %v3427_v20  ;;  %v3729_v7 = vmul.f32 0.3275911, %v3725_v4  ;;  %v6346_v53 = vand.u32 2147483647, %v6340_v60  ;;  %vm3411_vm15 = vcmp.ge.f32.partialorder %v6310_v27, 0.0 }
 0x584   : > { %v3731_v1 = vadd.f32 1.0, %v3727_v39  ;;  %v3726_v24 = vmul.f32 0.3275911, %v3722_v38  ;;  %v6354_v49 = vmul.f32 0.70710677, %v6342_v56  ;;  %v3783_v51 = vmul.f32 %v3779_v30, %v3723_v5 }
 0x585   : > { %v3733_v32 = vadd.f32 1.0, %v3729_v7  ;;  %v3781_v40 = vsub.f32 0.0, %v3725_v4  ;;  %v3422_v33 = vmul.f32 0.3275911, %v6346_v53  ;;  %v6360_v43 = vsel %vm3409_vm14, 1.0, %v4582_v26 }
 0x586   : > { %4387 = vrcp.f32 %v3731_v1  ;;  %v3730_v52 = vadd.f32 1.0, %v3726_v24  ;;  %v3482_v45 = vmul.f32 1.442695, %v3477_v29  ;;  %v6362_v28 = vmul.f32 0.5, %v3703_v42 }
 0x587   : > { %4389 = vrcp.f32 %v3733_v32  ;;  %v6365_v35 = vand.u32 2147483647, %v6354_v49  ;;  %v3486_v9 = vmul.f32 1.442695, %v3479_v31  ;;  %v3426_v34 = vadd.f32 1.0, %v3422_v33 }
 0x588   : > { %4391 = vrcp.f32 %v3424_v58  ;;  %vm3715_vm0 = vcmp.ge.f32.partialorder %v6316_v37, 0.0  ;;  %v3472_v8 = vsub.f32 0.0, %v3416_v11  ;;  %v3788_v42 = vmul.f32 1.442695, %v3783_v51 }
 0x589   : > { %4393 = vrcp.f32 %v3730_v52  ;;  %v3728_v55 = vmul.f32 0.3275911, %v6365_v35  ;;  %v6378_v10 = vsel %vm3411_vm15, 1.0, %v4582_v26  ;;  %v3785_v46 = vmul.f32 %v3781_v40, %v3725_v4 }
 0x58a   : > { %v3778_v5 = vsub.f32 0.0, %v3722_v38  ;;  %4395 = vrcp.f32 %v3426_v34  ;;  %v6383_v36 = vsel %vm3715_vm0, 1.0, %v4582_v26  ;;  %v3476_v1 = vmul.f32 %v3472_v8, %v3416_v11 }
 0x58b   : > { %4397 = vpow2.f32 %v3482_v45  ;;  %v3732_v20 = vadd.f32 1.0, %v3728_v55  ;;  %v3792_v7 = vmul.f32 1.442695, %v3785_v46  ;;  %vm3717_vm1 = vcmp.ge.f32.partialorder %v6322_v54, 0.0 }
 0x58c   : > { %4399 = vpow2.f32 %v3486_v9  ;;  %v3782_v16 = vmul.f32 %v3778_v5, %v3722_v38  ;;  %v3474_v30 = vsub.f32 0.0, %v6346_v53  ;;  %v3480_v24 = vmul.f32 1.442695, %v3476_v1 }
 0x58d   : > { %4401 = vrcp.f32 %v3732_v20  ;;  %v3780_v38 = vsub.f32 0.0, %v6365_v35  ;;  %v6404_v34 = vsel %vm3717_vm1, 1.0, %v4582_v26  ;;  %vm3408_vm2 = vcmp.ge.f32.partialorder %v6325_v18, 0.0 }
 0x58e   : > { %4403 = vpow2.f32 %v3788_v42  ;;  %v3478_v8 = vmul.f32 %v3474_v30, %v6346_v53  ;;  %vm3714_vm13 = vcmp.ge.f32.partialorder %v6337_v61, 0.0  ;;  %vm3410_vm3 = vcmp.ge.f32.partialorder %v6340_v60, 0.0 }
 0x58f   : > { %v6357_v47 = vpop.eup %4383  ;;  %4405 = vpow2.f32 %v3792_v7  ;;  %v3784_v54 = vmul.f32 %v3780_v38, %v6365_v35  ;;  %vm3716_vm5 = vcmp.ge.f32.partialorder %v6354_v49, 0.0  ;;  %v3402_v49 = vmul.f32 0.5, %v6331_v63 }
 0x590   : > { %v6367_v23 = vpop.eup %4385  ;;  %v3437_v21 = vmul.f32 1.0614054, %v6357_v47  ;;  %4407 = vpow2.f32 %v3480_v24 }
 0x591   : > { %v3439_v57 = vmul.f32 1.0614054, %v6367_v23 }
 0x592   : > { %v3441_v48 = vadd.f32 -1.4531521, %v3437_v21  ;;  %v3786_v21 = vmul.f32 1.442695, %v3782_v16 }
 0x593   : > { %v6373_v0 = vpop.eup %4387  ;;  %v3443_v13 = vadd.f32 -1.4531521, %v3439_v57 }
 0x594   : > { %v3743_v15 = vmul.f32 1.0614054, %v6373_v0  ;;  %v3445_v37 = vmul.f32 %v6357_v47, %v3441_v48  ;;  %v6385_v39 = vpop.eup %4389  ;;  %4409 = vpow2.f32 %v3786_v21 }
 0x595   : > { %v3447_v27 = vmul.f32 %v6367_v23, %v3443_v13  ;;  %v3745_v62 = vmul.f32 1.0614054, %v6385_v39  ;;  %v6390_v12 = vpop.eup %4391 }
 0x596   : > { %v3747_v41 = vadd.f32 -1.4531521, %v3743_v15  ;;  %v3449_v4 = vadd.f32 1.4214138, %v3445_v37  ;;  %v3436_v31 = vmul.f32 1.0614054, %v6390_v12  ;;  %v6407_v55 = vpop.eup %4393 }
 0x597   : > { %v3451_v19 = vadd.f32 1.4214138, %v3447_v27  ;;  %v3749_v58 = vadd.f32 -1.4531521, %v3745_v62  ;;  %v3742_v5 = vmul.f32 1.0614054, %v6407_v55  ;;  %v6415_v53 = vpop.eup %4395 }
 0x598   : > { %v3751_v32 = vmul.f32 %v6373_v0, %v3747_v41  ;;  %v3453_v17 = vmul.f32 %v6357_v47, %v3449_v4  ;;  %v3440_v45 = vadd.f32 -1.4531521, %v3436_v31  ;;  %v3484_v62 = vmul.f32 1.442695, %v3478_v8  ;;  %v4398_v7 = vpop.eup %4397 }
 0x599   : > { %v3455_v29 = vmul.f32 %v6367_v23, %v3451_v19  ;;  %v3753_v40 = vmul.f32 %v6385_v39, %v3749_v58  ;;  %v3746_v4 = vadd.f32 -1.4531521, %v3742_v5  ;;  %v3438_v35 = vmul.f32 1.0614054, %v6415_v53 }
 0x59a   : > { %v3755_v11 = vadd.f32 1.4214138, %v3751_v32  ;;  %v3457_v51 = vadd.f32 -0.28449672, %v3453_v17  ;;  %v3444_v46 = vmul.f32 %v6390_v12, %v3440_v45  ;;  %v4400_v17 = vpop.eup %4399  ;;  %4411 = vpow2.f32 %v3484_v62 }
 0x59b   : > { %v3459_v33 = vadd.f32 -0.28449672, %v3455_v29  ;;  %v3757_v57 = vadd.f32 1.4214138, %v3753_v40  ;;  %v3790_v29 = vmul.f32 1.442695, %v3784_v54  ;;  %v6423_v31 = vpop.eup %4401 }
 0x59c   : > { %v3759_v52 = vmul.f32 %v6373_v0, %v3755_v11  ;;  %v3461_v9 = vmul.f32 %v6357_v47, %v3457_v51  ;;  %v3448_v41 = vadd.f32 1.4214138, %v3444_v46  ;;  %v3750_v11 = vmul.f32 %v6407_v55, %v3746_v4  ;;  %v4404_v38 = vpop.eup %4403 }
 0x59d   : > { %v3463_v42 = vmul.f32 %v6367_v23, %v3459_v33  ;;  %v3761_v13 = vmul.f32 %v6385_v39, %v3757_v57  ;;  %v3442_v40 = vadd.f32 -1.4531521, %v3438_v35  ;;  %v4406_v46 = vpop.eup %4405  ;;  %4413 = vpow2.f32 %v3790_v29 }
 0x59e   : > { %v3763_v48 = vadd.f32 -0.28449672, %v3759_v52  ;;  %v3465_v15 = vadd.f32 0.2548296, %v3461_v9  ;;  %v3452_v16 = vmul.f32 %v6390_v12, %v3448_v41  ;;  %v3754_v33 = vadd.f32 1.4214138, %v3750_v11  ;;  %v4408_v4 = vpop.eup %4407 }
 0x59f   : > { %v3467_v20 = vadd.f32 0.2548296, %v3463_v42  ;;  %v3765_v1 = vadd.f32 -0.28449672, %v3761_v13  ;;  %v3446_v57 = vmul.f32 %v6415_v53, %v3442_v40  ;;  %v3744_v42 = vmul.f32 1.0614054, %v6423_v31 }
 0x5a0   : > { %v3767_v37 = vmul.f32 %v6373_v0, %v3763_v48  ;;  %v3469_v27 = vmul.f32 %v6357_v47, %v3465_v15  ;;  %v3456_v51 = vadd.f32 -0.28449672, %v3452_v16  ;;  %v3412_v29 = vsel %vm3408_vm2, 1.0, %v4582_v26 }
 0x5a1   : > { %v3471_v19 = vmul.f32 %v6367_v23, %v3467_v20  ;;  %v3769_v30 = vmul.f32 %v6385_v39, %v3765_v1  ;;  %v3450_v54 = vadd.f32 1.4214138, %v3446_v57  ;;  %v3748_v41 = vadd.f32 -1.4531521, %v3744_v42 }
 0x5a2   : > { %v3771_v32 = vadd.f32 0.2548296, %v3767_v37  ;;  %v3489_v58 = vmul.f32 %v4398_v7, %v3469_v27  ;;  %v3460_v9 = vmul.f32 %v6390_v12, %v3456_v51 }
 0x5a3   : > { %v3491_v24 = vmul.f32 %v4400_v17, %v3471_v19  ;;  %v3773_v52 = vadd.f32 0.2548296, %v3769_v30  ;;  %v3454_v1 = vmul.f32 %v6415_v53, %v3450_v54  ;;  %v4410_v17 = vpop.eup %4409  ;;  %v3414_v54 = vsel %vm3410_vm3, 1.0, %v4582_v26 }
 0x5a4   : > { %v3775_v47 = vmul.f32 %v6373_v0, %v3771_v32  ;;  %v3493_v23 = vsub.f32 1.0, %v3489_v58  ;;  %v3758_v0 = vmul.f32 %v6407_v55, %v3754_v33  ;;  %v3464_v5 = vadd.f32 0.2548296, %v3460_v9 }
 0x5a5   : > { %v3495_v21 = vsub.f32 1.0, %v3491_v24  ;;  %v3777_v48 = vmul.f32 %v6385_v39, %v3773_v52  ;;  %v3458_v35 = vadd.f32 -0.28449672, %v3454_v1  ;;  %v3709_v58 = vmul.f32 0.5, %v6313_v14 }
 0x5a6   : > { %v3795_v45 = vmul.f32 %v4404_v38, %v3775_v47  ;;  %v3497_v8 = vmul.f32 %v3493_v23, %v6360_v43  ;;  %v3762_v20 = vadd.f32 -0.28449672, %v3758_v0  ;;  %v3468_v39 = vmul.f32 %v6390_v12, %v3464_v5 }
 0x5a7   : > { %v3499_v13 = vmul.f32 %v3495_v21, %v6378_v10  ;;  %v3797_v37 = vmul.f32 %v4406_v46, %v3777_v48  ;;  %v3752_v10 = vmul.f32 %v6423_v31, %v3748_v41  ;;  %v3462_v51 = vmul.f32 %v6415_v53, %v3458_v35  ;;  %v4412_v21 = vpop.eup %4411 }
 0x5a8   : > { %v3799_v15 = vsub.f32 1.0, %v3795_v45  ;;  %v3501_v27 = vadd.f32 1.0, %v3497_v8  ;;  %v3766_v7 = vmul.f32 %v6407_v55, %v3762_v20  ;;  %v3488_v16 = vmul.f32 %v4408_v4, %v3468_v39 }
 0x5a9   : > { %v3801_v62 = vsub.f32 1.0, %v3797_v37  ;;  %v3503_v19 = vadd.f32 1.0, %v3499_v13  ;;  %v3756_v12 = vadd.f32 1.4214138, %v3752_v10  ;;  %v3718_v8 = vsel %vm3714_vm13, 1.0, %v4582_v26 }
 0x5aa   : > { %v3803_v43 = vmul.f32 %v3799_v15, %v6383_v36  ;;  %v3770_v30 = vadd.f32 0.2548296, %v3766_v7  ;;  %v3505_v11 = vmul.f32 %v3501_v27, %v6348_v50  ;;  %v3492_v24 = vsub.f32 1.0, %v3488_v16  ;;  %v4414_v5 = vpop.eup %4413 }
 0x5ab   : > { %v3805_v36 = vmul.f32 %v3801_v62, %v6404_v34  ;;  %v3760_v14 = vmul.f32 %v6423_v31, %v3756_v12  ;;  %v3507_v34 = vmul.f32 %v3503_v19, %v6350_v6  ;;  %v3466_v50 = vadd.f32 0.2548296, %v3462_v51 }
 0x5ac   : > { %v3807_v32 = vadd.f32 1.0, %v3803_v43  ;;  %v3774_v38 = vmul.f32 %v6407_v55, %v3770_v30  ;;  %v3400_v46 = vmul.f32 0.5, %v6318_v25  ;;  %v3706_v15 = vmul.f32 0.5, %v6333_v59  ;;  %v3818_v25 = vld [vmem:[%s6565_s8] sm:$0xf] }
 0x5ad   : > { %v3809_v40 = vadd.f32 1.0, %v3805_v36  ;;  %v3764_v45 = vadd.f32 -0.28449672, %v3760_v14  ;;  %v3470_v18 = vmul.f32 %v6415_v53, %v3466_v50  ;;  %v3720_v59 = vsel %vm3716_vm5, 1.0, %v4582_v26 }
 0x5ae   : > { %v3811_v47 = vmul.f32 %v3807_v32, %v6362_v28  ;;  %v3496_v28 = vmul.f32 %v3492_v24, %v3412_v29  ;;  %v3794_v33 = vmul.f32 %v4410_v17, %v3774_v38  ;;  %v3708_v1 = vmul.f32 0.5, %v6342_v56  ;;  %v3823_v32 = vpop.permute.xlu1 %3822 }
 0x5af   : > { %v3813_v52 = vmul.f32 %v3809_v40, %v3709_v58  ;;  %v3768_v55 = vmul.f32 %v6423_v31, %v3764_v45  ;;  %v3490_v48 = vmul.f32 %v4412_v21, %v3470_v18 }
 0x5b0   : > { %v3815_v23 = vadd.f32 %v3811_v47, %v3505_v11  ;;  %v3798_v57 = vsub.f32 1.0, %v3794_v33  ;;  %v3500_v61 = vadd.f32 1.0, %v3496_v28 }
 0x5b1   : > { %v3817_v9 = vadd.f32 %v3813_v52, %v3507_v34  ;;  %v3772_v0 = vadd.f32 0.2548296, %v3768_v55  ;;  %v3494_v42 = vsub.f32 1.0, %v3490_v48 }
 0x5b2   : > { %4265 = vmatprep.subr.msk.mxu0 %vm1673_vm4, %v3815_v23  ;;  %v3802_v6 = vmul.f32 %v3798_v57, %v3718_v8  ;;  %v3504_v37 = vmul.f32 %v3500_v61, %v3400_v46 }
 0x5b3   : > { %4268 = vmatprep.subr.msk.mxu1 %vm1673_vm4, %v3817_v9  ;;  %v3776_v13 = vmul.f32 %v6423_v31, %v3772_v0  ;;  %v3498_v41 = vmul.f32 %v3494_v42, %v3414_v54 }
 0x5b4   : > { %v3806_v53 = vadd.f32 1.0, %v3802_v6 }
 0x5b5   : > { %v3796_v27 = vmul.f32 %v4414_v5, %v3776_v13  ;;  %v3502_v31 = vadd.f32 1.0, %v3498_v41 }
 0x5b6   : > { %v3810_v20 = vmul.f32 %v3806_v53, %v3706_v15 }
 0x5b7   : > { %v3800_v60 = vsub.f32 1.0, %v3796_v27  ;;  %v3506_v62 = vmul.f32 %v3502_v31, %v3402_v49 }
 0x5b8   : > { %v3814_v43 = vadd.f32 %v3810_v20, %v3504_v37 }
 0x5b9   : > { %v3804_v39 = vmul.f32 %v3800_v60, %v3720_v59 }
 0x5ba   : > { %4266 = vmatpush1.msk.msra.mxu0 %vm1673_vm4, %v3814_v43 }
 0x5bb   : > { %4267 = vmatmul.mubr.msk.f32.vlgmr.msra.gmra.mxu0 %vm3515_vm11, %v3818_v25  ;;  %v3808_v4 = vadd.f32 1.0, %v3804_v39 }
 0x5bd   : > { %v3812_v7 = vmul.f32 %v3808_v4, %v3708_v1 }
 0x5bf   : > { %v3816_v10 = vadd.f32 %v3812_v7, %v3506_v62 }
 0x5c1   : > { %4269 = vmatpush1.msk.msra.mxu1 %vm1673_vm4, %v3816_v10 }
 0x5c2   : > { %4270 = vmatmul.mubr.msk.f32.vlgmr.msra.gmra.mxu1 %vm3515_vm11, %v3818_v25 }
 0x67b   : > { %v3906_v19 = vpop.f32.mrf.mxu0 }
 0x67c   : > { %v3907_v16 = vadd.f32 %v3906_v19, %v3823_v32 }
 0x67d   : > { %v3908_v35 = vpop.f32.mrf.mxu0 }
 0x67e   : > { %v3909_v17 = vadd.f32 %v3908_v35, %v3823_v32  ;;  %v3991_v58 = vmul.f32 %v3907_v16, %v3907_v16  ;;  %v3982_v63 = vsel %vm1673_vm4, %v3907_v16, 0.0 }
 0x680   : > { %v3983_v36 = vsel %vm1673_vm4, %v3909_v17, 0.0  ;;  %v3992_v30 = vmul.f32 %v3909_v17, %v3909_v17  ;;  %v3995_v47 = vsel %vm1673_vm4, %v3991_v58, 0.0 }
 0x681   : > { %v3984_v11 = vadd.f32 %v3983_v36, %v3982_v63 }
 0x682   : > { %v3996_v56 = vsel %vm1673_vm4, %v3992_v30, 0.0  ;;  %v3977_v12 = vpop.f32.mrf.mxu1 }
 0x683   : > { %v3978_v24 = vadd.f32 %v3977_v12, %v3823_v32  ;;  %v3997_v40 = vadd.f32 %v3996_v56, %v3995_v47 }
 0x684   : > { %v3979_v51 = vpop.f32.mrf.mxu1 }
 0x685   : > { %v3985_v29 = vsel %vm1673_vm4, %v3978_v24, 0.0  ;;  %v3993_v38 = vmul.f32 %v3978_v24, %v3978_v24  ;;  %v3980_v14 = vadd.f32 %v3979_v51, %v3823_v32 }
 0x686   : > { %v3986_v23 = vadd.f32 %v3985_v29, %v3984_v11 }
 0x687   : > { %v3994_v34 = vmul.f32 %v3980_v14, %v3980_v14  ;;  %v3987_v50 = vsel %vm1673_vm4, %v3980_v14, 0.0  ;;  %v3998_v52 = vsel %vm1673_vm4, %v3993_v38, 0.0 }
 0x688   : > { %v3988_v28 = vadd.f32 %v3987_v50, %v3986_v23  ;;  %v3999_v33 = vadd.f32 %v3998_v52, %v3997_v40 }
 0x689   : > { %v4000_v45 = vsel %vm1673_vm4, %v3994_v34, 0.0 }
 0x68a   : > { %3989 = vadd.xlane.f32.xlu0 %v3988_v28  ;;  %v4001_v21 = vadd.f32 %v4000_v45, %v3999_v33 }
 0x68e   : > { %4002 = vadd.xlane.f32.xlu0 %v4001_v21 }
 0x713   : > { %v3990_v18 = vpop.xlane.xlu0 %3989 }
 0x714   : > { %v4004_v9 = vmul.f32 0.001953125, %v3990_v18 }
 0x716   : > { %v4006_v55 = vmul.f32 %v4004_v9, %v4004_v9  ;;  %v4009_v0 = vsub.f32 %v3907_v16, %v4004_v9  ;;  %v4010_v42 = vsub.f32 %v3909_v17, %v4004_v9  ;;  %v4011_v46 = vsub.f32 %v3978_v24, %v4004_v9 }
 0x717   : > { %v4003_v57 = vpop.xlane.xlu0 %4002  ;;  %v4012_v15 = vsub.f32 %v3980_v14, %v4004_v9 }
 0x718   : > { %v4005_v8 = vmul.f32 0.001953125, %v4003_v57 }
 0x71a   : > { %v4007_v48 = vsub.f32 %v4005_v8, %v4006_v55 }
 0x71c   : > { %v4008_v61 = vmax.f32 %v4007_v48, 0.0 }
 0x71e   : > { %v4013_v6 = vadd.f32 1e-05, %v4008_v61 }
 0x720   : > { %4415 = vrsqrt.f32 %v4013_v6 }
 0x72d   : > { %v4416_v53 = vpop.eup %4415 }
 0x72e   : > { %v6480_v13 = vmul.f32 %v4416_v53, %v4009_v0  ;;  %v6482_v5 = vmul.f32 %v4416_v53, %v4010_v42  ;;  %v6484_v54 = vmul.f32 %v4416_v53, %v4011_v46  ;;  %v6486_v37 = vmul.f32 %v4416_v53, %v4012_v15 }
 0x730   : > { %v6489_v20 = vmul.f32 0.70710677, %v6480_v13  ;;  %v6492_v41 = vmul.f32 0.70710677, %v6482_v5  ;;  %v6495_v27 = vmul.f32 0.70710677, %v6484_v54 }
 0x731   : > { %v6498_v43 = vmul.f32 0.70710677, %v6486_v37 }
 0x732   : > { %v4035_v60 = vand.u32 2147483647, %v6489_v20  ;;  %v4036_v25 = vand.u32 2147483647, %v6492_v41  ;;  %v4037_v59 = vand.u32 2147483647, %v6495_v27 }
 0x733   : > { %v4038_v31 = vand.u32 2147483647, %v6498_v43  ;;  %vm4027_vm4 = vcmp.ge.f32.partialorder %v6489_v20, 0.0  ;;  %vm4028_vm6 = vcmp.ge.f32.partialorder %v6492_v41, 0.0  ;;  %vm4029_vm7 = vcmp.ge.f32.partialorder %v6495_v27, 0.0 }
 0x734   : > { %v4039_v39 = vmul.f32 0.3275911, %v4035_v60  ;;  %v4040_v49 = vmul.f32 0.3275911, %v4036_v25  ;;  %v4041_v1 = vmul.f32 0.3275911, %v4037_v59 }
 0x735   : > { %v4042_v4 = vmul.f32 0.3275911, %v4038_v31  ;;  %v4091_v19 = vsub.f32 0.0, %v4035_v60  ;;  %v4092_v16 = vsub.f32 0.0, %v4036_v25  ;;  %v4093_v35 = vsub.f32 0.0, %v4037_v59 }
 0x736   : > { %v4043_v62 = vadd.f32 1.0, %v4039_v39  ;;  %v4044_v7 = vadd.f32 1.0, %v4040_v49  ;;  %v4045_v10 = vadd.f32 1.0, %v4041_v1  ;;  %v4094_v17 = vsub.f32 0.0, %v4038_v31 }
 0x737   : > { %v4046_v32 = vadd.f32 1.0, %v4042_v4  ;;  %v4095_v58 = vmul.f32 %v4091_v19, %v4035_v60  ;;  %v4096_v36 = vmul.f32 %v4092_v16, %v4036_v25  ;;  %v4097_v30 = vmul.f32 %v4093_v35, %v4037_v59 }
 0x738   : > { %4417 = vrcp.f32 %v4043_v62  ;;  %v4098_v56 = vmul.f32 %v4094_v17, %v4038_v31  ;;  %vm4030_vm8 = vcmp.ge.f32.partialorder %v6498_v43, 0.0  ;;  %v4032_v20 = vsel %vm4028_vm6, 1.0, %v4582_v26 }
 0x739   : > { %4419 = vrcp.f32 %v4044_v7  ;;  %v4099_v47 = vmul.f32 1.442695, %v4095_v58  ;;  %v4101_v40 = vmul.f32 1.442695, %v4096_v36  ;;  %v4103_v23 = vmul.f32 1.442695, %v4097_v30 }
 0x73a   : > { %4421 = vrcp.f32 %v4045_v10  ;;  %v4105_v52 = vmul.f32 1.442695, %v4098_v56  ;;  %v4034_v27 = vsel %vm4030_vm8, 1.0, %v4582_v26  ;;  %v4020_v43 = vmul.f32 0.5, %v6482_v5 }
 0x73b   : > { %4423 = vrcp.f32 %v4046_v32 }
 0x73c   : > { %4425 = vpow2.f32 %v4099_v47 }
 0x73d   : > { %4427 = vpow2.f32 %v4101_v40  ;;  %v4033_v40 = vsel %vm4029_vm7, 1.0, %v4582_v26 }
 0x73e   : > { %4429 = vpow2.f32 %v4103_v23 }
 0x73f   : > { %4431 = vpow2.f32 %v4105_v52  ;;  %v4021_v52 = vmul.f32 0.5, %v6484_v54 }
 0x745   : > { %v4418_v63 = vpop.eup %4417 }
 0x746   : > { %v4420_v12 = vpop.eup %4419  ;;  %v4055_v11 = vmul.f32 1.0614054, %v4418_v63 }
 0x747   : > { %v4422_v24 = vpop.eup %4421  ;;  %v4056_v51 = vmul.f32 1.0614054, %v4420_v12 }
 0x748   : > { %v4424_v29 = vpop.eup %4423  ;;  %v4057_v38 = vmul.f32 1.0614054, %v4422_v24  ;;  %v4059_v14 = vadd.f32 -1.4531521, %v4055_v11 }
 0x749   : > { %v4058_v34 = vmul.f32 1.0614054, %v4424_v29  ;;  %v4060_v50 = vadd.f32 -1.4531521, %v4056_v51  ;;  %v4426_v7 = vpop.eup %4425 }
 0x74a   : > { %v4061_v28 = vadd.f32 -1.4531521, %v4057_v38  ;;  %v4063_v33 = vmul.f32 %v4418_v63, %v4059_v14  ;;  %v4428_v19 = vpop.eup %4427  ;;  %v4019_v38 = vmul.f32 0.5, %v6480_v13 }
 0x74b   : > { %v4062_v45 = vadd.f32 -1.4531521, %v4058_v34  ;;  %v4064_v21 = vmul.f32 %v4420_v12, %v4060_v50  ;;  %v4430_v17 = vpop.eup %4429 }
 0x74c   : > { %v4065_v18 = vmul.f32 %v4422_v24, %v4061_v28  ;;  %v4067_v9 = vadd.f32 1.4214138, %v4063_v33  ;;  %v4432_v30 = vpop.eup %4431 }
 0x74d   : > { %v4066_v57 = vmul.f32 %v4424_v29, %v4062_v45  ;;  %v4068_v55 = vadd.f32 1.4214138, %v4064_v21  ;;  %v4022_v45 = vmul.f32 0.5, %v6486_v37 }
 0x74e   : > { %v4069_v8 = vadd.f32 1.4214138, %v4065_v18  ;;  %v4071_v48 = vmul.f32 %v4418_v63, %v4067_v9 }
 0x74f   : > { %v4070_v61 = vadd.f32 1.4214138, %v4066_v57  ;;  %v4072_v6 = vmul.f32 %v4420_v12, %v4068_v55 }
 0x750   : > { %v4073_v0 = vmul.f32 %v4422_v24, %v4069_v8  ;;  %v4075_v42 = vadd.f32 -0.28449672, %v4071_v48 }
 0x751   : > { %v4074_v46 = vmul.f32 %v4424_v29, %v4070_v61  ;;  %v4076_v15 = vadd.f32 -0.28449672, %v4072_v6 }
 0x752   : > { %v4077_v53 = vadd.f32 -0.28449672, %v4073_v0  ;;  %v4079_v60 = vmul.f32 %v4418_v63, %v4075_v42 }
 0x753   : > { %v4078_v25 = vadd.f32 -0.28449672, %v4074_v46  ;;  %v4080_v59 = vmul.f32 %v4420_v12, %v4076_v15 }
 0x754   : > { %v4081_v31 = vmul.f32 %v4422_v24, %v4077_v53  ;;  %v4083_v39 = vadd.f32 0.2548296, %v4079_v60 }
 0x755   : > { %v4082_v49 = vmul.f32 %v4424_v29, %v4078_v25  ;;  %v4084_v1 = vadd.f32 0.2548296, %v4080_v59 }
 0x756   : > { %v4085_v4 = vadd.f32 0.2548296, %v4081_v31  ;;  %v4087_v62 = vmul.f32 %v4418_v63, %v4083_v39  ;;  %v4031_v63 = vsel %vm4027_vm4, 1.0, %v4582_v26 }
 0x757   : > { %v4086_v10 = vadd.f32 0.2548296, %v4082_v49  ;;  %v4088_v32 = vmul.f32 %v4420_v12, %v4084_v1 }
 0x758   : > { %v4089_v16 = vmul.f32 %v4422_v24, %v4085_v4  ;;  %v4107_v35 = vmul.f32 %v4426_v7, %v4087_v62 }
 0x759   : > { %v4090_v58 = vmul.f32 %v4424_v29, %v4086_v10  ;;  %v4108_v36 = vmul.f32 %v4428_v19, %v4088_v32 }
 0x75a   : > { %v4109_v56 = vmul.f32 %v4430_v17, %v4089_v16  ;;  %v4111_v11 = vsub.f32 1.0, %v4107_v35 }
 0x75b   : > { %v4110_v12 = vmul.f32 %v4432_v30, %v4090_v58  ;;  %v4112_v47 = vsub.f32 1.0, %v4108_v36 }
 0x75c   : > { %v4113_v24 = vsub.f32 1.0, %v4109_v56  ;;  %v4115_v51 = vmul.f32 %v4111_v11, %v4031_v63 }
 0x75d   : > { %v4114_v41 = vsub.f32 1.0, %v4110_v12  ;;  %v4116_v29 = vmul.f32 %v4112_v47, %v4032_v20 }
 0x75e   : > { %v4117_v14 = vmul.f32 %v4113_v24, %v4033_v40  ;;  %v4119_v23 = vadd.f32 1.0, %v4115_v51 }
 0x75f   : > { %v4118_v34 = vmul.f32 %v4114_v41, %v4034_v27  ;;  %v4120_v50 = vadd.f32 1.0, %v4116_v29 }
 0x760   : > { %v4121_v28 = vadd.f32 1.0, %v4117_v14  ;;  %v4123_v33 = vmul.f32 %v4119_v23, %v4019_v38 }
 0x761   : > { %v4122_v21 = vadd.f32 1.0, %v4118_v34  ;;  %v4124_v18 = vmul.f32 %v4120_v50, %v4020_v43 }
 0x762   : > { %v4125_v13 = vmul.f32 %v4121_v28, %v4021_v52  ;;  %v4127_v26 = vadd.f32 %v6241_v44, %v4123_v33 }
 0x763   : > { %v4126_v9 = vmul.f32 %v4122_v21, %v4022_v45  ;;  %v4128_v57 = vadd.f32 %v4124_v18, %v4778_v2 }
 0x764   : > { %v4129_v5 = vadd.f32 %v6252_v22, %v4125_v13 }
 0x765   : > { %v4130_v54 = vadd.f32 %v4126_v9, %v4806_v3  ;;  %v4135_v55 = vcombine.low %v4127_v26, %v4128_v57 }
 0x767   : > { %v4136_v37 = vcombine.low %v4129_v5, %v4130_v54  ;;  %4139 = vst [vmem:[%s390_s27] sm:$0xff] %v4135_v55 }
 0x769   : > { %4140 = vst [vmem:[%s390_s27 + $0x8] sm:$0xff] %v4136_v37 }
 0x76a   : > { %4502 = shalt.err (!%p4499_p0)
}
 0x76b   : > { %s4503_s18 = scalar_lea.hbm %s4154_s12, 256  ;;  %s4507_s21 = scalar_lea.hbm %s6567_s10, 512 }
 0x76c   : > { %p4504_p5 = scmp.ne.s32.totalorder %s4154_s12, %s4503_s18  ;;  %p4508_p1 = scmp.lt.s32.totalorder %s4154_s12, %s6567_s10 }
 0x76d   : > { %p4509_p4 = scmp.lt.s32.totalorder %s4507_s21, %s4503_s18 }
 0x76e   : > { %p4505_p9 = pnand %p4504_p5, %p6642_p3 }
 0x76f   : > { %p4510_p6 = por %p4509_p4, %p4508_p1 }
 0x770   : > { %p4506_p12 = pneg %p4505_p9 }
 0x772   : > { %p4511_p8 = pnand %p4510_p6, %p4506_p12 }
 0x774   : > { %4514 = shalt.err (!%p4511_p8)
}
 0x775   : > { %4284 = dma.vmem_to_hbm [thread:$0]  (%p6642_p3), %s4157_s13, 256, %s4154_s12, %s4142_s24  }
 0x776 PF: > { %s6643_s26 = sld [smem:[#allocation12_spill]]  ;;  %p6646_p7 = scmp.ge.s32.totalorder %s4557_s16, 2 }
 0x777   : > { %s6644_s27 = sld [smem:[#allocation13_spill]] }
 0x77c   : > { %s4168_s29 = sand.u32 1, %s6643_s26  }
 0x77d   : > { %p6645_p11 = scmp.ne.s32.totalorder %s6644_s27, 0  ;;  %s4169_s25 = scalar_lea.sflag [#allocation5], %s4168_s29 }
 0x77f   : > { %p4295_p10 = pnand %p6646_p7, %p6645_p11 }
 0x781   : > { %p4296_p2 = pneg %p4295_p10 }
 0x783   : > { %4540 = dma.done.wait (%p4296_p2), %s4169_s25, 256  }
 0x784   : > { %4542 = vsyncadd (%p4296_p2), %s4169_s25, 4294967040  ;;  %s6647_s16 = sld [smem:[#allocation14_spill]]  ;;  %s6649_s13 = smov %s4549_s14 }
 0x785   : > { %s6648_s23 = sld [smem:[#allocation15_spill]]  ;;  %s6650_s14 = smov %s4553_s15 }
 0x78a   : > { %p24_p13 = scmp.ge.s32.totalorder %s6647_s16, 4  }
 0x78b   : > { %s6651_s15 = smov %s6648_s23 }
 0x78c   :  { %26 = sbr.rel (!%p24_p13) target bundleno = 8 (0x8), region = 135 }
 0x791   :  { %4174 = vsyncpa [#allocation4], 1 }
 0x792   :  { %4176 = vsyncpa [#allocation4 + $0x1], 1 }
 0x793   :  { %4177 = vsyncpa [#allocation7], 1 }
 0x794   :  { %4178 = vsyncpa [#allocation5], 1 }
 0x795   :  { %4180 = vsyncpa [#allocation5 + $0x1], 1 }

</bundles_post_ra>
